<compile_context>
chip_gen: v7x
topology: tpu7x:2x2x1
jax: 0.10.0
libtpu: 0.0.40
codegen_flags: <defaults>
</compile_context>

<pallas_src>
import functools

import jax
import jax.numpy as jnp
from jax.experimental import pallas as pl
from jax.experimental.pallas import tpu as pltpu


LRELU_SLOPE = 0.01   # F.leaky_relu default negative_slope
BN_EPS = 1e-5        # nn.BatchNorm2d default eps


def _round_up(x, m):
    return (x + m - 1) // m * m


def _vmem_limit_bytes():
    """Per-generation scoped-VMEM budget: <=48 MiB on v7x (64 MiB physical),
    up to 112 MiB on v5e/v6e (128 MiB physical)."""
    try:
        cap = int(pltpu.get_tpu_info().vmem_capacity_bytes)
    except Exception:
        cap = 64 * 1024 * 1024
    return max(32 * 1024 * 1024, min(cap - 16 * 1024 * 1024, 112 * 1024 * 1024))


_VMEM_LIMIT = _vmem_limit_bytes()

_TILE_M_CANDIDATES = (32768, 16384, 8192, 4096, 2048, 1024,
                      512, 256, 128, 64, 32, 16, 8)


def _choose_tile_k(K):
    """Contraction tile: full K for small/ragged K, 1024 for the deep layers."""
    if K > 1024 and K % 1024 == 0:
        return 1024
    return K


def _choose_tile_m(M, bytes_per_row, budget):
    """Largest M tile whose per-step VMEM footprint fits `budget` and that
    divides M (or the full M extent)."""
    want = max(8, int(budget) // max(int(bytes_per_row), 1))
    if want >= M:
        return M
    for t in _TILE_M_CANDIDATES:
        if t <= want and M % t == 0:
            return t
    return M


# ---------------------------------------------------------------------------
# Kernels
# ---------------------------------------------------------------------------
def _conv_mm_kernel(p_ref, w_ref, b_ref, y_ref, acc_ref, *, alpha):
    """K-tiled (TILE_M, tk) @ (tk, CoutP) matmul; f32 accumulator; bias
    (+ optional LeakyReLU) applied on the final K step."""
    k = pl.program_id(1)

    @pl.when(k == 0)
    def _init():
        acc_ref[...] = jnp.zeros_like(acc_ref)

    acc_ref[...] += jnp.dot(p_ref[...], w_ref[...],
                            preferred_element_type=jnp.float32)

    @pl.when(k == pl.num_programs(1) - 1)
    def _finalize():
        y = acc_ref[...] + b_ref[...]
        if alpha is not None:
            y = jnp.where(y > 0, y, alpha * y)
        y_ref[...] = y.astype(y_ref.dtype)


def _conv_mm_stats_kernel(p_ref, w_ref, b_ref, y_ref, stats_ref, acc_ref):
    """Same matmul; additionally emits per-M-tile partial [sum; sumsq] rows
    (combined outside the kernel) so the M grid axis stays 'parallel'."""
    k = pl.program_id(1)

    @pl.when(k == 0)
    def _init():
        acc_ref[...] = jnp.zeros_like(acc_ref)

    acc_ref[...] += jnp.dot(p_ref[...], w_ref[...],
                            preferred_element_type=jnp.float32)

    @pl.when(k == pl.num_programs(1) - 1)
    def _finalize():
        y = acc_ref[...] + b_ref[...]
        y_ref[...] = y.astype(y_ref.dtype)
        st = jnp.concatenate(
            [jnp.sum(y, axis=0, keepdims=True),
             jnp.sum(y * y, axis=0, keepdims=True)], axis=0)   # (2, CoutP)
        stats_ref[...] = st[None, :, :]


def _bn_lrelu_kernel(y_ref, sc_ref, sh_ref, o_ref, *, alpha):
    """Affine BatchNorm apply (precomputed scale/shift rows) + LeakyReLU."""
    y = y_ref[...].astype(jnp.float32) * sc_ref[...] + sh_ref[...]
    o_ref[...] = jnp.where(y > 0, y, alpha * y).astype(o_ref.dtype)


# ---------------------------------------------------------------------------
# Glue
# ---------------------------------------------------------------------------
def _im2col_nhwc(x, k, stride, pad):
    """Extract k x k patches (plain-JAX gather/reshape glue)."""
    N, H, W, C = x.shape
    if pad:
        x = jnp.pad(x, ((0, 0), (pad, pad), (pad, pad), (0, 0)))
    Ho = (H + 2 * pad - k) // stride + 1
    Wo = (W + 2 * pad - k) // stride + 1
    cols = []
    for i in range(k):
        for j in range(k):
            cols.append(x[:, i:i + stride * Ho:stride, j:j + stride * Wo:stride, :])
    p = jnp.stack(cols, axis=3)                      # (N, Ho, Wo, k*k, C)
    return p.reshape(N * Ho * Wo, k * k * C), (N, Ho, Wo)


def conv_block(x_nhwc, w_mat, b_row, gamma, beta, *, cout, ksize, stride, pad,
               use_bn, alpha, out_dtype):
    """Conv2d(k=4, bias) [+ BatchNorm2d (train-mode batch stats)] [+ LeakyReLU]."""
    K, coutp = w_mat.shape
    patches, (N, Ho, Wo) = _im2col_nhwc(x_nhwc.astype(jnp.bfloat16),
                                        ksize, stride, pad)
    M = patches.shape[0]

    tk = _choose_tile_k(K)
    n_k = K // tk

    y1_dtype = jnp.bfloat16 if use_bn else out_dtype
    y1_bytes = jnp.dtype(y1_dtype).itemsize

    # Per-step VMEM: patch double-buffer + f32 accumulator + y double-buffer,
    # weight double-buffer accounted separately against the budget.
    w_dbuf = 2 * tk * coutp * 2
    budget = max(4 * 1024 * 1024, _VMEM_LIMIT // 2 - w_dbuf)
    per_row = 2 * 2 * tk + 4 * coutp + 2 * y1_bytes * coutp
    tm = _choose_tile_m(M, per_row, budget)
    n_m = M // tm
    grid = (n_m, n_k)

    p_spec = pl.BlockSpec((tm, tk), lambda i, k: (i, k))
    w_spec = pl.BlockSpec((tk, coutp), lambda i, k: (k, 0))
    row_spec = pl.BlockSpec((1, coutp), lambda i, k: (0, 0))
    y_spec = pl.BlockSpec((tm, coutp), lambda i, k: (i, 0))

    cparams = pltpu.CompilerParams(
        dimension_semantics=("parallel", "arbitrary"),
        vmem_limit_bytes=_VMEM_LIMIT)

    if not use_bn:
        y = pl.pallas_call(
            functools.partial(_conv_mm_kernel, alpha=alpha),
            out_shape=jax.ShapeDtypeStruct((M, coutp), y1_dtype),
            grid=grid,
            in_specs=[p_spec, w_spec, row_spec],
            out_specs=y_spec,
            scratch_shapes=[pltpu.VMEM((tm, coutp), jnp.float32)],
            compiler_params=cparams,
        )(patches, w_mat, b_row)
    else:
        stats_spec = pl.BlockSpec((1, 2, coutp), lambda i, k: (i, 0, 0))
        y, stats = pl.pallas_call(
            _conv_mm_stats_kernel,
            out_shape=(jax.ShapeDtypeStruct((M, coutp), y1_dtype),
                       jax.ShapeDtypeStruct((n_m, 2, coutp), jnp.float32)),
            grid=grid,
            in_specs=[p_spec, w_spec, row_spec],
            out_specs=(y_spec, stats_spec),
            scratch_shapes=[pltpu.VMEM((tm, coutp), jnp.float32)],
            compiler_params=cparams,
        )(patches, w_mat, b_row)

        # Combine the per-tile partial stats and derive the affine BN transform.
        # (Tiny (2, CoutP) reduce + elementwise — plain XLA, negligible.)
        stats = jnp.sum(stats, axis=0)                         # (2, CoutP)
        mean = stats[0] / M
        var = jnp.maximum(stats[1] / M - mean * mean, 0.0)     # biased var (train mode)
        scale = (gamma * jax.lax.rsqrt(var + BN_EPS)).astype(jnp.float32)
        shift = (beta - mean * scale).astype(jnp.float32)
        scale = scale.reshape(1, coutp)
        shift = shift.reshape(1, coutp)

        # Pass 2: normalize + LeakyReLU, fully parallel over M tiles (bf16 I/O).
        per_row2 = 2 * y1_bytes * coutp + 2 * jnp.dtype(out_dtype).itemsize * coutp
        tm2 = _choose_tile_m(M, per_row2, _VMEM_LIMIT // 2)
        y2_spec = pl.BlockSpec((tm2, coutp), lambda i: (i, 0))
        row2_spec = pl.BlockSpec((1, coutp), lambda i: (0, 0))
        y = pl.pallas_call(
            functools.partial(_bn_lrelu_kernel, alpha=alpha),
            out_shape=jax.ShapeDtypeStruct((M, coutp), out_dtype),
            grid=(M // tm2,),
            in_specs=[y2_spec, row2_spec, row2_spec],
            out_specs=y2_spec,
            compiler_params=pltpu.CompilerParams(
                dimension_semantics=("parallel",),
                vmem_limit_bytes=_VMEM_LIMIT),
        )(y, scale, shift)

    return y[:, :cout].reshape(N, Ho, Wo, cout)


# ---------------------------------------------------------------------------
# Parameters
# ---------------------------------------------------------------------------
def init_params(key, z_size, d=128, nc=1):
    """Weights ~ N(0, 0.02), biases zeroed (normal_init); BN gamma=1, beta=0."""
    ks = jax.random.split(key, 5)

    def conv_w(k, co, ci):
        return 0.02 * jax.random.normal(k, (co, ci, 4, 4), jnp.float32)

    ones = lambda n: jnp.ones((n,), jnp.float32)
    zeros = lambda n: jnp.zeros((n,), jnp.float32)
    return [
        (conv_w(ks[0], d, nc), zeros(d)),
        (conv_w(ks[1], d * 2, d), zeros(d * 2), ones(d * 2), zeros(d * 2)),
        (conv_w(ks[2], d * 4, d * 2), zeros(d * 4), ones(d * 4), zeros(d * 4)),
        (conv_w(ks[3], d * 8, d * 4), zeros(d * 8), ones(d * 8), zeros(d * 8)),
        (conv_w(ks[4], z_size, d * 8), zeros(z_size)),
    ]


def pack_params(params):
    """One-time repack (hoisted out of the forward path): OIHW -> (K, CoutP)
    bf16 weight matrix, padded f32 bias row, padded gamma/beta vectors."""
    packed = []
    for p in params:
        w, b = p[0], p[1]
        cout, cin, k, _ = w.shape
        coutp = _round_up(cout, 128)
        w_mat = jnp.transpose(w, (2, 3, 1, 0)).reshape(k * k * cin, cout)
        w_mat = jnp.pad(w_mat, ((0, 0), (0, coutp - cout))).astype(jnp.bfloat16)
        b_row = jnp.pad(b, (0, coutp - cout)).reshape(1, coutp).astype(jnp.float32)
        if len(p) == 4:
            g = jnp.pad(p[2], (0, coutp - cout),
                        constant_values=1.0).astype(jnp.float32)
            be = jnp.pad(p[3], (0, coutp - cout)).astype(jnp.float32)
            packed.append((w_mat, b_row, g, be))
        else:
            packed.append((w_mat, b_row))
    return packed


# ---------------------------------------------------------------------------
# Forward pass
# ---------------------------------------------------------------------------
def encoder_mnist_forward(x_nchw, packed, *, z_size, d):
    x = jnp.transpose(x_nchw, (0, 2, 3, 1))               # NCHW -> NHWC
    couts = (d, d * 2, d * 4, d * 8, z_size)

    # conv1 + LeakyReLU(0.01)
    w, b = packed[0]
    x = conv_block(x, w, b, None, None, cout=couts[0], ksize=4, stride=2, pad=1,
                   use_bn=False, alpha=LRELU_SLOPE, out_dtype=jnp.bfloat16)
    # conv2..conv4 + BN + LeakyReLU
    for li in (1, 2, 3):
        w, b, g, be = packed[li]
        x = conv_block(x, w, b, g, be, cout=couts[li], ksize=4, stride=2, pad=1,
                       use_bn=True, alpha=LRELU_SLOPE, out_dtype=jnp.bfloat16)
    # conv5 (4,1,0), no BN / activation; final output stays f32
    w, b = packed[4]
    x = conv_block(x, w, b, None, None, cout=couts[4], ksize=4, stride=1, pad=0,
                   use_bn=False, alpha=None, out_dtype=jnp.float32)
    return x.reshape(-1, z_size)                           # x.view(-1, z_size)


if __name__ == "__main__":
    # 64x64 input is required by the 5-conv geometry (64->32->16->8->4->1);
    # keep channels small for a quick test.
    z_size, d, nc = 16, 8, 1
    N, H, W = 2, 64, 64

    key = jax.random.PRNGKey(0)
    kx, kp = jax.random.split(key)
    x = jax.random.normal(kx, (N, nc, H, W), dtype=jnp.float32)

    params = init_params(kp, z_size, d=d, nc=nc)
    packed = pack_params(params)   # repack once, outside the forward path

    fwd = jax.jit(functools.partial(encoder_mnist_forward, z_size=z_size, d=d))
    out = fwd(x, packed)
    jax.block_until_ready(out)

    assert out.shape == (N, z_size), out.shape
    assert out.dtype == jnp.float32
    assert bool(jnp.all(jnp.isfinite(out)))
    print("KERNEL_OK")
</pallas_src>

<mosaic_0001>
module attributes {stable_mosaic.version = 11 : i64} {
  func.func @_conv_mm_kernel(%arg0: i32, %arg1: i32, %arg2: memref<2048x16xbf16, #tpu.memory_space<vmem>>, %arg3: memref<16x128xbf16, #tpu.memory_space<vmem>>, %arg4: memref<1x128xf32, #tpu.memory_space<vmem>>, %arg5: memref<2048x128xbf16, #tpu.memory_space<vmem>>, %arg6: memref<2048x128xf32, #tpu.memory_space<vmem>>) attributes {dimension_semantics = [#tpu.dimension_semantics<parallel>, #tpu.dimension_semantics<arbitrary>], iteration_bounds = array<i64: 1, 1>, scalar_prefetch = 0 : i64, scratch_operands = 1 : i64, tpu.core_type = #tpu.core_type<tc>, window_params = [{transform_indices = @transform_0, window_bounds = array<i64: 2048, 16>}, {transform_indices = @transform_1, window_bounds = array<i64: 16, 128>}, {pipeline_mode = #tpu.pipeline_mode<synchronous>, transform_indices = @transform_2, window_bounds = array<i64: 1, 128>}, {transform_indices = @transform_3, window_bounds = array<i64: 2048, 128>}]} {
    %c0_i32 = arith.constant 0 : i32
    %0 = arith.cmpi eq, %arg1, %c0_i32 : i32
    %1 = arith.extui %0 : i1 to i32
    %c0_i32_0 = arith.constant 0 : i32
    %2 = arith.cmpi ne, %1, %c0_i32_0 : i32
    scf.if %2 {
      %cst_10 = arith.constant 0.000000e+00 : f32
      %12 = vector.broadcast %cst_10 : f32 to vector<2048x128xf32>
      %c0_11 = arith.constant 0 : index
      %c0_12 = arith.constant 0 : index
      %13 = vector.load %arg6[%c0_11, %c0_12] : memref<2048x128xf32, #tpu.memory_space<vmem>>, vector<2048x128xf32>
      tpu.vector_store %arg6[%c0_11, %c0_12], %12 {strides = array<i32>} : memref<2048x128xf32, #tpu.memory_space<vmem>>, vector<2048x128xf32>,
    } else {
    }
    %c0 = arith.constant 0 : index
    %c0_1 = arith.constant 0 : index
    %3 = vector.load %arg6[%c0, %c0_1] : memref<2048x128xf32, #tpu.memory_space<vmem>>, vector<2048x128xf32>
    %c0_2 = arith.constant 0 : index
    %c0_3 = arith.constant 0 : index
    %4 = vector.load %arg2[%c0_2, %c0_3] : memref<2048x16xbf16, #tpu.memory_space<vmem>>, vector<2048x16xbf16>
    %c0_4 = arith.constant 0 : index
    %c0_5 = arith.constant 0 : index
    %5 = vector.load %arg3[%c0_4, %c0_5] : memref<16x128xbf16, #tpu.memory_space<vmem>>, vector<16x128xbf16>
    %cst = arith.constant dense<0.000000e+00> : vector<2048x128xf32>
    %6 = tpu.matmul %4, %5, %cst {dimension_numbers = #tpu.dot_dimension_numbers<[1], [0], [0], [1], [0, 0, 1, 1], [], []>} : vector<2048x16xbf16>, vector<16x128xbf16>, vector<2048x128xf32> -> vector<2048x128xf32>
    %7 = arith.addf %3, %6 : vector<2048x128xf32>
    %c0_6 = arith.constant 0 : index
    %c0_7 = arith.constant 0 : index
    %8 = vector.load %arg6[%c0_6, %c0_7] : memref<2048x128xf32, #tpu.memory_space<vmem>>, vector<2048x128xf32>
    tpu.vector_store %arg6[%c0_6, %c0_7], %7 {strides = array<i32>} : memref<2048x128xf32, #tpu.memory_space<vmem>>, vector<2048x128xf32>,
    %c0_i32_8 = arith.constant 0 : i32
    %9 = arith.cmpi eq, %arg1, %c0_i32_8 : i32
    %10 = arith.extui %9 : i1 to i32
    %c0_i32_9 = arith.constant 0 : i32
    %11 = arith.cmpi ne, %10, %c0_i32_9 : i32
    scf.if %11 {
      %c0_10 = arith.constant 0 : index
      %c0_11 = arith.constant 0 : index
      %12 = vector.load %arg6[%c0_10, %c0_11] : memref<2048x128xf32, #tpu.memory_space<vmem>>, vector<2048x128xf32>
      %c0_12 = arith.constant 0 : index
      %c0_13 = arith.constant 0 : index
      %13 = vector.load %arg4[%c0_12, %c0_13] : memref<1x128xf32, #tpu.memory_space<vmem>>, vector<1x128xf32>
      %14 = vector.broadcast %13 : vector<1x128xf32> to vector<2048x128xf32>
      %15 = arith.addf %12, %14 : vector<2048x128xf32>
      %cst_14 = arith.constant 0.000000e+00 : f32
      %16 = vector.broadcast %cst_14 : f32 to vector<2048x128xf32>
      %17 = arith.cmpf ogt, %15, %16 : vector<2048x128xf32>
      %cst_15 = arith.constant 0.00999999977 : f32
      %18 = vector.broadcast %cst_15 : f32 to vector<2048x128xf32>
      %19 = arith.mulf %18, %15 : vector<2048x128xf32>
      %20 = arith.select %17, %15, %19 : vector<2048x128xi1>, vector<2048x128xf32>
      %21 = arith.truncf %20 : vector<2048x128xf32> to vector<2048x128xbf16>
      %c0_16 = arith.constant 0 : index
      %c0_17 = arith.constant 0 : index
      %22 = vector.load %arg5[%c0_16, %c0_17] : memref<2048x128xbf16, #tpu.memory_space<vmem>>, vector<2048x128xbf16>
      tpu.vector_store %arg5[%c0_16, %c0_17], %21 {strides = array<i32>} : memref<2048x128xbf16, #tpu.memory_space<vmem>>, vector<2048x128xbf16>,
    } else {
    }
    return
  }
  func.func @transform_0(%arg0: i32, %arg1: i32) -> (i32, i32) {
    %c0_i32 = arith.constant 0 : i32
    return %arg0, %arg1 : i32, i32
  }
  func.func @transform_1(%arg0: i32, %arg1: i32) -> (i32, i32) {
    %c0_i32 = arith.constant 0 : i32
    %c0_i32_0 = arith.constant 0 : i32
    return %arg1, %c0_i32 : i32, i32
  }
  func.func @transform_2(%arg0: i32, %arg1: i32) -> (i32, i32) {
    %c0_i32 = arith.constant 0 : i32
    %c0_i32_0 = arith.constant 0 : i32
    %c0_i32_1 = arith.constant 0 : i32
    return %c0_i32, %c0_i32_0 : i32, i32
  }
  func.func @transform_3(%arg0: i32, %arg1: i32) -> (i32, i32) {
    %c0_i32 = arith.constant 0 : i32
    %c0_i32_0 = arith.constant 0 : i32
    return %arg0, %c0_i32 : i32, i32
  }
}

module attributes {stable_mosaic.version = 11 : i64} {
  func.func @_conv_mm_stats_kernel(%arg0: i32, %arg1: i32, %arg2: memref<512x128xbf16, #tpu.memory_space<vmem>>, %arg3: memref<128x128xbf16, #tpu.memory_space<vmem>>, %arg4: memref<1x128xf32, #tpu.memory_space<vmem>>, %arg5: memref<512x128xbf16, #tpu.memory_space<vmem>>, %arg6: memref<1x2x128xf32, #tpu.memory_space<vmem>>, %arg7: memref<512x128xf32, #tpu.memory_space<vmem>>) attributes {dimension_semantics = [#tpu.dimension_semantics<parallel>, #tpu.dimension_semantics<arbitrary>], iteration_bounds = array<i64: 1, 1>, scalar_prefetch = 0 : i64, scratch_operands = 1 : i64, tpu.core_type = #tpu.core_type<tc>, window_params = [{transform_indices = @transform_0, window_bounds = array<i64: 512, 128>}, {transform_indices = @transform_1, window_bounds = array<i64: 128, 128>}, {pipeline_mode = #tpu.pipeline_mode<synchronous>, transform_indices = @transform_2, window_bounds = array<i64: 1, 128>}, {transform_indices = @transform_3, window_bounds = array<i64: 512, 128>}, {transform_indices = @transform_4, window_bounds = array<i64: 1, 2, 128>}]} {
    %c0_i32 = arith.constant 0 : i32
    %0 = arith.cmpi eq, %arg1, %c0_i32 : i32
    %1 = arith.extui %0 : i1 to i32
    %c0_i32_0 = arith.constant 0 : i32
    %2 = arith.cmpi ne, %1, %c0_i32_0 : i32
    scf.if %2 {
      %cst_10 = arith.constant 0.000000e+00 : f32
      %12 = vector.broadcast %cst_10 : f32 to vector<512x128xf32>
      %c0_11 = arith.constant 0 : index
      %c0_12 = arith.constant 0 : index
      %13 = vector.load %arg7[%c0_11, %c0_12] : memref<512x128xf32, #tpu.memory_space<vmem>>, vector<512x128xf32>
      tpu.vector_store %arg7[%c0_11, %c0_12], %12 {strides = array<i32>} : memref<512x128xf32, #tpu.memory_space<vmem>>, vector<512x128xf32>,
    } else {
    }
    %c0 = arith.constant 0 : index
    %c0_1 = arith.constant 0 : index
    %3 = vector.load %arg7[%c0, %c0_1] : memref<512x128xf32, #tpu.memory_space<vmem>>, vector<512x128xf32>
    %c0_2 = arith.constant 0 : index
    %c0_3 = arith.constant 0 : index
    %4 = vector.load %arg2[%c0_2, %c0_3] : memref<512x128xbf16, #tpu.memory_space<vmem>>, vector<512x128xbf16>
    %c0_4 = arith.constant 0 : index
    %c0_5 = arith.constant 0 : index
    %5 = vector.load %arg3[%c0_4, %c0_5] : memref<128x128xbf16, #tpu.memory_space<vmem>>, vector<128x128xbf16>
    %cst = arith.constant dense<0.000000e+00> : vector<512x128xf32>
    %6 = tpu.matmul %4, %5, %cst {dimension_numbers = #tpu.dot_dimension_numbers<[1], [0], [0], [1], [0, 0, 1, 1], [], []>} : vector<512x128xbf16>, vector<128x128xbf16>, vector<512x128xf32> -> vector<512x128xf32>
    %7 = arith.addf %3, %6 : vector<512x128xf32>
    %c0_6 = arith.constant 0 : index
    %c0_7 = arith.constant 0 : index
    %8 = vector.load %arg7[%c0_6, %c0_7] : memref<512x128xf32, #tpu.memory_space<vmem>>, vector<512x128xf32>
    tpu.vector_store %arg7[%c0_6, %c0_7], %7 {strides = array<i32>} : memref<512x128xf32, #tpu.memory_space<vmem>>, vector<512x128xf32>,
    %c0_i32_8 = arith.constant 0 : i32
    %9 = arith.cmpi eq, %arg1, %c0_i32_8 : i32
    %10 = arith.extui %9 : i1 to i32
    %c0_i32_9 = arith.constant 0 : i32
    %11 = arith.cmpi ne, %10, %c0_i32_9 : i32
    scf.if %11 {
      %c0_10 = arith.constant 0 : index
      %c0_11 = arith.constant 0 : index
      %12 = vector.load %arg7[%c0_10, %c0_11] : memref<512x128xf32, #tpu.memory_space<vmem>>, vector<512x128xf32>
      %c0_12 = arith.constant 0 : index
      %c0_13 = arith.constant 0 : index
      %13 = vector.load %arg4[%c0_12, %c0_13] : memref<1x128xf32, #tpu.memory_space<vmem>>, vector<1x128xf32>
      %14 = vector.broadcast %13 : vector<1x128xf32> to vector<512x128xf32>
      %15 = arith.addf %12, %14 : vector<512x128xf32>
      %16 = arith.truncf %15 : vector<512x128xf32> to vector<512x128xbf16>
      %c0_14 = arith.constant 0 : index
      %c0_15 = arith.constant 0 : index
      %17 = vector.load %arg5[%c0_14, %c0_15] : memref<512x128xbf16, #tpu.memory_space<vmem>>, vector<512x128xbf16>
      tpu.vector_store %arg5[%c0_14, %c0_15], %16 {strides = array<i32>} : memref<512x128xbf16, #tpu.memory_space<vmem>>, vector<512x128xbf16>,
      %cst_16 = arith.constant dense<0.000000e+00> : vector<128xf32>
      %18 = vector.multi_reduction <add>, %15, %cst_16 [0] : vector<512x128xf32> to vector<128xf32>
      %19 = vector.shape_cast %18 : vector<128xf32> to vector<1x128xf32>
      %20 = arith.mulf %15, %15 : vector<512x128xf32>
      %cst_17 = arith.constant dense<0.000000e+00> : vector<128xf32>
      %21 = vector.multi_reduction <add>, %20, %cst_17 [0] : vector<512x128xf32> to vector<128xf32>
      %22 = vector.shape_cast %21 : vector<128xf32> to vector<1x128xf32>
      %23 = tpu.concatenate %19, %22 in 0 : vector<1x128xf32>, vector<1x128xf32> -> vector<2x128xf32>
      %24 = vector.shape_cast %23 : vector<2x128xf32> to vector<1x2x128xf32>
      %c0_18 = arith.constant 0 : index
      %c0_19 = arith.constant 0 : index
      %c0_20 = arith.constant 0 : index
      %25 = vector.load %arg6[%c0_18, %c0_19, %c0_20] : memref<1x2x128xf32, #tpu.memory_space<vmem>>, vector<1x2x128xf32>
      tpu.vector_store %arg6[%c0_18, %c0_19, %c0_20], %24 {strides = array<i32>} : memref<1x2x128xf32, #tpu.memory_space<vmem>>, vector<1x2x128xf32>,
    } else {
    }
    return
  }
  func.func @transform_0(%arg0: i32, %arg1: i32) -> (i32, i32) {
    %c0_i32 = arith.constant 0 : i32
    return %arg0, %arg1 : i32, i32
  }
  func.func @transform_1(%arg0: i32, %arg1: i32) -> (i32, i32) {
    %c0_i32 = arith.constant 0 : i32
    %c0_i32_0 = arith.constant 0 : i32
    return %arg1, %c0_i32 : i32, i32
  }
  func.func @transform_2(%arg0: i32, %arg1: i32) -> (i32, i32) {
    %c0_i32 = arith.constant 0 : i32
    %c0_i32_0 = arith.constant 0 : i32
    %c0_i32_1 = arith.constant 0 : i32
    return %c0_i32, %c0_i32_0 : i32, i32
  }
  func.func @transform_3(%arg0: i32, %arg1: i32) -> (i32, i32) {
    %c0_i32 = arith.constant 0 : i32
    %c0_i32_0 = arith.constant 0 : i32
    return %arg0, %c0_i32 : i32, i32
  }
  func.func @transform_4(%arg0: i32, %arg1: i32) -> (i32, i32, i32) {
    %c0_i32 = arith.constant 0 : i32
    %c0_i32_0 = arith.constant 0 : i32
    %c0_i32_1 = arith.constant 0 : i32
    return %arg0, %c0_i32, %c0_i32_0 : i32, i32, i32
  }
}

module attributes {stable_mosaic.version = 11 : i64} {
  func.func @_bn_lrelu_kernel(%arg0: i32, %arg1: memref<512x128xbf16, #tpu.memory_space<vmem>>, %arg2: memref<1x128xf32, #tpu.memory_space<vmem>>, %arg3: memref<1x128xf32, #tpu.memory_space<vmem>>, %arg4: memref<512x128xbf16, #tpu.memory_space<vmem>>) attributes {dimension_semantics = [#tpu.dimension_semantics<parallel>], iteration_bounds = array<i64: 1>, scalar_prefetch = 0 : i64, scratch_operands = 0 : i64, tpu.core_type = #tpu.core_type<tc>, window_params = [{transform_indices = @transform_0, window_bounds = array<i64: 512, 128>}, {pipeline_mode = #tpu.pipeline_mode<synchronous>, transform_indices = @transform_1, window_bounds = array<i64: 1, 128>}, {pipeline_mode = #tpu.pipeline_mode<synchronous>, transform_indices = @transform_2, window_bounds = array<i64: 1, 128>}, {transform_indices = @transform_3, window_bounds = array<i64: 512, 128>}]} {
    %c0 = arith.constant 0 : index
    %c0_0 = arith.constant 0 : index
    %0 = vector.load %arg1[%c0, %c0_0] : memref<512x128xbf16, #tpu.memory_space<vmem>>, vector<512x128xbf16>
    %1 = arith.extf %0 : vector<512x128xbf16> to vector<512x128xf32>
    %c0_1 = arith.constant 0 : index
    %c0_2 = arith.constant 0 : index
    %2 = vector.load %arg2[%c0_1, %c0_2] : memref<1x128xf32, #tpu.memory_space<vmem>>, vector<1x128xf32>
    %3 = vector.broadcast %2 : vector<1x128xf32> to vector<512x128xf32>
    %4 = arith.mulf %1, %3 : vector<512x128xf32>
    %c0_3 = arith.constant 0 : index
    %c0_4 = arith.constant 0 : index
    %5 = vector.load %arg3[%c0_3, %c0_4] : memref<1x128xf32, #tpu.memory_space<vmem>>, vector<1x128xf32>
    %6 = vector.broadcast %5 : vector<1x128xf32> to vector<512x128xf32>
    %7 = arith.addf %4, %6 : vector<512x128xf32>
    %cst = arith.constant 0.000000e+00 : f32
    %8 = vector.broadcast %cst : f32 to vector<512x128xf32>
    %9 = arith.cmpf ogt, %7, %8 : vector<512x128xf32>
    %cst_5 = arith.constant 0.00999999977 : f32
    %10 = vector.broadcast %cst_5 : f32 to vector<512x128xf32>
    %11 = arith.mulf %10, %7 : vector<512x128xf32>
    %12 = arith.select %9, %7, %11 : vector<512x128xi1>, vector<512x128xf32>
    %13 = arith.truncf %12 : vector<512x128xf32> to vector<512x128xbf16>
    %c0_6 = arith.constant 0 : index
    %c0_7 = arith.constant 0 : index
    %14 = vector.load %arg4[%c0_6, %c0_7] : memref<512x128xbf16, #tpu.memory_space<vmem>>, vector<512x128xbf16>
    tpu.vector_store %arg4[%c0_6, %c0_7], %13 {strides = array<i32>} : memref<512x128xbf16, #tpu.memory_space<vmem>>, vector<512x128xbf16>,
    return
  }
  func.func @transform_0(%arg0: i32) -> (i32, i32) {
    %c0_i32 = arith.constant 0 : i32
    %c0_i32_0 = arith.constant 0 : i32
    return %arg0, %c0_i32 : i32, i32
  }
  func.func @transform_1(%arg0: i32) -> (i32, i32) {
    %c0_i32 = arith.constant 0 : i32
    %c0_i32_0 = arith.constant 0 : i32
    %c0_i32_1 = arith.constant 0 : i32
    return %c0_i32, %c0_i32_0 : i32, i32
  }
  func.func @transform_2(%arg0: i32) -> (i32, i32) {
    %c0_i32 = arith.constant 0 : i32
    %c0_i32_0 = arith.constant 0 : i32
    %c0_i32_1 = arith.constant 0 : i32
    return %c0_i32, %c0_i32_0 : i32, i32
  }
  func.func @transform_3(%arg0: i32) -> (i32, i32) {
    %c0_i32 = arith.constant 0 : i32
    %c0_i32_0 = arith.constant 0 : i32
    return %arg0, %c0_i32 : i32, i32
  }
}

module attributes {stable_mosaic.version = 11 : i64} {
  func.func @_conv_mm_stats_kernel(%arg0: i32, %arg1: i32, %arg2: memref<128x256xbf16, #tpu.memory_space<vmem>>, %arg3: memref<256x128xbf16, #tpu.memory_space<vmem>>, %arg4: memref<1x128xf32, #tpu.memory_space<vmem>>, %arg5: memref<128x128xbf16, #tpu.memory_space<vmem>>, %arg6: memref<1x2x128xf32, #tpu.memory_space<vmem>>, %arg7: memref<128x128xf32, #tpu.memory_space<vmem>>) attributes {dimension_semantics = [#tpu.dimension_semantics<parallel>, #tpu.dimension_semantics<arbitrary>], iteration_bounds = array<i64: 1, 1>, scalar_prefetch = 0 : i64, scratch_operands = 1 : i64, tpu.core_type = #tpu.core_type<tc>, window_params = [{transform_indices = @transform_0, window_bounds = array<i64: 128, 256>}, {transform_indices = @transform_1, window_bounds = array<i64: 256, 128>}, {pipeline_mode = #tpu.pipeline_mode<synchronous>, transform_indices = @transform_2, window_bounds = array<i64: 1, 128>}, {transform_indices = @transform_3, window_bounds = array<i64: 128, 128>}, {transform_indices = @transform_4, window_bounds = array<i64: 1, 2, 128>}]} {
    %c0_i32 = arith.constant 0 : i32
    %0 = arith.cmpi eq, %arg1, %c0_i32 : i32
    %1 = arith.extui %0 : i1 to i32
    %c0_i32_0 = arith.constant 0 : i32
    %2 = arith.cmpi ne, %1, %c0_i32_0 : i32
    scf.if %2 {
      %cst_10 = arith.constant 0.000000e+00 : f32
      %12 = vector.broadcast %cst_10 : f32 to vector<128x128xf32>
      %c0_11 = arith.constant 0 : index
      %c0_12 = arith.constant 0 : index
      %13 = vector.load %arg7[%c0_11, %c0_12] : memref<128x128xf32, #tpu.memory_space<vmem>>, vector<128x128xf32>
      tpu.vector_store %arg7[%c0_11, %c0_12], %12 {strides = array<i32>} : memref<128x128xf32, #tpu.memory_space<vmem>>, vector<128x128xf32>,
    } else {
    }
    %c0 = arith.constant 0 : index
    %c0_1 = arith.constant 0 : index
    %3 = vector.load %arg7[%c0, %c0_1] : memref<128x128xf32, #tpu.memory_space<vmem>>, vector<128x128xf32>
    %c0_2 = arith.constant 0 : index
    %c0_3 = arith.constant 0 : index
    %4 = vector.load %arg2[%c0_2, %c0_3] : memref<128x256xbf16, #tpu.memory_space<vmem>>, vector<128x256xbf16>
    %c0_4 = arith.constant 0 : index
    %c0_5 = arith.constant 0 : index
    %5 = vector.load %arg3[%c0_4, %c0_5] : memref<256x128xbf16, #tpu.memory_space<vmem>>, vector<256x128xbf16>
    %cst = arith.constant dense<0.000000e+00> : vector<128x128xf32>
    %6 = tpu.matmul %4, %5, %cst {dimension_numbers = #tpu.dot_dimension_numbers<[1], [0], [0], [1], [0, 0, 1, 1], [], []>} : vector<128x256xbf16>, vector<256x128xbf16>, vector<128x128xf32> -> vector<128x128xf32>
    %7 = arith.addf %3, %6 : vector<128x128xf32>
    %c0_6 = arith.constant 0 : index
    %c0_7 = arith.constant 0 : index
    %8 = vector.load %arg7[%c0_6, %c0_7] : memref<128x128xf32, #tpu.memory_space<vmem>>, vector<128x128xf32>
    tpu.vector_store %arg7[%c0_6, %c0_7], %7 {strides = array<i32>} : memref<128x128xf32, #tpu.memory_space<vmem>>, vector<128x128xf32>,
    %c0_i32_8 = arith.constant 0 : i32
    %9 = arith.cmpi eq, %arg1, %c0_i32_8 : i32
    %10 = arith.extui %9 : i1 to i32
    %c0_i32_9 = arith.constant 0 : i32
    %11 = arith.cmpi ne, %10, %c0_i32_9 : i32
    scf.if %11 {
      %c0_10 = arith.constant 0 : index
      %c0_11 = arith.constant 0 : index
      %12 = vector.load %arg7[%c0_10, %c0_11] : memref<128x128xf32, #tpu.memory_space<vmem>>, vector<128x128xf32>
      %c0_12 = arith.constant 0 : index
      %c0_13 = arith.constant 0 : index
      %13 = vector.load %arg4[%c0_12, %c0_13] : memref<1x128xf32, #tpu.memory_space<vmem>>, vector<1x128xf32>
      %14 = vector.broadcast %13 : vector<1x128xf32> to vector<128x128xf32>
      %15 = arith.addf %12, %14 : vector<128x128xf32>
      %16 = arith.truncf %15 : vector<128x128xf32> to vector<128x128xbf16>
      %c0_14 = arith.constant 0 : index
      %c0_15 = arith.constant 0 : index
      %17 = vector.load %arg5[%c0_14, %c0_15] : memref<128x128xbf16, #tpu.memory_space<vmem>>, vector<128x128xbf16>
      tpu.vector_store %arg5[%c0_14, %c0_15], %16 {strides = array<i32>} : memref<128x128xbf16, #tpu.memory_space<vmem>>, vector<128x128xbf16>,
      %cst_16 = arith.constant dense<0.000000e+00> : vector<128xf32>
      %18 = vector.multi_reduction <add>, %15, %cst_16 [0] : vector<128x128xf32> to vector<128xf32>
      %19 = vector.shape_cast %18 : vector<128xf32> to vector<1x128xf32>
      %20 = arith.mulf %15, %15 : vector<128x128xf32>
      %cst_17 = arith.constant dense<0.000000e+00> : vector<128xf32>
      %21 = vector.multi_reduction <add>, %20, %cst_17 [0] : vector<128x128xf32> to vector<128xf32>
      %22 = vector.shape_cast %21 : vector<128xf32> to vector<1x128xf32>
      %23 = tpu.concatenate %19, %22 in 0 : vector<1x128xf32>, vector<1x128xf32> -> vector<2x128xf32>
      %24 = vector.shape_cast %23 : vector<2x128xf32> to vector<1x2x128xf32>
      %c0_18 = arith.constant 0 : index
      %c0_19 = arith.constant 0 : index
      %c0_20 = arith.constant 0 : index
      %25 = vector.load %arg6[%c0_18, %c0_19, %c0_20] : memref<1x2x128xf32, #tpu.memory_space<vmem>>, vector<1x2x128xf32>
      tpu.vector_store %arg6[%c0_18, %c0_19, %c0_20], %24 {strides = array<i32>} : memref<1x2x128xf32, #tpu.memory_space<vmem>>, vector<1x2x128xf32>,
    } else {
    }
    return
  }
  func.func @transform_0(%arg0: i32, %arg1: i32) -> (i32, i32) {
    %c0_i32 = arith.constant 0 : i32
    return %arg0, %arg1 : i32, i32
  }
  func.func @transform_1(%arg0: i32, %arg1: i32) -> (i32, i32) {
    %c0_i32 = arith.constant 0 : i32
    %c0_i32_0 = arith.constant 0 : i32
    return %arg1, %c0_i32 : i32, i32
  }
  func.func @transform_2(%arg0: i32, %arg1: i32) -> (i32, i32) {
    %c0_i32 = arith.constant 0 : i32
    %c0_i32_0 = arith.constant 0 : i32
    %c0_i32_1 = arith.constant 0 : i32
    return %c0_i32, %c0_i32_0 : i32, i32
  }
  func.func @transform_3(%arg0: i32, %arg1: i32) -> (i32, i32) {
    %c0_i32 = arith.constant 0 : i32
    %c0_i32_0 = arith.constant 0 : i32
    return %arg0, %c0_i32 : i32, i32
  }
  func.func @transform_4(%arg0: i32, %arg1: i32) -> (i32, i32, i32) {
    %c0_i32 = arith.constant 0 : i32
    %c0_i32_0 = arith.constant 0 : i32
    %c0_i32_1 = arith.constant 0 : i32
    return %arg0, %c0_i32, %c0_i32_0 : i32, i32, i32
  }
}

module attributes {stable_mosaic.version = 11 : i64} {
  func.func @_bn_lrelu_kernel(%arg0: i32, %arg1: memref<128x128xbf16, #tpu.memory_space<vmem>>, %arg2: memref<1x128xf32, #tpu.memory_space<vmem>>, %arg3: memref<1x128xf32, #tpu.memory_space<vmem>>, %arg4: memref<128x128xbf16, #tpu.memory_space<vmem>>) attributes {dimension_semantics = [#tpu.dimension_semantics<parallel>], iteration_bounds = array<i64: 1>, scalar_prefetch = 0 : i64, scratch_operands = 0 : i64, tpu.core_type = #tpu.core_type<tc>, window_params = [{transform_indices = @transform_0, window_bounds = array<i64: 128, 128>}, {pipeline_mode = #tpu.pipeline_mode<synchronous>, transform_indices = @transform_1, window_bounds = array<i64: 1, 128>}, {pipeline_mode = #tpu.pipeline_mode<synchronous>, transform_indices = @transform_2, window_bounds = array<i64: 1, 128>}, {transform_indices = @transform_3, window_bounds = array<i64: 128, 128>}]} {
    %c0 = arith.constant 0 : index
    %c0_0 = arith.constant 0 : index
    %0 = vector.load %arg1[%c0, %c0_0] : memref<128x128xbf16, #tpu.memory_space<vmem>>, vector<128x128xbf16>
    %1 = arith.extf %0 : vector<128x128xbf16> to vector<128x128xf32>
    %c0_1 = arith.constant 0 : index
    %c0_2 = arith.constant 0 : index
    %2 = vector.load %arg2[%c0_1, %c0_2] : memref<1x128xf32, #tpu.memory_space<vmem>>, vector<1x128xf32>
    %3 = vector.broadcast %2 : vector<1x128xf32> to vector<128x128xf32>
    %4 = arith.mulf %1, %3 : vector<128x128xf32>
    %c0_3 = arith.constant 0 : index
    %c0_4 = arith.constant 0 : index
    %5 = vector.load %arg3[%c0_3, %c0_4] : memref<1x128xf32, #tpu.memory_space<vmem>>, vector<1x128xf32>
    %6 = vector.broadcast %5 : vector<1x128xf32> to vector<128x128xf32>
    %7 = arith.addf %4, %6 : vector<128x128xf32>
    %cst = arith.constant 0.000000e+00 : f32
    %8 = vector.broadcast %cst : f32 to vector<128x128xf32>
    %9 = arith.cmpf ogt, %7, %8 : vector<128x128xf32>
    %cst_5 = arith.constant 0.00999999977 : f32
    %10 = vector.broadcast %cst_5 : f32 to vector<128x128xf32>
    %11 = arith.mulf %10, %7 : vector<128x128xf32>
    %12 = arith.select %9, %7, %11 : vector<128x128xi1>, vector<128x128xf32>
    %13 = arith.truncf %12 : vector<128x128xf32> to vector<128x128xbf16>
    %c0_6 = arith.constant 0 : index
    %c0_7 = arith.constant 0 : index
    %14 = vector.load %arg4[%c0_6, %c0_7] : memref<128x128xbf16, #tpu.memory_space<vmem>>, vector<128x128xbf16>
    tpu.vector_store %arg4[%c0_6, %c0_7], %13 {strides = array<i32>} : memref<128x128xbf16, #tpu.memory_space<vmem>>, vector<128x128xbf16>,
    return
  }
  func.func @transform_0(%arg0: i32) -> (i32, i32) {
    %c0_i32 = arith.constant 0 : i32
    %c0_i32_0 = arith.constant 0 : i32
    return %arg0, %c0_i32 : i32, i32
  }
  func.func @transform_1(%arg0: i32) -> (i32, i32) {
    %c0_i32 = arith.constant 0 : i32
    %c0_i32_0 = arith.constant 0 : i32
    %c0_i32_1 = arith.constant 0 : i32
    return %c0_i32, %c0_i32_0 : i32, i32
  }
  func.func @transform_2(%arg0: i32) -> (i32, i32) {
    %c0_i32 = arith.constant 0 : i32
    %c0_i32_0 = arith.constant 0 : i32
    %c0_i32_1 = arith.constant 0 : i32
    return %c0_i32, %c0_i32_0 : i32, i32
  }
  func.func @transform_3(%arg0: i32) -> (i32, i32) {
    %c0_i32 = arith.constant 0 : i32
    %c0_i32_0 = arith.constant 0 : i32
    return %arg0, %c0_i32 : i32, i32
  }
}

module attributes {stable_mosaic.version = 11 : i64} {
  func.func @_conv_mm_stats_kernel(%arg0: i32, %arg1: i32, %arg2: memref<32x512xbf16, #tpu.memory_space<vmem>>, %arg3: memref<512x128xbf16, #tpu.memory_space<vmem>>, %arg4: memref<1x128xf32, #tpu.memory_space<vmem>>, %arg5: memref<32x128xbf16, #tpu.memory_space<vmem>>, %arg6: memref<1x2x128xf32, #tpu.memory_space<vmem>>, %arg7: memref<32x128xf32, #tpu.memory_space<vmem>>) attributes {dimension_semantics = [#tpu.dimension_semantics<parallel>, #tpu.dimension_semantics<arbitrary>], iteration_bounds = array<i64: 1, 1>, scalar_prefetch = 0 : i64, scratch_operands = 1 : i64, tpu.core_type = #tpu.core_type<tc>, window_params = [{transform_indices = @transform_0, window_bounds = array<i64: 32, 512>}, {transform_indices = @transform_1, window_bounds = array<i64: 512, 128>}, {pipeline_mode = #tpu.pipeline_mode<synchronous>, transform_indices = @transform_2, window_bounds = array<i64: 1, 128>}, {transform_indices = @transform_3, window_bounds = array<i64: 32, 128>}, {transform_indices = @transform_4, window_bounds = array<i64: 1, 2, 128>}]} {
    %c0_i32 = arith.constant 0 : i32
    %0 = arith.cmpi eq, %arg1, %c0_i32 : i32
    %1 = arith.extui %0 : i1 to i32
    %c0_i32_0 = arith.constant 0 : i32
    %2 = arith.cmpi ne, %1, %c0_i32_0 : i32
    scf.if %2 {
      %cst_10 = arith.constant 0.000000e+00 : f32
      %12 = vector.broadcast %cst_10 : f32 to vector<32x128xf32>
      %c0_11 = arith.constant 0 : index
      %c0_12 = arith.constant 0 : index
      %13 = vector.load %arg7[%c0_11, %c0_12] : memref<32x128xf32, #tpu.memory_space<vmem>>, vector<32x128xf32>
      tpu.vector_store %arg7[%c0_11, %c0_12], %12 {strides = array<i32>} : memref<32x128xf32, #tpu.memory_space<vmem>>, vector<32x128xf32>,
    } else {
    }
    %c0 = arith.constant 0 : index
    %c0_1 = arith.constant 0 : index
    %3 = vector.load %arg7[%c0, %c0_1] : memref<32x128xf32, #tpu.memory_space<vmem>>, vector<32x128xf32>
    %c0_2 = arith.constant 0 : index
    %c0_3 = arith.constant 0 : index
    %4 = vector.load %arg2[%c0_2, %c0_3] : memref<32x512xbf16, #tpu.memory_space<vmem>>, vector<32x512xbf16>
    %c0_4 = arith.constant 0 : index
    %c0_5 = arith.constant 0 : index
    %5 = vector.load %arg3[%c0_4, %c0_5] : memref<512x128xbf16, #tpu.memory_space<vmem>>, vector<512x128xbf16>
    %cst = arith.constant dense<0.000000e+00> : vector<32x128xf32>
    %6 = tpu.matmul %4, %5, %cst {dimension_numbers = #tpu.dot_dimension_numbers<[1], [0], [0], [1], [0, 0, 1, 1], [], []>} : vector<32x512xbf16>, vector<512x128xbf16>, vector<32x128xf32> -> vector<32x128xf32>
    %7 = arith.addf %3, %6 : vector<32x128xf32>
    %c0_6 = arith.constant 0 : index
    %c0_7 = arith.constant 0 : index
    %8 = vector.load %arg7[%c0_6, %c0_7] : memref<32x128xf32, #tpu.memory_space<vmem>>, vector<32x128xf32>
    tpu.vector_store %arg7[%c0_6, %c0_7], %7 {strides = array<i32>} : memref<32x128xf32, #tpu.memory_space<vmem>>, vector<32x128xf32>,
    %c0_i32_8 = arith.constant 0 : i32
    %9 = arith.cmpi eq, %arg1, %c0_i32_8 : i32
    %10 = arith.extui %9 : i1 to i32
    %c0_i32_9 = arith.constant 0 : i32
    %11 = arith.cmpi ne, %10, %c0_i32_9 : i32
    scf.if %11 {
      %c0_10 = arith.constant 0 : index
      %c0_11 = arith.constant 0 : index
      %12 = vector.load %arg7[%c0_10, %c0_11] : memref<32x128xf32, #tpu.memory_space<vmem>>, vector<32x128xf32>
      %c0_12 = arith.constant 0 : index
      %c0_13 = arith.constant 0 : index
      %13 = vector.load %arg4[%c0_12, %c0_13] : memref<1x128xf32, #tpu.memory_space<vmem>>, vector<1x128xf32>
      %14 = vector.broadcast %13 : vector<1x128xf32> to vector<32x128xf32>
      %15 = arith.addf %12, %14 : vector<32x128xf32>
      %16 = arith.truncf %15 : vector<32x128xf32> to vector<32x128xbf16>
      %c0_14 = arith.constant 0 : index
      %c0_15 = arith.constant 0 : index
      %17 = vector.load %arg5[%c0_14, %c0_15] : memref<32x128xbf16, #tpu.memory_space<vmem>>, vector<32x128xbf16>
      tpu.vector_store %arg5[%c0_14, %c0_15], %16 {strides = array<i32>} : memref<32x128xbf16, #tpu.memory_space<vmem>>, vector<32x128xbf16>,
      %cst_16 = arith.constant dense<0.000000e+00> : vector<128xf32>
      %18 = vector.multi_reduction <add>, %15, %cst_16 [0] : vector<32x128xf32> to vector<128xf32>
      %19 = vector.shape_cast %18 : vector<128xf32> to vector<1x128xf32>
      %20 = arith.mulf %15, %15 : vector<32x128xf32>
      %cst_17 = arith.constant dense<0.000000e+00> : vector<128xf32>
      %21 = vector.multi_reduction <add>, %20, %cst_17 [0] : vector<32x128xf32> to vector<128xf32>
      %22 = vector.shape_cast %21 : vector<128xf32> to vector<1x128xf32>
      %23 = tpu.concatenate %19, %22 in 0 : vector<1x128xf32>, vector<1x128xf32> -> vector<2x128xf32>
      %24 = vector.shape_cast %23 : vector<2x128xf32> to vector<1x2x128xf32>
      %c0_18 = arith.constant 0 : index
      %c0_19 = arith.constant 0 : index
      %c0_20 = arith.constant 0 : index
      %25 = vector.load %arg6[%c0_18, %c0_19, %c0_20] : memref<1x2x128xf32, #tpu.memory_space<vmem>>, vector<1x2x128xf32>
      tpu.vector_store %arg6[%c0_18, %c0_19, %c0_20], %24 {strides = array<i32>} : memref<1x2x128xf32, #tpu.memory_space<vmem>>, vector<1x2x128xf32>,
    } else {
    }
    return
  }
  func.func @transform_0(%arg0: i32, %arg1: i32) -> (i32, i32) {
    %c0_i32 = arith.constant 0 : i32
    return %arg0, %arg1 : i32, i32
  }
  func.func @transform_1(%arg0: i32, %arg1: i32) -> (i32, i32) {
    %c0_i32 = arith.constant 0 : i32
    %c0_i32_0 = arith.constant 0 : i32
    return %arg1, %c0_i32 : i32, i32
  }
  func.func @transform_2(%arg0: i32, %arg1: i32) -> (i32, i32) {
    %c0_i32 = arith.constant 0 : i32
    %c0_i32_0 = arith.constant 0 : i32
    %c0_i32_1 = arith.constant 0 : i32
    return %c0_i32, %c0_i32_0 : i32, i32
  }
  func.func @transform_3(%arg0: i32, %arg1: i32) -> (i32, i32) {
    %c0_i32 = arith.constant 0 : i32
    %c0_i32_0 = arith.constant 0 : i32
    return %arg0, %c0_i32 : i32, i32
  }
  func.func @transform_4(%arg0: i32, %arg1: i32) -> (i32, i32, i32) {
    %c0_i32 = arith.constant 0 : i32
    %c0_i32_0 = arith.constant 0 : i32
    %c0_i32_1 = arith.constant 0 : i32
    return %arg0, %c0_i32, %c0_i32_0 : i32, i32, i32
  }
}

module attributes {stable_mosaic.version = 11 : i64} {
  func.func @_bn_lrelu_kernel(%arg0: i32, %arg1: memref<32x128xbf16, #tpu.memory_space<vmem>>, %arg2: memref<1x128xf32, #tpu.memory_space<vmem>>, %arg3: memref<1x128xf32, #tpu.memory_space<vmem>>, %arg4: memref<32x128xbf16, #tpu.memory_space<vmem>>) attributes {dimension_semantics = [#tpu.dimension_semantics<parallel>], iteration_bounds = array<i64: 1>, scalar_prefetch = 0 : i64, scratch_operands = 0 : i64, tpu.core_type = #tpu.core_type<tc>, window_params = [{transform_indices = @transform_0, window_bounds = array<i64: 32, 128>}, {pipeline_mode = #tpu.pipeline_mode<synchronous>, transform_indices = @transform_1, window_bounds = array<i64: 1, 128>}, {pipeline_mode = #tpu.pipeline_mode<synchronous>, transform_indices = @transform_2, window_bounds = array<i64: 1, 128>}, {transform_indices = @transform_3, window_bounds = array<i64: 32, 128>}]} {
    %c0 = arith.constant 0 : index
    %c0_0 = arith.constant 0 : index
    %0 = vector.load %arg1[%c0, %c0_0] : memref<32x128xbf16, #tpu.memory_space<vmem>>, vector<32x128xbf16>
    %1 = arith.extf %0 : vector<32x128xbf16> to vector<32x128xf32>
    %c0_1 = arith.constant 0 : index
    %c0_2 = arith.constant 0 : index
    %2 = vector.load %arg2[%c0_1, %c0_2] : memref<1x128xf32, #tpu.memory_space<vmem>>, vector<1x128xf32>
    %3 = vector.broadcast %2 : vector<1x128xf32> to vector<32x128xf32>
    %4 = arith.mulf %1, %3 : vector<32x128xf32>
    %c0_3 = arith.constant 0 : index
    %c0_4 = arith.constant 0 : index
    %5 = vector.load %arg3[%c0_3, %c0_4] : memref<1x128xf32, #tpu.memory_space<vmem>>, vector<1x128xf32>
    %6 = vector.broadcast %5 : vector<1x128xf32> to vector<32x128xf32>
    %7 = arith.addf %4, %6 : vector<32x128xf32>
    %cst = arith.constant 0.000000e+00 : f32
    %8 = vector.broadcast %cst : f32 to vector<32x128xf32>
    %9 = arith.cmpf ogt, %7, %8 : vector<32x128xf32>
    %cst_5 = arith.constant 0.00999999977 : f32
    %10 = vector.broadcast %cst_5 : f32 to vector<32x128xf32>
    %11 = arith.mulf %10, %7 : vector<32x128xf32>
    %12 = arith.select %9, %7, %11 : vector<32x128xi1>, vector<32x128xf32>
    %13 = arith.truncf %12 : vector<32x128xf32> to vector<32x128xbf16>
    %c0_6 = arith.constant 0 : index
    %c0_7 = arith.constant 0 : index
    %14 = vector.load %arg4[%c0_6, %c0_7] : memref<32x128xbf16, #tpu.memory_space<vmem>>, vector<32x128xbf16>
    tpu.vector_store %arg4[%c0_6, %c0_7], %13 {strides = array<i32>} : memref<32x128xbf16, #tpu.memory_space<vmem>>, vector<32x128xbf16>,
    return
  }
  func.func @transform_0(%arg0: i32) -> (i32, i32) {
    %c0_i32 = arith.constant 0 : i32
    %c0_i32_0 = arith.constant 0 : i32
    return %arg0, %c0_i32 : i32, i32
  }
  func.func @transform_1(%arg0: i32) -> (i32, i32) {
    %c0_i32 = arith.constant 0 : i32
    %c0_i32_0 = arith.constant 0 : i32
    %c0_i32_1 = arith.constant 0 : i32
    return %c0_i32, %c0_i32_0 : i32, i32
  }
  func.func @transform_2(%arg0: i32) -> (i32, i32) {
    %c0_i32 = arith.constant 0 : i32
    %c0_i32_0 = arith.constant 0 : i32
    %c0_i32_1 = arith.constant 0 : i32
    return %c0_i32, %c0_i32_0 : i32, i32
  }
  func.func @transform_3(%arg0: i32) -> (i32, i32) {
    %c0_i32 = arith.constant 0 : i32
    %c0_i32_0 = arith.constant 0 : i32
    return %arg0, %c0_i32 : i32, i32
  }
}

module attributes {stable_mosaic.version = 11 : i64} {
  func.func @_conv_mm_kernel(%arg0: i32, %arg1: i32, %arg2: memref<2x1024xbf16, #tpu.memory_space<vmem>>, %arg3: memref<1024x128xbf16, #tpu.memory_space<vmem>>, %arg4: memref<1x128xf32, #tpu.memory_space<vmem>>, %arg5: memref<2x128xf32, #tpu.memory_space<vmem>>, %arg6: memref<2x128xf32, #tpu.memory_space<vmem>>) attributes {dimension_semantics = [#tpu.dimension_semantics<parallel>, #tpu.dimension_semantics<arbitrary>], iteration_bounds = array<i64: 1, 1>, scalar_prefetch = 0 : i64, scratch_operands = 1 : i64, tpu.core_type = #tpu.core_type<tc>, window_params = [{transform_indices = @transform_0, window_bounds = array<i64: 2, 1024>}, {transform_indices = @transform_1, window_bounds = array<i64: 1024, 128>}, {pipeline_mode = #tpu.pipeline_mode<synchronous>, transform_indices = @transform_2, window_bounds = array<i64: 1, 128>}, {transform_indices = @transform_3, window_bounds = array<i64: 2, 128>}]} {
    %c0_i32 = arith.constant 0 : i32
    %0 = arith.cmpi eq, %arg1, %c0_i32 : i32
    %1 = arith.extui %0 : i1 to i32
    %c0_i32_0 = arith.constant 0 : i32
    %2 = arith.cmpi ne, %1, %c0_i32_0 : i32
    scf.if %2 {
      %cst_10 = arith.constant 0.000000e+00 : f32
      %12 = vector.broadcast %cst_10 : f32 to vector<2x128xf32>
      %c0_11 = arith.constant 0 : index
      %c0_12 = arith.constant 0 : index
      %13 = vector.load %arg6[%c0_11, %c0_12] : memref<2x128xf32, #tpu.memory_space<vmem>>, vector<2x128xf32>
      tpu.vector_store %arg6[%c0_11, %c0_12], %12 {strides = array<i32>} : memref<2x128xf32, #tpu.memory_space<vmem>>, vector<2x128xf32>,
    } else {
    }
    %c0 = arith.constant 0 : index
    %c0_1 = arith.constant 0 : index
    %3 = vector.load %arg6[%c0, %c0_1] : memref<2x128xf32, #tpu.memory_space<vmem>>, vector<2x128xf32>
    %c0_2 = arith.constant 0 : index
    %c0_3 = arith.constant 0 : index
    %4 = vector.load %arg2[%c0_2, %c0_3] : memref<2x1024xbf16, #tpu.memory_space<vmem>>, vector<2x1024xbf16>
    %c0_4 = arith.constant 0 : index
    %c0_5 = arith.constant 0 : index
    %5 = vector.load %arg3[%c0_4, %c0_5] : memref<1024x128xbf16, #tpu.memory_space<vmem>>, vector<1024x128xbf16>
    %cst = arith.constant dense<0.000000e+00> : vector<2x128xf32>
    %6 = tpu.matmul %4, %5, %cst {dimension_numbers = #tpu.dot_dimension_numbers<[1], [0], [0], [1], [0, 0, 1, 1], [], []>} : vector<2x1024xbf16>, vector<1024x128xbf16>, vector<2x128xf32> -> vector<2x128xf32>
    %7 = arith.addf %3, %6 : vector<2x128xf32>
    %c0_6 = arith.constant 0 : index
    %c0_7 = arith.constant 0 : index
    %8 = vector.load %arg6[%c0_6, %c0_7] : memref<2x128xf32, #tpu.memory_space<vmem>>, vector<2x128xf32>
    tpu.vector_store %arg6[%c0_6, %c0_7], %7 {strides = array<i32>} : memref<2x128xf32, #tpu.memory_space<vmem>>, vector<2x128xf32>,
    %c0_i32_8 = arith.constant 0 : i32
    %9 = arith.cmpi eq, %arg1, %c0_i32_8 : i32
    %10 = arith.extui %9 : i1 to i32
    %c0_i32_9 = arith.constant 0 : i32
    %11 = arith.cmpi ne, %10, %c0_i32_9 : i32
    scf.if %11 {
      %c0_10 = arith.constant 0 : index
      %c0_11 = arith.constant 0 : index
      %12 = vector.load %arg6[%c0_10, %c0_11] : memref<2x128xf32, #tpu.memory_space<vmem>>, vector<2x128xf32>
      %c0_12 = arith.constant 0 : index
      %c0_13 = arith.constant 0 : index
      %13 = vector.load %arg4[%c0_12, %c0_13] : memref<1x128xf32, #tpu.memory_space<vmem>>, vector<1x128xf32>
      %14 = vector.broadcast %13 : vector<1x128xf32> to vector<2x128xf32>
      %15 = arith.addf %12, %14 : vector<2x128xf32>
      %c0_14 = arith.constant 0 : index
      %c0_15 = arith.constant 0 : index
      %16 = vector.load %arg5[%c0_14, %c0_15] : memref<2x128xf32, #tpu.memory_space<vmem>>, vector<2x128xf32>
      tpu.vector_store %arg5[%c0_14, %c0_15], %15 {strides = array<i32>} : memref<2x128xf32, #tpu.memory_space<vmem>>, vector<2x128xf32>,
    } else {
    }
    return
  }
  func.func @transform_0(%arg0: i32, %arg1: i32) -> (i32, i32) {
    %c0_i32 = arith.constant 0 : i32
    return %arg0, %arg1 : i32, i32
  }
  func.func @transform_1(%arg0: i32, %arg1: i32) -> (i32, i32) {
    %c0_i32 = arith.constant 0 : i32
    %c0_i32_0 = arith.constant 0 : i32
    return %arg1, %c0_i32 : i32, i32
  }
  func.func @transform_2(%arg0: i32, %arg1: i32) -> (i32, i32) {
    %c0_i32 = arith.constant 0 : i32
    %c0_i32_0 = arith.constant 0 : i32
    %c0_i32_1 = arith.constant 0 : i32
    return %c0_i32, %c0_i32_0 : i32, i32
  }
  func.func @transform_3(%arg0: i32, %arg1: i32) -> (i32, i32) {
    %c0_i32 = arith.constant 0 : i32
    %c0_i32_0 = arith.constant 0 : i32
    return %arg0, %c0_i32 : i32, i32
  }
}

</mosaic_0001>

<bundles_post_ra>
// kernel: encoder_mnist_forward.9
= control target key start
LH: loop header
LB: loop body
LE: loop exit
PB: predicated region body
PF: predicated region fallthrough
CT: control target
= control target key end

     0   :  { %vm1546_vm0 = vcmask 1040384   ;;  %s2598_s1 = inlined_call_operand.vmem [shape: bf16[128,128], index: 1, kind: input, shape index: {}]   ;;  %s2599_s0 = inlined_call_operand.vmem [shape: bf16[512,128], index: 0, kind: input, shape index: {}]   ;;  %s2600_s2 = inlined_call_operand.vmem [shape: f32[1,128], index: 2, kind: input, shape index: {}]   ;;  %s2601_s3 = inlined_call_operand.vmem [shape: bf16[512,128], index: 3, kind: output, shape index: {0}]   ;;  %s2602_s4 = inlined_call_operand.vmem [shape: f32[1,2,128], index: 4, kind: output, shape index: {1}]  }
   0x1   :  { %v2053_v0 = vld [vmem:[%s2598_s1] sm:$0xff]   ;;  %v2054_v1 = vld [vmem:[%s2598_s1 + $0x8] sm:$0xff]   ;;  %v2055_v2 = vld [vmem:[%s2598_s1 + $0x10] sm:$0xff]  }
   0x2   :  { %1957 = vmatprep.subr.bf16.mxu0 %v2053_v0  ;;  %2037 = vmatprep.subr.bf16.mxu1 %v2053_v0  ;;  %v2056_v3 = vld [vmem:[%s2598_s1 + $0x18] sm:$0xff]   ;;  %v2061_v4 = vld [vmem:[%s2599_s0] sm:$0xff]   ;;  %v2058_v6 = vld [vmem:[%s2598_s1 + $0x28] sm:$0xff]  }
   0x3   :  { %1958 = vmatpush3.bf16.msra.mxu0 %v2053_v0  ;;  %2045 = vmatpush3.bf16.msra.mxu1 %v2053_v0  ;;  %v2057_v5 = vld [vmem:[%s2598_s1 + $0x20] sm:$0xff]   ;;  %v2059_v7 = vld [vmem:[%s2598_s1 + $0x30] sm:$0xff]   ;;  %v2060_v8 = vld [vmem:[%s2598_s1 + $0x38] sm:$0xff]  }
   0x4   :  { %1959 = vmatprep.subr.bf16.mxu0 %v2054_v1  ;;  %2038 = vmatprep.subr.bf16.mxu1 %v2054_v1  ;;  %v2077_v9 = vld [vmem:[%s2599_s0 + $0x80] sm:$0xff]   ;;  %v2062_v10 = vld [vmem:[%s2599_s0 + $0x8] sm:$0xff]   ;;  %v2063_v11 = vld [vmem:[%s2599_s0 + $0x10] sm:$0xff]  }
   0x5   :  { %1973 = vmatprep.mubr.bf16.mxu0 %v2061_v4  ;;  %2005 = vmatprep.mubr.bf16.mxu1 %v2077_v9  ;;  %v2078_v12 = vld [vmem:[%s2599_s0 + $0x88] sm:$0xff]   ;;  %v2079_v13 = vld [vmem:[%s2599_s0 + $0x90] sm:$0xff]   ;;  %v2064_v14 = vld [vmem:[%s2599_s0 + $0x18] sm:$0xff]  }
   0x6   :  { %v2065_v15 = vld [vmem:[%s2599_s0 + $0x20] sm:$0xff]   ;;  %v2080_v16 = vld [vmem:[%s2599_s0 + $0x98] sm:$0xff]   ;;  %v2066_v18 = vld [vmem:[%s2599_s0 + $0x28] sm:$0xff]  }
   0x7   :  { %1960 = vmatpush3.bf16.msra.mxu0 %v2054_v1  ;;  %2046 = vmatpush3.bf16.msra.mxu1 %v2054_v1  ;;  %v2081_v17 = vld [vmem:[%s2599_s0 + $0xa0] sm:$0xff]   ;;  %v2082_v19 = vld [vmem:[%s2599_s0 + $0xa8] sm:$0xff]   ;;  %v2067_v20 = vld [vmem:[%s2599_s0 + $0x30] sm:$0xff]  }
   0x8   :  { %1961 = vmatprep.subr.bf16.mxu0 %v2055_v2  ;;  %2039 = vmatprep.subr.bf16.mxu1 %v2055_v2  ;;  %v2083_v21 = vld [vmem:[%s2599_s0 + $0xb0] sm:$0xff]   ;;  %v2068_v22 = vld [vmem:[%s2599_s0 + $0x38] sm:$0xff]   ;;  %v2069_v24 = vld [vmem:[%s2599_s0 + $0x40] sm:$0xff]  }
   0x9   :  { %v2084_v23 = vld [vmem:[%s2599_s0 + $0xb8] sm:$0xff]   ;;  %v2085_v25 = vld [vmem:[%s2599_s0 + $0xc0] sm:$0xff]   ;;  %v2070_v26 = vld [vmem:[%s2599_s0 + $0x48] sm:$0xff]  }
   0xa   :  { %v2086_v27 = vld [vmem:[%s2599_s0 + $0xc8] sm:$0xff]   ;;  %v2071_v28 = vld [vmem:[%s2599_s0 + $0x50] sm:$0xff]   ;;  %v2072_v30 = vld [vmem:[%s2599_s0 + $0x58] sm:$0xff]  }
   0xb   :  { %1962 = vmatpush3.bf16.msra.mxu0 %v2055_v2  ;;  %2047 = vmatpush3.bf16.msra.mxu1 %v2055_v2  ;;  %v2087_v29 = vld [vmem:[%s2599_s0 + $0xd0] sm:$0xff]   ;;  %v2088_v31 = vld [vmem:[%s2599_s0 + $0xd8] sm:$0xff]   ;;  %v2073_v32 = vld [vmem:[%s2599_s0 + $0x60] sm:$0xff]  }
   0xc   :  { %1963 = vmatprep.subr.bf16.mxu0 %v2056_v3  ;;  %2040 = vmatprep.subr.bf16.mxu1 %v2056_v3  ;;  %v2089_v33 = vld [vmem:[%s2599_s0 + $0xe0] sm:$0xff]   ;;  %v2074_v34 = vld [vmem:[%s2599_s0 + $0x68] sm:$0xff]   ;;  %v2075_v36 = vld [vmem:[%s2599_s0 + $0x70] sm:$0xff]  }
   0xd   :  { %v2090_v35 = vld [vmem:[%s2599_s0 + $0xe8] sm:$0xff]   ;;  %v2091_v37 = vld [vmem:[%s2599_s0 + $0xf0] sm:$0xff]   ;;  %v2076_v38 = vld [vmem:[%s2599_s0 + $0x78] sm:$0xff]  }
   0xe   :  { %v2092_v39 = vld [vmem:[%s2599_s0 + $0xf8] sm:$0xff]   ;;  %v2241_v40 = vld [vmem:[%s2600_s2] ss:$0 sm:$0xff] }
   0xf   :  { %1964 = vmatpush3.bf16.msra.mxu0 %v2056_v3  ;;  %2048 = vmatpush3.bf16.msra.mxu1 %v2056_v3 }
  0x10   :  { %1965 = vmatprep.subr.bf16.mxu0 %v2057_v5  ;;  %2041 = vmatprep.subr.bf16.mxu1 %v2057_v5 }
  0x13   :  { %1966 = vmatpush3.bf16.msra.mxu0 %v2057_v5  ;;  %2049 = vmatpush3.bf16.msra.mxu1 %v2057_v5 }
  0x14   :  { %1967 = vmatprep.subr.bf16.mxu0 %v2058_v6  ;;  %2042 = vmatprep.subr.bf16.mxu1 %v2058_v6 }
  0x17   :  { %1968 = vmatpush3.bf16.msra.mxu0 %v2058_v6  ;;  %2050 = vmatpush3.bf16.msra.mxu1 %v2058_v6 }
  0x18   :  { %1969 = vmatprep.subr.bf16.mxu0 %v2059_v7  ;;  %2043 = vmatprep.subr.bf16.mxu1 %v2059_v7 }
  0x1b   :  { %1970 = vmatpush3.bf16.msra.mxu0 %v2059_v7  ;;  %2051 = vmatpush3.bf16.msra.mxu1 %v2059_v7 }
  0x1c   :  { %1971 = vmatprep.subr.bf16.mxu0 %v2060_v8  ;;  %2044 = vmatprep.subr.bf16.mxu1 %v2060_v8 }
  0x1f   :  { %1972 = vmatpush3.bf16.msra.mxu0 %v2060_v8  ;;  %2052 = vmatpush3.bf16.msra.mxu1 %v2060_v8 }
  0x22   :  { %1974 = vmatmul.mubr.bf16.vlgmr.msra.gmra.mrb[0].mxu0 %v2062_v10  ;;  %2006 = vmatmul.mubr.bf16.vlgmr.msra.gmra.mrb[0].mxu1 %v2078_v12 }
  0x23   :  { %1977 = vmatprep.mubr.bf16.mxu0 %v2063_v11  ;;  %2009 = vmatprep.mubr.bf16.mxu1 %v2079_v13 }
  0x2a   :  { %1978 = vmatmul.mubr.bf16.gmra.mrb[4].mxu0 %v2064_v14  ;;  %2010 = vmatmul.mubr.bf16.gmra.mrb[4].mxu1 %v2080_v16 }
  0x2b   :  { %1981 = vmatprep.mubr.bf16.mxu0 %v2065_v15  ;;  %2013 = vmatprep.mubr.bf16.mxu1 %v2081_v17 }
  0x32   :  { %1982 = vmatmul.mubr.bf16.gmra.mrb[8].mxu0 %v2066_v18  ;;  %2014 = vmatmul.mubr.bf16.gmra.mrb[8].mxu1 %v2082_v19 }
  0x33   :  { %1985 = vmatprep.mubr.bf16.mxu0 %v2067_v20  ;;  %2017 = vmatprep.mubr.bf16.mxu1 %v2083_v21 }
  0x3a   :  { %1986 = vmatmul.mubr.bf16.gmra.mrb[12].mxu0 %v2068_v22  ;;  %2018 = vmatmul.mubr.bf16.gmra.mrb[12].mxu1 %v2084_v23 }
  0x3b   :  { %1989 = vmatprep.mubr.bf16.mxu0 %v2069_v24  ;;  %2021 = vmatprep.mubr.bf16.mxu1 %v2085_v25 }
  0x42   :  { %1990 = vmatmul.mubr.bf16.gmra.mrb[16].mxu0 %v2070_v26  ;;  %2022 = vmatmul.mubr.bf16.gmra.mrb[16].mxu1 %v2086_v27 }
  0x43   :  { %1993 = vmatprep.mubr.bf16.mxu0 %v2071_v28  ;;  %2025 = vmatprep.mubr.bf16.mxu1 %v2087_v29 }
  0x4a   :  { %1994 = vmatmul.mubr.bf16.gmra.mrb[20].mxu0 %v2072_v30  ;;  %2026 = vmatmul.mubr.bf16.gmra.mrb[20].mxu1 %v2088_v31 }
  0x4b   :  { %1997 = vmatprep.mubr.bf16.mxu0 %v2073_v32  ;;  %2029 = vmatprep.mubr.bf16.mxu1 %v2089_v33 }
  0x52   :  { %1998 = vmatmul.mubr.bf16.gmra.mrb[24].mxu0 %v2074_v34  ;;  %2030 = vmatmul.mubr.bf16.gmra.mrb[24].mxu1 %v2090_v35 }
  0x53   :  { %2001 = vmatprep.mubr.bf16.mxu0 %v2075_v36  ;;  %2033 = vmatprep.mubr.bf16.mxu1 %v2091_v37 }
  0x5a   :  { %2002 = vmatmul.mubr.bf16.gmra.mrb[28].mxu0 %v2076_v38  ;;  %2034 = vmatmul.mubr.bf16.gmra.mrb[28].mxu1 %v2092_v39 }
  0xf5   :  { %v1975_v41 = vpop.f32.mrb[0].mxu0  ;;  %v2007_v42 = vpop.f32.mrb[0].mxu1 }
  0xf6   :  { %v503_v43 = vpop.f32.mrb[1].mxu0  ;;  %v2244_v44 = vadd.f32 %v2007_v42, %v2241_v40  ;;  %v631_v45 = vpop.f32.mrb[1].mxu1  ;;  %v962_v50 = vadd.f32 %v1975_v41, %v2241_v40 }
  0xf7   :  { %v960_v46 = vadd.f32 %v2241_v40, %v503_v43  ;;  %v1976_v47 = vpop.f32.mrb[2].mxu0  ;;  %v2248_v48 = vadd.f32 %v2241_v40, %v631_v45  ;;  %v2008_v49 = vpop.f32.mrb[2].mxu1 }
  0xf8   :  { %v963_v51 = vadd.f32 %v1976_v47, %v2241_v40  ;;  %v506_v52 = vpop.f32.mrb[3].mxu0  ;;  %v2253_v53 = vadd.f32 %v2008_v49, %v2241_v40  ;;  %v634_v54 = vpop.f32.mrb[3].mxu1  ;;  %v1415_v0 = vmul.f32 %v962_v50, %v962_v50 }
  0xf9   :  { %v961_v55 = vadd.f32 %v2241_v40, %v506_v52  ;;  %v2257_v56 = vadd.f32 %v2241_v40, %v634_v54  ;;  %v1413_v57 = vmul.f32 %v960_v46, %v960_v46 }
  0xfa   :  { %v1734_v58 = vpack.c.bf16 %v963_v51, %v962_v50  ;;  %v1814_v59 = vpack.c.bf16 %v2253_v53, %v2244_v44  ;;  %v1416_v8 = vmul.f32 %v963_v51, %v963_v51 }
  0xfb   :  { %v1729_v60 = vpack.c.bf16 %v961_v55, %v960_v46  ;;  %v1344_v61 = vadd.f32 %v961_v55, %v960_v46  ;;  %v1414_v62 = vmul.f32 %v961_v55, %v961_v55  ;;  %v1809_v63 = vpack.c.bf16 %v2257_v56, %v2248_v48 }
  0xfc   :  { %1886 = vst [vmem:[%s2601_s3 + $0x8] sm:$0xff] %v1734_v58   ;;  %1902 = vst [vmem:[%s2601_s3 + $0x88] sm:$0xff] %v1814_v59  }
  0xfd   :  { %1730 = vst [vmem:[%s2601_s3] sm:$0xff] %v1729_v60   ;;  %v1345_v1 = vadd.f32 %v1344_v61, %v962_v50  ;;  %v1477_v2 = vadd.f32 %v1414_v62, %v1413_v57  ;;  %v1979_v3 = vpop.f32.mrb[4].mxu0  ;;  %1901 = vst [vmem:[%s2601_s3 + $0x80] sm:$0xff] %v1809_v63   ;;  %v2011_v4 = vpop.f32.mrb[4].mxu1 }
  0xfe   :  { %v519_v5 = vpop.f32.mrb[5].mxu0  ;;  %v2276_v6 = vadd.f32 %v2011_v4, %v2241_v40  ;;  %v647_v7 = vpop.f32.mrb[5].mxu1  ;;  %v966_v14 = vadd.f32 %v1979_v3, %v2241_v40 }
  0xff   :  { %v1478_v9 = vadd.f32 %v1477_v2, %v1415_v0  ;;  %v964_v10 = vadd.f32 %v2241_v40, %v519_v5  ;;  %v1346_v11 = vadd.f32 %v1345_v1, %v963_v51  ;;  %v1980_v12 = vpop.f32.mrb[6].mxu0  ;;  %v2012_v13 = vpop.f32.mrb[6].mxu1  ;;  %v2286_v24 = vadd.f32 %v2241_v40, %v647_v7 }
 0x100   :  { %v967_v15 = vadd.f32 %v1980_v12, %v2241_v40  ;;  %v522_v16 = vpop.f32.mrb[7].mxu0  ;;  %v2282_v17 = vadd.f32 %v2012_v13, %v2241_v40  ;;  %v650_v18 = vpop.f32.mrb[7].mxu1  ;;  %v1419_v31 = vmul.f32 %v966_v14, %v966_v14 }
 0x101   :  { %v1347_v19 = vadd.f32 %v1346_v11, %v964_v10  ;;  %v1417_v20 = vmul.f32 %v964_v10, %v964_v10  ;;  %v1479_v21 = vadd.f32 %v1478_v9, %v1416_v8  ;;  %v965_v22 = vadd.f32 %v2241_v40, %v522_v16 }
 0x102   :  { %v1744_v23 = vpack.c.bf16 %v967_v15, %v966_v14  ;;  %v1824_v25 = vpack.c.bf16 %v2282_v17, %v2276_v6  ;;  %v2297_v30 = vadd.f32 %v2241_v40, %v650_v18  ;;  %v1420_v41 = vmul.f32 %v967_v15, %v967_v15 }
 0x103   :  { %v1480_v26 = vadd.f32 %v1479_v21, %v1417_v20  ;;  %v1739_v27 = vpack.c.bf16 %v965_v22, %v964_v10  ;;  %v1348_v28 = vadd.f32 %v1347_v19, %v965_v22  ;;  %v1418_v29 = vmul.f32 %v965_v22, %v965_v22 }
 0x104   :  { %1888 = vst [vmem:[%s2601_s3 + $0x18] sm:$0xff] %v1744_v23   ;;  %1904 = vst [vmem:[%s2601_s3 + $0x98] sm:$0xff] %v1824_v25   ;;  %v1819_v37 = vpack.c.bf16 %v2297_v30, %v2286_v24 }
 0x105   :  { %1887 = vst [vmem:[%s2601_s3 + $0x10] sm:$0xff] %v1739_v27   ;;  %v1349_v32 = vadd.f32 %v1348_v28, %v966_v14  ;;  %v1481_v33 = vadd.f32 %v1480_v26, %v1418_v29  ;;  %v1983_v34 = vpop.f32.mrb[8].mxu0  ;;  %v2015_v35 = vpop.f32.mrb[8].mxu1 }
 0x106   :  { %v535_v36 = vpop.f32.mrb[9].mxu0  ;;  %v2305_v38 = vadd.f32 %v2015_v35, %v2241_v40  ;;  %v663_v39 = vpop.f32.mrb[9].mxu1  ;;  %v970_v49 = vadd.f32 %v1983_v34, %v2241_v40  ;;  %1903 = vst [vmem:[%s2601_s3 + $0x90] sm:$0xff] %v1819_v37  }
 0x107   :  { %v1482_v42 = vadd.f32 %v1481_v33, %v1419_v31  ;;  %v968_v43 = vadd.f32 %v2241_v40, %v535_v36  ;;  %v1350_v45 = vadd.f32 %v1349_v32, %v967_v15  ;;  %v1984_v46 = vpop.f32.mrb[10].mxu0  ;;  %v2016_v47 = vpop.f32.mrb[10].mxu1  ;;  %v2318_v61 = vadd.f32 %v2241_v40, %v663_v39 }
 0x108   :  { %v971_v50 = vadd.f32 %v1984_v46, %v2241_v40  ;;  %v538_v51 = vpop.f32.mrb[11].mxu0  ;;  %v2314_v52 = vadd.f32 %v2016_v47, %v2241_v40  ;;  %v666_v54 = vpop.f32.mrb[11].mxu1  ;;  %v1423_v4 = vmul.f32 %v970_v49, %v970_v49 }
 0x109   :  { %v1351_v55 = vadd.f32 %v1350_v45, %v968_v43  ;;  %v1421_v57 = vmul.f32 %v968_v43, %v968_v43  ;;  %v1483_v58 = vadd.f32 %v1482_v42, %v1420_v41  ;;  %v969_v59 = vadd.f32 %v2241_v40, %v538_v51 }
 0x10a   :  { %v1754_v60 = vpack.c.bf16 %v971_v50, %v970_v49  ;;  %v1834_v62 = vpack.c.bf16 %v2314_v52, %v2305_v38  ;;  %v2329_v3 = vadd.f32 %v2241_v40, %v666_v54  ;;  %v1424_v14 = vmul.f32 %v971_v50, %v971_v50 }
 0x10b   :  { %v1484_v63 = vadd.f32 %v1483_v58, %v1421_v57  ;;  %v1749_v0 = vpack.c.bf16 %v969_v59, %v968_v43  ;;  %v1352_v1 = vadd.f32 %v1351_v55, %v969_v59  ;;  %v1422_v2 = vmul.f32 %v969_v59, %v969_v59 }
 0x10c   :  { %1890 = vst [vmem:[%s2601_s3 + $0x28] sm:$0xff] %v1754_v60   ;;  %1906 = vst [vmem:[%s2601_s3 + $0xa8] sm:$0xff] %v1834_v62   ;;  %v1829_v11 = vpack.c.bf16 %v2329_v3, %v2318_v61 }
 0x10d   :  { %1889 = vst [vmem:[%s2601_s3 + $0x20] sm:$0xff] %v1749_v0   ;;  %v1353_v5 = vadd.f32 %v1352_v1, %v970_v49  ;;  %v1485_v7 = vadd.f32 %v1484_v63, %v1422_v2  ;;  %v1987_v8 = vpop.f32.mrb[12].mxu0  ;;  %v2019_v9 = vpop.f32.mrb[12].mxu1 }
 0x10e   :  { %v551_v10 = vpop.f32.mrb[13].mxu0  ;;  %v2337_v12 = vadd.f32 %v2019_v9, %v2241_v40  ;;  %v679_v13 = vpop.f32.mrb[13].mxu1  ;;  %v974_v21 = vadd.f32 %v1987_v8, %v2241_v40  ;;  %1905 = vst [vmem:[%s2601_s3 + $0xa0] sm:$0xff] %v1829_v11  }
 0x10f   :  { %v1486_v15 = vadd.f32 %v1485_v7, %v1423_v4  ;;  %v972_v16 = vadd.f32 %v2241_v40, %v551_v10  ;;  %v1354_v18 = vadd.f32 %v1353_v5, %v971_v50  ;;  %v1988_v19 = vpop.f32.mrb[14].mxu0  ;;  %v2020_v20 = vpop.f32.mrb[14].mxu1  ;;  %v2350_v33 = vadd.f32 %v2241_v40, %v679_v13 }
 0x110   :  { %v975_v22 = vadd.f32 %v1988_v19, %v2241_v40  ;;  %v554_v23 = vpop.f32.mrb[15].mxu0  ;;  %v2346_v25 = vadd.f32 %v2020_v20, %v2241_v40  ;;  %v682_v26 = vpop.f32.mrb[15].mxu1  ;;  %v1427_v42 = vmul.f32 %v974_v21, %v974_v21 }
 0x111   :  { %v1355_v27 = vadd.f32 %v1354_v18, %v972_v16  ;;  %v1425_v28 = vmul.f32 %v972_v16, %v972_v16  ;;  %v1487_v29 = vadd.f32 %v1486_v15, %v1424_v14  ;;  %v973_v31 = vadd.f32 %v2241_v40, %v554_v23 }
 0x112   :  { %v1764_v32 = vpack.c.bf16 %v975_v22, %v974_v21  ;;  %v1844_v34 = vpack.c.bf16 %v2346_v25, %v2337_v12  ;;  %v2361_v41 = vadd.f32 %v2241_v40, %v682_v26  ;;  %v1428_v55 = vmul.f32 %v975_v22, %v975_v22 }
 0x113   :  { %v1488_v35 = vadd.f32 %v1487_v29, %v1425_v28  ;;  %v1759_v36 = vpack.c.bf16 %v973_v31, %v972_v16  ;;  %v1356_v37 = vadd.f32 %v1355_v27, %v973_v31  ;;  %v1426_v39 = vmul.f32 %v973_v31, %v973_v31 }
 0x114   :  { %1892 = vst [vmem:[%s2601_s3 + $0x38] sm:$0xff] %v1764_v32   ;;  %1908 = vst [vmem:[%s2601_s3 + $0xb8] sm:$0xff] %v1844_v34   ;;  %v1839_v50 = vpack.c.bf16 %v2361_v41, %v2350_v33 }
 0x115   :  { %1891 = vst [vmem:[%s2601_s3 + $0x30] sm:$0xff] %v1759_v36   ;;  %v1357_v43 = vadd.f32 %v1356_v37, %v974_v21  ;;  %v1489_v45 = vadd.f32 %v1488_v35, %v1426_v39  ;;  %v1991_v46 = vpop.f32.mrb[16].mxu0  ;;  %v2023_v47 = vpop.f32.mrb[16].mxu1 }
 0x116   :  { %v567_v49 = vpop.f32.mrb[17].mxu0  ;;  %v2369_v51 = vadd.f32 %v2023_v47, %v2241_v40  ;;  %v695_v54 = vpop.f32.mrb[17].mxu1  ;;  %v978_v63 = vadd.f32 %v1991_v46, %v2241_v40  ;;  %1907 = vst [vmem:[%s2601_s3 + $0xb0] sm:$0xff] %v1839_v50  }
 0x117   :  { %v1490_v57 = vadd.f32 %v1489_v45, %v1427_v42  ;;  %v976_v58 = vadd.f32 %v2241_v40, %v567_v49  ;;  %v1358_v59 = vadd.f32 %v1357_v43, %v975_v22  ;;  %v1992_v60 = vpop.f32.mrb[18].mxu0  ;;  %v2024_v62 = vpop.f32.mrb[18].mxu1  ;;  %v2382_v11 = vadd.f32 %v2241_v40, %v695_v54 }
 0x118   :  { %v979_v0 = vadd.f32 %v1992_v60, %v2241_v40  ;;  %v570_v1 = vpop.f32.mrb[19].mxu0  ;;  %v2378_v2 = vadd.f32 %v2024_v62, %v2241_v40  ;;  %v698_v4 = vpop.f32.mrb[19].mxu1  ;;  %v1431_v20 = vmul.f32 %v978_v63, %v978_v63 }
 0x119   :  { %v1359_v5 = vadd.f32 %v1358_v59, %v976_v58  ;;  %v1429_v7 = vmul.f32 %v976_v58, %v976_v58  ;;  %v1491_v8 = vadd.f32 %v1490_v57, %v1428_v55  ;;  %v977_v9 = vadd.f32 %v2241_v40, %v570_v1 }
 0x11a   :  { %v1774_v10 = vpack.c.bf16 %v979_v0, %v978_v63  ;;  %v1854_v13 = vpack.c.bf16 %v2378_v2, %v2369_v51  ;;  %v2393_v19 = vadd.f32 %v2241_v40, %v698_v4  ;;  %v1432_v32 = vmul.f32 %v979_v0, %v979_v0 }
 0x11b   :  { %v1492_v14 = vadd.f32 %v1491_v8, %v1429_v7  ;;  %v1769_v15 = vpack.c.bf16 %v977_v9, %v976_v58  ;;  %v1360_v16 = vadd.f32 %v1359_v5, %v977_v9  ;;  %v1430_v18 = vmul.f32 %v977_v9, %v977_v9 }
 0x11c   :  { %1894 = vst [vmem:[%s2601_s3 + $0x48] sm:$0xff] %v1774_v10   ;;  %1910 = vst [vmem:[%s2601_s3 + $0xc8] sm:$0xff] %v1854_v13   ;;  %v1849_v28 = vpack.c.bf16 %v2393_v19, %v2382_v11 }
 0x11d   :  { %1893 = vst [vmem:[%s2601_s3 + $0x40] sm:$0xff] %v1769_v15   ;;  %v1361_v21 = vadd.f32 %v1360_v16, %v978_v63  ;;  %v1493_v22 = vadd.f32 %v1492_v14, %v1430_v18  ;;  %v1995_v23 = vpop.f32.mrb[20].mxu0  ;;  %v2027_v26 = vpop.f32.mrb[20].mxu1 }
 0x11e   :  { %v583_v27 = vpop.f32.mrb[21].mxu0  ;;  %v2401_v29 = vadd.f32 %v2027_v26, %v2241_v40  ;;  %v711_v31 = vpop.f32.mrb[21].mxu1  ;;  %v982_v42 = vadd.f32 %v1995_v23, %v2241_v40  ;;  %1909 = vst [vmem:[%s2601_s3 + $0xc0] sm:$0xff] %v1849_v28  }
 0x11f   :  { %v1494_v34 = vadd.f32 %v1493_v22, %v1431_v20  ;;  %v980_v35 = vadd.f32 %v2241_v40, %v583_v27  ;;  %v1362_v36 = vadd.f32 %v1361_v21, %v979_v0  ;;  %v1996_v37 = vpop.f32.mrb[22].mxu0  ;;  %v2028_v39 = vpop.f32.mrb[22].mxu1  ;;  %v2414_v58 = vadd.f32 %v2241_v40, %v711_v31 }
 0x120   :  { %v983_v43 = vadd.f32 %v1996_v37, %v2241_v40  ;;  %v586_v45 = vpop.f32.mrb[23].mxu0  ;;  %v2410_v46 = vadd.f32 %v2028_v39, %v2241_v40  ;;  %v714_v47 = vpop.f32.mrb[23].mxu1  ;;  %v1435_v4 = vmul.f32 %v982_v42, %v982_v42 }
 0x121   :  { %v1363_v49 = vadd.f32 %v1362_v36, %v980_v35  ;;  %v1433_v50 = vmul.f32 %v980_v35, %v980_v35  ;;  %v1495_v54 = vadd.f32 %v1494_v34, %v1432_v32  ;;  %v981_v55 = vadd.f32 %v2241_v40, %v586_v45 }
 0x122   :  { %v1784_v57 = vpack.c.bf16 %v983_v43, %v982_v42  ;;  %v1864_v59 = vpack.c.bf16 %v2410_v46, %v2401_v29  ;;  %v2425_v1 = vadd.f32 %v2241_v40, %v714_v47  ;;  %v1436_v16 = vmul.f32 %v983_v43, %v983_v43 }
 0x123   :  { %v1496_v60 = vadd.f32 %v1495_v54, %v1433_v50  ;;  %v1779_v62 = vpack.c.bf16 %v981_v55, %v980_v35  ;;  %v1364_v63 = vadd.f32 %v1363_v49, %v981_v55  ;;  %v1434_v0 = vmul.f32 %v981_v55, %v981_v55 }
 0x124   :  { %1896 = vst [vmem:[%s2601_s3 + $0x58] sm:$0xff] %v1784_v57   ;;  %1912 = vst [vmem:[%s2601_s3 + $0xd8] sm:$0xff] %v1864_v59   ;;  %v1859_v13 = vpack.c.bf16 %v2425_v1, %v2414_v58 }
 0x125   :  { %1895 = vst [vmem:[%s2601_s3 + $0x50] sm:$0xff] %v1779_v62   ;;  %v1365_v5 = vadd.f32 %v1364_v63, %v982_v42  ;;  %v1497_v7 = vadd.f32 %v1496_v60, %v1434_v0  ;;  %v1999_v8 = vpop.f32.mrb[24].mxu0  ;;  %v2031_v9 = vpop.f32.mrb[24].mxu1 }
 0x126   :  { %v599_v10 = vpop.f32.mrb[25].mxu0  ;;  %v2433_v14 = vadd.f32 %v2031_v9, %v2241_v40  ;;  %v727_v15 = vpop.f32.mrb[25].mxu1  ;;  %v986_v26 = vadd.f32 %v1999_v8, %v2241_v40  ;;  %1911 = vst [vmem:[%s2601_s3 + $0xd0] sm:$0xff] %v1859_v13  }
 0x127   :  { %v1498_v18 = vadd.f32 %v1497_v7, %v1435_v4  ;;  %v984_v20 = vadd.f32 %v2241_v40, %v599_v10  ;;  %v1366_v21 = vadd.f32 %v1365_v5, %v983_v43  ;;  %v2000_v22 = vpop.f32.mrb[26].mxu0  ;;  %v2032_v23 = vpop.f32.mrb[26].mxu1  ;;  %v2446_v42 = vadd.f32 %v2241_v40, %v727_v15 }
 0x128   :  { %v987_v27 = vadd.f32 %v2000_v22, %v2241_v40  ;;  %v602_v28 = vpop.f32.mrb[27].mxu0  ;;  %v2442_v31 = vadd.f32 %v2032_v23, %v2241_v40  ;;  %v730_v32 = vpop.f32.mrb[27].mxu1  ;;  %v1439_v55 = vmul.f32 %v986_v26, %v986_v26 }
 0x129   :  { %v1367_v34 = vadd.f32 %v1366_v21, %v984_v20  ;;  %v1437_v35 = vmul.f32 %v984_v20, %v984_v20  ;;  %v1499_v36 = vadd.f32 %v1498_v18, %v1436_v16  ;;  %v985_v37 = vadd.f32 %v2241_v40, %v602_v28 }
 0x12a   :  { %v1794_v39 = vpack.c.bf16 %v987_v27, %v986_v26  ;;  %v1874_v43 = vpack.c.bf16 %v2442_v31, %v2433_v14  ;;  %v2457_v54 = vadd.f32 %v2241_v40, %v730_v32  ;;  %v1440_v7 = vmul.f32 %v987_v27, %v987_v27 }
 0x12b   :  { %v1500_v45 = vadd.f32 %v1499_v36, %v1437_v35  ;;  %v1789_v47 = vpack.c.bf16 %v985_v37, %v984_v20  ;;  %v1368_v49 = vadd.f32 %v1367_v34, %v985_v37  ;;  %v1438_v50 = vmul.f32 %v985_v37, %v985_v37 }
 0x12c   :  { %1898 = vst [vmem:[%s2601_s3 + $0x68] sm:$0xff] %v1794_v39   ;;  %1914 = vst [vmem:[%s2601_s3 + $0xe8] sm:$0xff] %v1874_v43   ;;  %v1869_v0 = vpack.c.bf16 %v2457_v54, %v2446_v42 }
 0x12d   :  { %1897 = vst [vmem:[%s2601_s3 + $0x60] sm:$0xff] %v1789_v47   ;;  %v1369_v57 = vadd.f32 %v1368_v49, %v986_v26  ;;  %v1501_v59 = vadd.f32 %v1500_v45, %v1438_v50  ;;  %v2003_v60 = vpop.f32.mrb[28].mxu0  ;;  %v2035_v62 = vpop.f32.mrb[28].mxu1 }
 0x12e   :  { %v615_v63 = vpop.f32.mrb[29].mxu0  ;;  %v2465_v4 = vadd.f32 %v2035_v62, %v2241_v40  ;;  %v743_v5 = vpop.f32.mrb[29].mxu1  ;;  %v990_v16 = vadd.f32 %v2003_v60, %v2241_v40  ;;  %1913 = vst [vmem:[%s2601_s3 + $0xe0] sm:$0xff] %v1869_v0   ;;  %v1445_v62 = vmul.f32 %v2248_v48, %v2248_v48 }
 0x12f   :  { %v1502_v8 = vadd.f32 %v1501_v59, %v1439_v55  ;;  %v988_v9 = vadd.f32 %v2241_v40, %v615_v63  ;;  %v1370_v10 = vadd.f32 %v1369_v57, %v987_v27  ;;  %v2004_v13 = vpop.f32.mrb[30].mxu0  ;;  %v2036_v15 = vpop.f32.mrb[30].mxu1  ;;  %v2478_v34 = vadd.f32 %v2241_v40, %v743_v5 }
 0x130   :  { %v991_v18 = vadd.f32 %v2004_v13, %v2241_v40  ;;  %v618_v20 = vpop.f32.mrb[31].mxu0  ;;  %v2474_v21 = vadd.f32 %v2036_v15, %v2241_v40  ;;  %v746_v22 = vpop.f32.mrb[31].mxu1  ;;  %v1443_v47 = vmul.f32 %v990_v16, %v990_v16  ;;  %v1448_v13 = vmul.f32 %v2253_v53, %v2253_v53 }
 0x131   :  { %v1371_v23 = vadd.f32 %v1370_v10, %v988_v9  ;;  %v1441_v26 = vmul.f32 %v988_v9, %v988_v9  ;;  %v1503_v28 = vadd.f32 %v1502_v8, %v1440_v7  ;;  %v989_v27 = vadd.f32 %v2241_v40, %v618_v20 }
 0x132   :  { %v1804_v32 = vpack.c.bf16 %v991_v18, %v990_v16  ;;  %v1884_v35 = vpack.c.bf16 %v2474_v21, %v2465_v4  ;;  %v2489_v45 = vadd.f32 %v2241_v40, %v746_v22  ;;  %v1444_v57 = vmul.f32 %v991_v18, %v991_v18 }
 0x133   :  { %v1504_v36 = vadd.f32 %v1503_v28, %v1441_v26  ;;  %v1799_v37 = vpack.c.bf16 %v989_v27, %v988_v9  ;;  %v1372_v39 = vadd.f32 %v1371_v23, %v989_v27  ;;  %v1442_v43 = vmul.f32 %v989_v27, %v989_v27 }
 0x134   :  { %1900 = vst [vmem:[%s2601_s3 + $0x78] sm:$0xff] %v1804_v32   ;;  %1916 = vst [vmem:[%s2601_s3 + $0xf8] sm:$0xff] %v1884_v35   ;;  %v1879_v55 = vpack.c.bf16 %v2489_v45, %v2478_v34  ;;  %v1446_v7 = vmul.f32 %v2257_v56, %v2257_v56  ;;  %v1447_v8 = vmul.f32 %v2244_v44, %v2244_v44 }
 0x135   :  { %1899 = vst [vmem:[%s2601_s3 + $0x70] sm:$0xff] %v1799_v37   ;;  %v1373_v49 = vadd.f32 %v1372_v39, %v990_v16  ;;  %v1505_v50 = vadd.f32 %v1504_v36, %v1442_v43  ;;  %v1450_v23 = vmul.f32 %v2297_v30, %v2297_v30  ;;  %v1454_v39 = vmul.f32 %v2329_v3, %v2329_v3 }
 0x136   :  { %1915 = vst [vmem:[%s2601_s3 + $0xf0] sm:$0xff] %v1879_v55  }
 0x137   :  { %v1506_v59 = vadd.f32 %v1505_v50, %v1443_v47  ;;  %v1374_v60 = vadd.f32 %v1373_v49, %v991_v18 }
 0x139   :  { %v1375_v40 = vadd.f32 %v1374_v60, %v2248_v48  ;;  %v1507_v63 = vadd.f32 %v1506_v59, %v1444_v57  ;;  %v1449_v48 = vmul.f32 %v2286_v24, %v2286_v24  ;;  %v1458_v60 = vmul.f32 %v2361_v41, %v2361_v41 }
 0x13b   :  { %v1508_v0 = vadd.f32 %v1507_v63, %v1445_v62  ;;  %v1376_v5 = vadd.f32 %v1375_v40, %v2257_v56 }
 0x13d   :  { %v1377_v9 = vadd.f32 %v1376_v5, %v2244_v44  ;;  %v1509_v10 = vadd.f32 %v1508_v0, %v1446_v7  ;;  %v1451_v44 = vmul.f32 %v2276_v6, %v2276_v6 }
 0x13f   :  { %v1510_v15 = vadd.f32 %v1509_v10, %v1447_v8  ;;  %v1378_v16 = vadd.f32 %v1377_v9, %v2253_v53  ;;  %v1452_v53 = vmul.f32 %v2282_v17, %v2282_v17  ;;  %v1462_v9 = vmul.f32 %v2393_v19, %v2393_v19 }
 0x141   :  { %v1379_v18 = vadd.f32 %v1378_v16, %v2286_v24  ;;  %v1511_v20 = vadd.f32 %v1510_v15, %v1448_v13  ;;  %v1453_v24 = vmul.f32 %v2318_v61, %v2318_v61 }
 0x143   :  { %v1512_v22 = vadd.f32 %v1511_v20, %v1449_v48  ;;  %v1380_v56 = vadd.f32 %v1379_v18, %v2297_v30 }
 0x145   :  { %v1381_v26 = vadd.f32 %v1380_v56, %v2276_v6  ;;  %v1513_v28 = vadd.f32 %v1512_v22, %v1450_v23  ;;  %v1455_v6 = vmul.f32 %v2305_v38, %v2305_v38  ;;  %v1466_v22 = vmul.f32 %v2425_v1, %v2425_v1 }
 0x147   :  { %v1514_v27 = vadd.f32 %v1513_v28, %v1451_v44  ;;  %v1382_v32 = vadd.f32 %v1381_v26, %v2282_v17  ;;  %v1456_v17 = vmul.f32 %v2314_v52, %v2314_v52 }
 0x149   :  { %v1383_v35 = vadd.f32 %v1382_v32, %v2318_v61  ;;  %v1515_v36 = vadd.f32 %v1514_v27, %v1452_v53  ;;  %v1457_v61 = vmul.f32 %v2350_v33, %v2350_v33  ;;  %v1470_v32 = vmul.f32 %v2457_v54, %v2457_v54 }
 0x14b   :  { %v1516_v37 = vadd.f32 %v1515_v36, %v1453_v24  ;;  %v1384_v30 = vadd.f32 %v1383_v35, %v2329_v3 }
 0x14d   :  { %v1385_v43 = vadd.f32 %v1384_v30, %v2305_v38  ;;  %v1517_v47 = vadd.f32 %v1516_v37, %v1454_v39  ;;  %v1459_v38 = vmul.f32 %v2337_v12, %v2337_v12 }
 0x14f   :  { %v1518_v49 = vadd.f32 %v1517_v47, %v1455_v6  ;;  %v1386_v50 = vadd.f32 %v1385_v43, %v2314_v52  ;;  %v1460_v52 = vmul.f32 %v2346_v25, %v2346_v25  ;;  %v1474_v43 = vmul.f32 %v2489_v45, %v2489_v45 }
 0x151   :  { %v1387_v55 = vadd.f32 %v1386_v50, %v2350_v33  ;;  %v1519_v57 = vadd.f32 %v1518_v49, %v1456_v17  ;;  %v1461_v33 = vmul.f32 %v2382_v11, %v2382_v11 }
 0x153   :  { %v1520_v59 = vadd.f32 %v1519_v57, %v1457_v61  ;;  %v1388_v3 = vadd.f32 %v1387_v55, %v2361_v41 }
 0x155   :  { %v1389_v62 = vadd.f32 %v1388_v3, %v2337_v12  ;;  %v1521_v40 = vadd.f32 %v1520_v59, %v1458_v60  ;;  %v1463_v12 = vmul.f32 %v2369_v51, %v2369_v51 }
 0x157   :  { %v1522_v63 = vadd.f32 %v1521_v40, %v1459_v38  ;;  %v1390_v0 = vadd.f32 %v1389_v62, %v2346_v25  ;;  %v1464_v25 = vmul.f32 %v2378_v2, %v2378_v2 }
 0x159   :  { %v1391_v5 = vadd.f32 %v1390_v0, %v2382_v11  ;;  %v1523_v7 = vadd.f32 %v1522_v63, %v1460_v52  ;;  %v1465_v11 = vmul.f32 %v2414_v58, %v2414_v58 }
 0x15b   :  { %v1524_v8 = vadd.f32 %v1523_v7, %v1461_v33  ;;  %v1392_v41 = vadd.f32 %v1391_v5, %v2393_v19 }
 0x15d   :  { %v1393_v10 = vadd.f32 %v1392_v41, %v2369_v51  ;;  %v1525_v13 = vadd.f32 %v1524_v8, %v1462_v9  ;;  %v1467_v51 = vmul.f32 %v2401_v29, %v2401_v29 }
 0x15f   :  { %v1526_v15 = vadd.f32 %v1525_v13, %v1463_v12  ;;  %v1394_v16 = vadd.f32 %v1393_v10, %v2378_v2  ;;  %v1468_v2 = vmul.f32 %v2410_v46, %v2410_v46 }
 0x161   :  { %v1395_v48 = vadd.f32 %v1394_v16, %v2414_v58  ;;  %v1527_v18 = vadd.f32 %v1526_v15, %v1464_v25  ;;  %v1469_v58 = vmul.f32 %v2446_v42, %v2446_v42 }
 0x163   :  { %v1528_v20 = vadd.f32 %v1527_v18, %v1465_v11  ;;  %v1396_v19 = vadd.f32 %v1395_v48, %v2425_v1 }
 0x165   :  { %v1397_v56 = vadd.f32 %v1396_v19, %v2401_v29  ;;  %v1529_v23 = vadd.f32 %v1528_v20, %v1466_v22  ;;  %v1471_v29 = vmul.f32 %v2433_v14, %v2433_v14 }
 0x167   :  { %v1530_v44 = vadd.f32 %v1529_v23, %v1467_v51  ;;  %v1398_v26 = vadd.f32 %v1397_v56, %v2410_v46  ;;  %v1472_v46 = vmul.f32 %v2442_v31, %v2442_v31 }
 0x169   :  { %v1399_v28 = vadd.f32 %v1398_v26, %v2446_v42  ;;  %v1531_v53 = vadd.f32 %v1530_v44, %v1468_v2  ;;  %v1473_v42 = vmul.f32 %v2478_v34, %v2478_v34 }
 0x16b   :  { %v1532_v27 = vadd.f32 %v1531_v53, %v1469_v58  ;;  %v1400_v1 = vadd.f32 %v1399_v28, %v2457_v54 }
 0x16d   :  { %v1401_v24 = vadd.f32 %v1400_v1, %v2433_v14  ;;  %v1533_v35 = vadd.f32 %v1532_v27, %v1470_v32  ;;  %v1475_v14 = vmul.f32 %v2465_v4, %v2465_v4 }
 0x16f   :  { %v1534_v36 = vadd.f32 %v1533_v35, %v1471_v29  ;;  %v1402_v37 = vadd.f32 %v1401_v24, %v2442_v31  ;;  %v1476_v31 = vmul.f32 %v2474_v21, %v2474_v21 }
 0x171   :  { %v1403_v30 = vadd.f32 %v1402_v37, %v2478_v34  ;;  %v1535_v39 = vadd.f32 %v1534_v36, %v1472_v46 }
 0x173   :  { %v1536_v6 = vadd.f32 %v1535_v39, %v1473_v42  ;;  %v1404_v54 = vadd.f32 %v1403_v30, %v2489_v45 }
 0x175   :  { %v1405_v47 = vadd.f32 %v1404_v54, %v2465_v4  ;;  %v1537_v17 = vadd.f32 %v1536_v6, %v1474_v43 }
 0x177   :  { %v1406_v49 = vadd.f32 %v1405_v47, %v2474_v21  ;;  %v1538_v50 = vadd.f32 %v1537_v17, %v1475_v14 }
 0x179   :  { %v1407_v34 = vrot.slane %v1406_v49, 4  ;;  %v1539_v61 = vadd.f32 %v1538_v50, %v1476_v31 }
 0x17b   :  { %v1408_v55 = vadd.f32 %v1407_v34, %v1406_v49  ;;  %v1540_v57 = vrot.slane %v1539_v61, 4 }
 0x17d   :  { %v1409_v59 = vrot.slane %v1408_v55, 2  ;;  %v1541_v3 = vadd.f32 %v1540_v57, %v1539_v61 }
 0x17f   :  { %v1410_v60 = vadd.f32 %v1409_v59, %v1408_v55  ;;  %v1542_v45 = vrot.slane %v1541_v3, 2 }
 0x181   :  { %v1411_v38 = vrot.slane %v1410_v60, 1  ;;  %v1543_v62 = vadd.f32 %v1542_v45, %v1541_v3 }
 0x183   :  { %v1544_v40 = vrot.slane %v1543_v62, 1  ;;  %v1412_v4 = vadd.f32 %v1411_v38, %v1410_v60 }
 0x185   :  { %v1545_v52 = vadd.f32 %v1544_v40, %v1543_v62 }
 0x187   :  { %v1547_v63 = vsel %vm1546_vm0, %v1412_v4, %v1545_v52 }
 0x188   :  { %1548 = vst [vmem:[%s2602_s4] sm:$0x3] %v1547_v63 }

// kernel: encoder_mnist_forward.8
= control target key start
LH: loop header
LB: loop body
LE: loop exit
PB: predicated region body
PF: predicated region fallthrough
CT: control target
= control target key end

     0   :  { %vm1435_vm0 = vcmask 130048   ;;  %s9742_s1 = inlined_call_operand.vmem [shape: bf16[16,128], index: 1, kind: input, shape index: {}]   ;;  %s9743_s0 = inlined_call_operand.vmem [shape: bf16[2048,16], index: 0, kind: input, shape index: {}]   ;;  %s9744_s2 = inlined_call_operand.vmem [shape: f32[1,128], index: 2, kind: input, shape index: {}]   ;;  %s9745_s3 = inlined_call_operand.vmem [shape: bf16[2048,128], index: 3, kind: output, shape index: {}]  }
   0x1   :  { %v7889_v0 = vld [vmem:[%s9742_s1] sm:$0xff]   ;;  %v7892_v3 = vld [vmem:[%s9743_s0 + $0x8] sm:$0xff]   ;;  %v7894_v5 = vld [vmem:[%s9743_s0 + $0x10] sm:$0xff]  }
   0x2   :  { %v7890_v1 = vld [vmem:[%s9743_s0] sm:$0xff]   ;;  %7629 = vmatprep.subr.bf16.mxu0 %v7889_v0  ;;  %7887 = vmatprep.subr.bf16.mxu1 %v7889_v0  ;;  %v7893_v4 = vld [vmem:[%s9743_s0 + $0x208] sm:$0xff]   ;;  %v7895_v6 = vld [vmem:[%s9743_s0 + $0x210] sm:$0xff]  }
   0x3   :  { %v7891_v2 = vld [vmem:[%s9743_s0 + $0x200] sm:$0xff]   ;;  %7630 = vmatpush3.bf16.msra.mxu0 %v7889_v0  ;;  %7888 = vmatpush3.bf16.msra.mxu1 %v7889_v0  ;;  %v7896_v7 = vld [vmem:[%s9743_s0 + $0x18] sm:$0xff]   ;;  %v7900_v11 = vld [vmem:[%s9743_s0 + $0x28] sm:$0xff]  }
   0x4   :  { %7631 = vmatprep.mubr.msk.bf16.mxu0 %vm1435_vm0, %v7890_v1  ;;  %7759 = vmatprep.mubr.msk.bf16.mxu1 %vm1435_vm0, %v7891_v2  ;;  %v7897_v8 = vld [vmem:[%s9743_s0 + $0x218] sm:$0xff]   ;;  %v7898_v9 = vld [vmem:[%s9743_s0 + $0x20] sm:$0xff]   ;;  %v7901_v12 = vld [vmem:[%s9743_s0 + $0x228] sm:$0xff]  }
   0x5   :  { %v7899_v10 = vld [vmem:[%s9743_s0 + $0x220] sm:$0xff]   ;;  %v7902_v13 = vld [vmem:[%s9743_s0 + $0x30] sm:$0xff]   ;;  %v7904_v15 = vld [vmem:[%s9743_s0 + $0x38] sm:$0xff]  }
   0x6   :  { %7632 = vmatmul.mubr.msk.bf16.vlgmr.msra.gmra.mrb[0].mxu0 %vm1435_vm0, %v7892_v3  ;;  %7760 = vmatmul.mubr.msk.bf16.vlgmr.msra.gmra.mrb[0].mxu1 %vm1435_vm0, %v7893_v4  ;;  %v7903_v14 = vld [vmem:[%s9743_s0 + $0x230] sm:$0xff]   ;;  %v7905_v16 = vld [vmem:[%s9743_s0 + $0x238] sm:$0xff]   ;;  %v7906_v17 = vld [vmem:[%s9743_s0 + $0x40] sm:$0xff]  }
   0x7   :  { %7635 = vmatprep.mubr.msk.bf16.mxu0 %vm1435_vm0, %v7894_v5  ;;  %7763 = vmatprep.mubr.msk.bf16.mxu1 %vm1435_vm0, %v7895_v6  ;;  %v7907_v18 = vld [vmem:[%s9743_s0 + $0x240] sm:$0xff]   ;;  %v7908_v19 = vld [vmem:[%s9743_s0 + $0x48] sm:$0xff]   ;;  %v7910_v21 = vld [vmem:[%s9743_s0 + $0x50] sm:$0xff]  }
   0x8   :  { %v7909_v20 = vld [vmem:[%s9743_s0 + $0x248] sm:$0xff]   ;;  %v7911_v22 = vld [vmem:[%s9743_s0 + $0x250] sm:$0xff]   ;;  %v7912_v23 = vld [vmem:[%s9743_s0 + $0x58] sm:$0xff]  }
   0x9   :  { %v7913_v24 = vld [vmem:[%s9743_s0 + $0x258] sm:$0xff]   ;;  %v7914_v25 = vld [vmem:[%s9743_s0 + $0x60] sm:$0xff]   ;;  %v7916_v27 = vld [vmem:[%s9743_s0 + $0x68] sm:$0xff]  }
   0xa   :  { %v7915_v26 = vld [vmem:[%s9743_s0 + $0x260] sm:$0xff]   ;;  %v7917_v28 = vld [vmem:[%s9743_s0 + $0x268] sm:$0xff]   ;;  %v7918_v29 = vld [vmem:[%s9743_s0 + $0x70] sm:$0xff]  }
   0xb   :  { %v7919_v30 = vld [vmem:[%s9743_s0 + $0x270] sm:$0xff]   ;;  %v7920_v31 = vld [vmem:[%s9743_s0 + $0x78] sm:$0xff]   ;;  %v7922_v33 = vld [vmem:[%s9743_s0 + $0x80] sm:$0xff]  }
   0xc   :  { %v7921_v32 = vld [vmem:[%s9743_s0 + $0x278] sm:$0xff]   ;;  %v7923_v34 = vld [vmem:[%s9743_s0 + $0x280] sm:$0xff]   ;;  %v7924_v35 = vld [vmem:[%s9743_s0 + $0x88] sm:$0xff]  }
   0xd   :  { %v7925_v36 = vld [vmem:[%s9743_s0 + $0x288] sm:$0xff]   ;;  %v7926_v37 = vld [vmem:[%s9743_s0 + $0x90] sm:$0xff]   ;;  %v7928_v39 = vld [vmem:[%s9743_s0 + $0x98] sm:$0xff]  }
   0xe   :  { %7636 = vmatmul.mubr.msk.bf16.gmra.mrb[4].mxu0 %vm1435_vm0, %v7896_v7  ;;  %7764 = vmatmul.mubr.msk.bf16.gmra.mrb[4].mxu1 %vm1435_vm0, %v7897_v8  ;;  %v7927_v38 = vld [vmem:[%s9743_s0 + $0x290] sm:$0xff]   ;;  %v7929_v40 = vld [vmem:[%s9743_s0 + $0x298] sm:$0xff]   ;;  %v7930_v41 = vld [vmem:[%s9743_s0 + $0xa0] sm:$0xff]  }
   0xf   :  { %7639 = vmatprep.mubr.msk.bf16.mxu0 %vm1435_vm0, %v7898_v9  ;;  %7767 = vmatprep.mubr.msk.bf16.mxu1 %vm1435_vm0, %v7899_v10  ;;  %v7931_v42 = vld [vmem:[%s9743_s0 + $0x2a0] sm:$0xff]   ;;  %v7932_v43 = vld [vmem:[%s9743_s0 + $0xa8] sm:$0xff]   ;;  %v7934_v45 = vld [vmem:[%s9743_s0 + $0xb0] sm:$0xff]  }
  0x10   :  { %v7933_v44 = vld [vmem:[%s9743_s0 + $0x2a8] sm:$0xff]   ;;  %v7935_v46 = vld [vmem:[%s9743_s0 + $0x2b0] sm:$0xff]   ;;  %v7936_v47 = vld [vmem:[%s9743_s0 + $0xb8] sm:$0xff]  }
  0x11   :  { %v7937_v48 = vld [vmem:[%s9743_s0 + $0x2b8] sm:$0xff]   ;;  %v7938_v49 = vld [vmem:[%s9743_s0 + $0xc0] sm:$0xff]   ;;  %v7940_v51 = vld [vmem:[%s9743_s0 + $0xc8] sm:$0xff]  }
  0x12   :  { %v7939_v50 = vld [vmem:[%s9743_s0 + $0x2c0] sm:$0xff]   ;;  %v7941_v52 = vld [vmem:[%s9743_s0 + $0x2c8] sm:$0xff]   ;;  %v7942_v53 = vld [vmem:[%s9743_s0 + $0xd0] sm:$0xff]  }
  0x13   :  { %v7943_v54 = vld [vmem:[%s9743_s0 + $0x2d0] sm:$0xff]   ;;  %v7944_v55 = vld [vmem:[%s9743_s0 + $0xd8] sm:$0xff]   ;;  %v7946_v57 = vld [vmem:[%s9743_s0 + $0xe0] sm:$0xff]  }
  0x14   :  { %v7945_v56 = vld [vmem:[%s9743_s0 + $0x2d8] sm:$0xff]   ;;  %v7947_v58 = vld [vmem:[%s9743_s0 + $0x2e0] sm:$0xff]   ;;  %v7948_v59 = vld [vmem:[%s9743_s0 + $0xe8] sm:$0xff]  }
  0x15   :  { %v7949_v60 = vld [vmem:[%s9743_s0 + $0x2e8] sm:$0xff]   ;;  %v7950_v61 = vld [vmem:[%s9743_s0 + $0xf0] sm:$0xff]   ;;  %v7952_v63 = vld [vmem:[%s9743_s0 + $0xf8] sm:$0xff]  }
  0x16   :  { %7640 = vmatmul.mubr.msk.bf16.gmra.mrb[8].mxu0 %vm1435_vm0, %v7900_v11  ;;  %7768 = vmatmul.mubr.msk.bf16.gmra.mrb[8].mxu1 %vm1435_vm0, %v7901_v12  ;;  %v7951_v62 = vld [vmem:[%s9743_s0 + $0x2f0] sm:$0xff]   ;;  %v7953_v0 = vld [vmem:[%s9743_s0 + $0x2f8] sm:$0xff]   ;;  %v7954_v1 = vld [vmem:[%s9743_s0 + $0x100] sm:$0xff]  }
  0x17   :  { %7643 = vmatprep.mubr.msk.bf16.mxu0 %vm1435_vm0, %v7902_v13  ;;  %7771 = vmatprep.mubr.msk.bf16.mxu1 %vm1435_vm0, %v7903_v14  ;;  %v7955_v2 = vld [vmem:[%s9743_s0 + $0x300] sm:$0xff]   ;;  %v7956_v3 = vld [vmem:[%s9743_s0 + $0x108] sm:$0xff]   ;;  %v7958_v5 = vld [vmem:[%s9743_s0 + $0x110] sm:$0xff]  }
  0x18   :  { %v7957_v4 = vld [vmem:[%s9743_s0 + $0x308] sm:$0xff]   ;;  %v7959_v6 = vld [vmem:[%s9743_s0 + $0x310] sm:$0xff]   ;;  %v7960_v7 = vld [vmem:[%s9743_s0 + $0x118] sm:$0xff]  }
  0x19   :  { %v7961_v8 = vld [vmem:[%s9743_s0 + $0x318] sm:$0xff]   ;;  %v7962_v9 = vld [vmem:[%s9743_s0 + $0x120] sm:$0xff]   ;;  %v7964_v11 = vld [vmem:[%s9743_s0 + $0x128] sm:$0xff]  }
  0x1a   :  { %v7963_v10 = vld [vmem:[%s9743_s0 + $0x320] sm:$0xff]   ;;  %v7965_v12 = vld [vmem:[%s9743_s0 + $0x328] sm:$0xff]   ;;  %v7966_v13 = vld [vmem:[%s9743_s0 + $0x130] sm:$0xff]  }
  0x1b   :  { %v7967_v14 = vld [vmem:[%s9743_s0 + $0x330] sm:$0xff]  }
  0x1e   :  { %7644 = vmatmul.mubr.msk.bf16.gmra.mrb[12].mxu0 %vm1435_vm0, %v7904_v15  ;;  %7772 = vmatmul.mubr.msk.bf16.gmra.mrb[12].mxu1 %vm1435_vm0, %v7905_v16  ;;  %v7968_v15 = vld [vmem:[%s9743_s0 + $0x138] sm:$0xff]  }
  0x1f   :  { %7647 = vmatprep.mubr.msk.bf16.mxu0 %vm1435_vm0, %v7906_v17  ;;  %7775 = vmatprep.mubr.msk.bf16.mxu1 %vm1435_vm0, %v7907_v18  ;;  %v7969_v16 = vld [vmem:[%s9743_s0 + $0x338] sm:$0xff]   ;;  %v7970_v17 = vld [vmem:[%s9743_s0 + $0x140] sm:$0xff]  }
  0x20   :  { %v7971_v18 = vld [vmem:[%s9743_s0 + $0x340] sm:$0xff]  }
  0x26   :  { %7648 = vmatmul.mubr.msk.bf16.gmra.mrb[16].mxu0 %vm1435_vm0, %v7908_v19  ;;  %7776 = vmatmul.mubr.msk.bf16.gmra.mrb[16].mxu1 %vm1435_vm0, %v7909_v20  ;;  %v7972_v19 = vld [vmem:[%s9743_s0 + $0x148] sm:$0xff]  }
  0x27   :  { %7651 = vmatprep.mubr.msk.bf16.mxu0 %vm1435_vm0, %v7910_v21  ;;  %7779 = vmatprep.mubr.msk.bf16.mxu1 %vm1435_vm0, %v7911_v22  ;;  %v7973_v20 = vld [vmem:[%s9743_s0 + $0x348] sm:$0xff]   ;;  %v7974_v21 = vld [vmem:[%s9743_s0 + $0x150] sm:$0xff]  }
  0x28   :  { %v7975_v22 = vld [vmem:[%s9743_s0 + $0x350] sm:$0xff]  }
  0x2e   :  { %7652 = vmatmul.mubr.msk.bf16.gmra.mrb[20].mxu0 %vm1435_vm0, %v7912_v23  ;;  %7780 = vmatmul.mubr.msk.bf16.gmra.mrb[20].mxu1 %vm1435_vm0, %v7913_v24  ;;  %v7976_v23 = vld [vmem:[%s9743_s0 + $0x158] sm:$0xff]  }
  0x2f   :  { %7655 = vmatprep.mubr.msk.bf16.mxu0 %vm1435_vm0, %v7914_v25  ;;  %7783 = vmatprep.mubr.msk.bf16.mxu1 %vm1435_vm0, %v7915_v26  ;;  %v7977_v24 = vld [vmem:[%s9743_s0 + $0x358] sm:$0xff]   ;;  %v7978_v25 = vld [vmem:[%s9743_s0 + $0x160] sm:$0xff]  }
  0x30   :  { %v7979_v26 = vld [vmem:[%s9743_s0 + $0x360] sm:$0xff]  }
  0x36   :  { %7656 = vmatmul.mubr.msk.bf16.gmra.mrb[24].mxu0 %vm1435_vm0, %v7916_v27  ;;  %7784 = vmatmul.mubr.msk.bf16.gmra.mrb[24].mxu1 %vm1435_vm0, %v7917_v28  ;;  %v7980_v27 = vld [vmem:[%s9743_s0 + $0x168] sm:$0xff]  }
  0x37   :  { %7659 = vmatprep.mubr.msk.bf16.mxu0 %vm1435_vm0, %v7918_v29  ;;  %7787 = vmatprep.mubr.msk.bf16.mxu1 %vm1435_vm0, %v7919_v30  ;;  %v7981_v28 = vld [vmem:[%s9743_s0 + $0x368] sm:$0xff]   ;;  %v7982_v29 = vld [vmem:[%s9743_s0 + $0x170] sm:$0xff]  }
  0x38   :  { %v7983_v30 = vld [vmem:[%s9743_s0 + $0x370] sm:$0xff]  }
  0x3e   :  { %7660 = vmatmul.mubr.msk.bf16.gmra.mrb[28].mxu0 %vm1435_vm0, %v7920_v31  ;;  %7788 = vmatmul.mubr.msk.bf16.gmra.mrb[28].mxu1 %vm1435_vm0, %v7921_v32  ;;  %v7984_v31 = vld [vmem:[%s9743_s0 + $0x178] sm:$0xff]  }
  0x3f   :  { %7663 = vmatprep.mubr.msk.bf16.mxu0 %vm1435_vm0, %v7922_v33  ;;  %7791 = vmatprep.mubr.msk.bf16.mxu1 %vm1435_vm0, %v7923_v34  ;;  %v7985_v32 = vld [vmem:[%s9743_s0 + $0x378] sm:$0xff]   ;;  %v7986_v33 = vld [vmem:[%s9743_s0 + $0x180] sm:$0xff]  }
  0x40   :  { %v7987_v34 = vld [vmem:[%s9743_s0 + $0x380] sm:$0xff]  }
  0x46   :  { %7664 = vmatmul.mubr.msk.bf16.gmra.mrb[32].mxu0 %vm1435_vm0, %v7924_v35  ;;  %7792 = vmatmul.mubr.msk.bf16.gmra.mrb[32].mxu1 %vm1435_vm0, %v7925_v36  ;;  %v7988_v35 = vld [vmem:[%s9743_s0 + $0x188] sm:$0xff]  }
  0x47   :  { %7667 = vmatprep.mubr.msk.bf16.mxu0 %vm1435_vm0, %v7926_v37  ;;  %7795 = vmatprep.mubr.msk.bf16.mxu1 %vm1435_vm0, %v7927_v38  ;;  %v7989_v36 = vld [vmem:[%s9743_s0 + $0x388] sm:$0xff]   ;;  %v7990_v37 = vld [vmem:[%s9743_s0 + $0x190] sm:$0xff]  }
  0x48   :  { %v7991_v38 = vld [vmem:[%s9743_s0 + $0x390] sm:$0xff]  }
  0x4e   :  { %7668 = vmatmul.mubr.msk.bf16.gmra.mrb[36].mxu0 %vm1435_vm0, %v7928_v39  ;;  %7796 = vmatmul.mubr.msk.bf16.gmra.mrb[36].mxu1 %vm1435_vm0, %v7929_v40  ;;  %v7992_v39 = vld [vmem:[%s9743_s0 + $0x198] sm:$0xff]  }
  0x4f   :  { %7671 = vmatprep.mubr.msk.bf16.mxu0 %vm1435_vm0, %v7930_v41  ;;  %7799 = vmatprep.mubr.msk.bf16.mxu1 %vm1435_vm0, %v7931_v42  ;;  %v7993_v40 = vld [vmem:[%s9743_s0 + $0x398] sm:$0xff]   ;;  %v7994_v41 = vld [vmem:[%s9743_s0 + $0x1a0] sm:$0xff]  }
  0x50   :  { %v7995_v42 = vld [vmem:[%s9743_s0 + $0x3a0] sm:$0xff]  }
  0x56   :  { %7672 = vmatmul.mubr.msk.bf16.gmra.mrb[40].mxu0 %vm1435_vm0, %v7932_v43  ;;  %7800 = vmatmul.mubr.msk.bf16.gmra.mrb[40].mxu1 %vm1435_vm0, %v7933_v44  ;;  %v7996_v43 = vld [vmem:[%s9743_s0 + $0x1a8] sm:$0xff]  }
  0x57   :  { %7675 = vmatprep.mubr.msk.bf16.mxu0 %vm1435_vm0, %v7934_v45  ;;  %7803 = vmatprep.mubr.msk.bf16.mxu1 %vm1435_vm0, %v7935_v46  ;;  %v7997_v44 = vld [vmem:[%s9743_s0 + $0x3a8] sm:$0xff]   ;;  %v7998_v45 = vld [vmem:[%s9743_s0 + $0x1b0] sm:$0xff]  }
  0x58   :  { %v7999_v46 = vld [vmem:[%s9743_s0 + $0x3b0] sm:$0xff]  }
  0x5e   :  { %7676 = vmatmul.mubr.msk.bf16.gmra.mrb[44].mxu0 %vm1435_vm0, %v7936_v47  ;;  %7804 = vmatmul.mubr.msk.bf16.gmra.mrb[44].mxu1 %vm1435_vm0, %v7937_v48  ;;  %v8484_v47 = vld [vmem:[%s9744_s2] ss:$0 sm:$0xff] }
  0x5f   :  { %7679 = vmatprep.mubr.msk.bf16.mxu0 %vm1435_vm0, %v7938_v49  ;;  %7807 = vmatprep.mubr.msk.bf16.mxu1 %vm1435_vm0, %v7939_v50 }
  0x66   :  { %7680 = vmatmul.mubr.msk.bf16.gmra.mrb[48].mxu0 %vm1435_vm0, %v7940_v51  ;;  %7808 = vmatmul.mubr.msk.bf16.gmra.mrb[48].mxu1 %vm1435_vm0, %v7941_v52 }
  0x67   :  { %7683 = vmatprep.mubr.msk.bf16.mxu0 %vm1435_vm0, %v7942_v53  ;;  %7811 = vmatprep.mubr.msk.bf16.mxu1 %vm1435_vm0, %v7943_v54  ;;  %v8000_v54 = vld [vmem:[%s9743_s0 + $0x1b8] sm:$0xff]  }
  0x6e   :  { %7684 = vmatmul.mubr.msk.bf16.gmra.mrb[52].mxu0 %vm1435_vm0, %v7944_v55  ;;  %7812 = vmatmul.mubr.msk.bf16.gmra.mrb[52].mxu1 %vm1435_vm0, %v7945_v56 }
  0x6f   :  { %7687 = vmatprep.mubr.msk.bf16.mxu0 %vm1435_vm0, %v7946_v57  ;;  %7815 = vmatprep.mubr.msk.bf16.mxu1 %vm1435_vm0, %v7947_v58 }
  0x76   :  { %7688 = vmatmul.mubr.msk.bf16.gmra.mrb[56].mxu0 %vm1435_vm0, %v7948_v59  ;;  %7816 = vmatmul.mubr.msk.bf16.gmra.mrb[56].mxu1 %vm1435_vm0, %v7949_v60  ;;  %v8001_v59 = vld [vmem:[%s9743_s0 + $0x3b8] sm:$0xff]   ;;  %v8002_v60 = vld [vmem:[%s9743_s0 + $0x1c0] sm:$0xff]  }
  0x77   :  { %7691 = vmatprep.mubr.msk.bf16.mxu0 %vm1435_vm0, %v7950_v61  ;;  %7819 = vmatprep.mubr.msk.bf16.mxu1 %vm1435_vm0, %v7951_v62  ;;  %v8003_v61 = vld [vmem:[%s9743_s0 + $0x3c0] sm:$0xff]  }
  0x7e   :  { %7692 = vmatmul.mubr.msk.bf16.gmra.mrb[60].mxu0 %vm1435_vm0, %v7952_v63  ;;  %7820 = vmatmul.mubr.msk.bf16.gmra.mrb[60].mxu1 %vm1435_vm0, %v7953_v0 }
  0x7f   :  { %7695 = vmatprep.mubr.msk.bf16.mxu0 %vm1435_vm0, %v7954_v1  ;;  %7823 = vmatprep.mubr.msk.bf16.mxu1 %vm1435_vm0, %v7955_v2 }
  0x86   :  { %7696 = vmatmul.mubr.msk.bf16.gmra.mrb[64].mxu0 %vm1435_vm0, %v7956_v3  ;;  %7824 = vmatmul.mubr.msk.bf16.gmra.mrb[64].mxu1 %vm1435_vm0, %v7957_v4 }
  0x87   :  { %7699 = vmatprep.mubr.msk.bf16.mxu0 %vm1435_vm0, %v7958_v5  ;;  %7827 = vmatprep.mubr.msk.bf16.mxu1 %vm1435_vm0, %v7959_v6 }
  0x8e   :  { %7700 = vmatmul.mubr.msk.bf16.gmra.mrb[68].mxu0 %vm1435_vm0, %v7960_v7  ;;  %7828 = vmatmul.mubr.msk.bf16.gmra.mrb[68].mxu1 %vm1435_vm0, %v7961_v8 }
  0x8f   :  { %7703 = vmatprep.mubr.msk.bf16.mxu0 %vm1435_vm0, %v7962_v9  ;;  %7831 = vmatprep.mubr.msk.bf16.mxu1 %vm1435_vm0, %v7963_v10 }
  0x96   :  { %7704 = vmatmul.mubr.msk.bf16.gmra.mrb[72].mxu0 %vm1435_vm0, %v7964_v11  ;;  %7832 = vmatmul.mubr.msk.bf16.gmra.mrb[72].mxu1 %vm1435_vm0, %v7965_v12 }
  0x97   :  { %7707 = vmatprep.mubr.msk.bf16.mxu0 %vm1435_vm0, %v7966_v13  ;;  %7835 = vmatprep.mubr.msk.bf16.mxu1 %vm1435_vm0, %v7967_v14 }
  0x9e   :  { %7708 = vmatmul.mubr.msk.bf16.gmra.mrb[76].mxu0 %vm1435_vm0, %v7968_v15  ;;  %7836 = vmatmul.mubr.msk.bf16.gmra.mrb[76].mxu1 %vm1435_vm0, %v7969_v16 }
  0x9f   :  { %7711 = vmatprep.mubr.msk.bf16.mxu0 %vm1435_vm0, %v7970_v17  ;;  %7839 = vmatprep.mubr.msk.bf16.mxu1 %vm1435_vm0, %v7971_v18 }
  0xa6   :  { %7712 = vmatmul.mubr.msk.bf16.gmra.mrb[80].mxu0 %vm1435_vm0, %v7972_v19  ;;  %7840 = vmatmul.mubr.msk.bf16.gmra.mrb[80].mxu1 %vm1435_vm0, %v7973_v20  ;;  %v8004_v20 = vld [vmem:[%s9743_s0 + $0x1c8] sm:$0xff]  }
  0xa7   :  { %7715 = vmatprep.mubr.msk.bf16.mxu0 %vm1435_vm0, %v7974_v21  ;;  %7843 = vmatprep.mubr.msk.bf16.mxu1 %vm1435_vm0, %v7975_v22 }
  0xae   :  { %7716 = vmatmul.mubr.msk.bf16.gmra.mrb[84].mxu0 %vm1435_vm0, %v7976_v23  ;;  %7844 = vmatmul.mubr.msk.bf16.gmra.mrb[84].mxu1 %vm1435_vm0, %v7977_v24 }
  0xaf   :  { %7719 = vmatprep.mubr.msk.bf16.mxu0 %vm1435_vm0, %v7978_v25  ;;  %7847 = vmatprep.mubr.msk.bf16.mxu1 %vm1435_vm0, %v7979_v26 }
  0xb6   :  { %7720 = vmatmul.mubr.msk.bf16.gmra.mrb[88].mxu0 %vm1435_vm0, %v7980_v27  ;;  %7848 = vmatmul.mubr.msk.bf16.gmra.mrb[88].mxu1 %vm1435_vm0, %v7981_v28  ;;  %v8005_v27 = vld [vmem:[%s9743_s0 + $0x3c8] sm:$0xff]   ;;  %v8006_v28 = vld [vmem:[%s9743_s0 + $0x1d0] sm:$0xff]  }
  0xb7   :  { %7723 = vmatprep.mubr.msk.bf16.mxu0 %vm1435_vm0, %v7982_v29  ;;  %7851 = vmatprep.mubr.msk.bf16.mxu1 %vm1435_vm0, %v7983_v30 }
  0xbe   :  { %7724 = vmatmul.mubr.msk.bf16.gmra.mrb[92].mxu0 %vm1435_vm0, %v7984_v31  ;;  %7852 = vmatmul.mubr.msk.bf16.gmra.mrb[92].mxu1 %vm1435_vm0, %v7985_v32 }
  0xbf   :  { %7727 = vmatprep.mubr.msk.bf16.mxu0 %vm1435_vm0, %v7986_v33  ;;  %7855 = vmatprep.mubr.msk.bf16.mxu1 %vm1435_vm0, %v7987_v34 }
  0xc6   :  { %7728 = vmatmul.mubr.msk.bf16.gmra.mrb[96].mxu0 %vm1435_vm0, %v7988_v35  ;;  %7856 = vmatmul.mubr.msk.bf16.gmra.mrb[96].mxu1 %vm1435_vm0, %v7989_v36  ;;  %v8007_v35 = vld [vmem:[%s9743_s0 + $0x3d0] sm:$0xff]  }
  0xc7   :  { %7731 = vmatprep.mubr.msk.bf16.mxu0 %vm1435_vm0, %v7990_v37  ;;  %7859 = vmatprep.mubr.msk.bf16.mxu1 %vm1435_vm0, %v7991_v38 }
  0xce   :  { %7732 = vmatmul.mubr.msk.bf16.gmra.mrb[100].mxu0 %vm1435_vm0, %v7992_v39  ;;  %7860 = vmatmul.mubr.msk.bf16.gmra.mrb[100].mxu1 %vm1435_vm0, %v7993_v40 }
  0xcf   :  { %7735 = vmatprep.mubr.msk.bf16.mxu0 %vm1435_vm0, %v7994_v41  ;;  %7863 = vmatprep.mubr.msk.bf16.mxu1 %vm1435_vm0, %v7995_v42 }
  0xd6   :  { %7736 = vmatmul.mubr.msk.bf16.gmra.mrb[104].mxu0 %vm1435_vm0, %v7996_v43  ;;  %7864 = vmatmul.mubr.msk.bf16.gmra.mrb[104].mxu1 %vm1435_vm0, %v7997_v44 }
  0xd7   :  { %7739 = vmatprep.mubr.msk.bf16.mxu0 %vm1435_vm0, %v7998_v45  ;;  %7867 = vmatprep.mubr.msk.bf16.mxu1 %vm1435_vm0, %v7999_v46 }
  0xd9   :  { %v7633_v48 = vpop.f32.mrb[0].mxu0  ;;  %v7761_v49 = vpop.f32.mrb[0].mxu1 }
  0xda   :  { %v3657_v50 = vadd.f32 %v7633_v48, %v8484_v47  ;;  %v3785_v51 = vadd.f32 %v7761_v49, %v8484_v47  ;;  %v1854_v52 = vpop.f32.mrb[1].mxu0  ;;  %v2366_v53 = vpop.f32.mrb[1].mxu1 }
  0xdb   :  { %v3655_v55 = vadd.f32 %v8484_v47, %v1854_v52  ;;  %v3783_v56 = vadd.f32 %v8484_v47, %v2366_v53  ;;  %v7634_v57 = vpop.f32.mrb[2].mxu0  ;;  %v7762_v58 = vpop.f32.mrb[2].mxu1 }
  0xdc   :  { %vm3913_vm1 = vcmp.gt.f32.partialorder %v3657_v50, 0.0  ;;  %v4169_v62 = vmul.f32 0.01, %v3657_v50  ;;  %vm4041_vm2 = vcmp.gt.f32.partialorder %v3785_v51, 0.0  ;;  %v4297_v63 = vmul.f32 0.01, %v3785_v51 }
  0xdd   :  { %vm3911_vm3 = vcmp.gt.f32.partialorder %v3655_v55, 0.0  ;;  %v4167_v0 = vmul.f32 0.01, %v3655_v55  ;;  %vm4039_vm4 = vcmp.gt.f32.partialorder %v3783_v56, 0.0  ;;  %v4295_v1 = vmul.f32 0.01, %v3783_v56 }
  0xde   :  { %v3658_v2 = vadd.f32 %v7634_v57, %v8484_v47  ;;  %v3786_v3 = vadd.f32 %v7762_v58, %v8484_v47  ;;  %v1857_v4 = vpop.f32.mrb[3].mxu0  ;;  %v2369_v5 = vpop.f32.mrb[3].mxu1  ;;  %7740 = vmatmul.mubr.msk.bf16.gmra.mrb[108].mxu0 %vm1435_vm0, %v8000_v54  ;;  %v4425_v6 = vsel %vm3913_vm1, %v3657_v50, %v4169_v62  ;;  %v4553_v7 = vsel %vm4041_vm2, %v3785_v51, %v4297_v63 }
  0xdf   :  { %v3656_v8 = vadd.f32 %v8484_v47, %v1857_v4  ;;  %v3784_v9 = vadd.f32 %v8484_v47, %v2369_v5  ;;  %7868 = vmatmul.mubr.msk.bf16.gmra.mrb[108].mxu1 %vm1435_vm0, %v8001_v59  ;;  %7743 = vmatprep.mubr.msk.bf16.mxu0 %vm1435_vm0, %v8002_v60  ;;  %v4423_v14 = vsel %vm3911_vm3, %v3655_v55, %v4167_v0  ;;  %v8009_v4 = vld [vmem:[%s9743_s0 + $0x3d8] sm:$0xff]   ;;  %v8010_v5 = vld [vmem:[%s9743_s0 + $0x1e0] sm:$0xff]  }
  0xe0   :  { %vm3914_vm5 = vcmp.gt.f32.partialorder %v3658_v2, 0.0  ;;  %v4170_v10 = vmul.f32 0.01, %v3658_v2  ;;  %vm4042_vm6 = vcmp.gt.f32.partialorder %v3786_v3, 0.0  ;;  %v4298_v11 = vmul.f32 0.01, %v3786_v3  ;;  %7871 = vmatprep.mubr.msk.bf16.mxu1 %vm1435_vm0, %v8003_v61 }
  0xe1   :  { %vm3912_vm7 = vcmp.gt.f32.partialorder %v3656_v8, 0.0  ;;  %v4168_v12 = vmul.f32 0.01, %v3656_v8  ;;  %vm4040_vm8 = vcmp.gt.f32.partialorder %v3784_v9, 0.0  ;;  %v4296_v13 = vmul.f32 0.01, %v3784_v9 }
  0xe2   :  { %v4551_v15 = vsel %vm4039_vm4, %v3783_v56, %v4295_v1  ;;  %v4426_v16 = vsel %vm3914_vm5, %v3658_v2, %v4170_v10  ;;  %v4554_v17 = vsel %vm4042_vm6, %v3786_v3, %v4298_v11  ;;  %v7637_v18 = vpop.f32.mrb[4].mxu0  ;;  %v7765_v19 = vpop.f32.mrb[4].mxu1  ;;  %v8008_v61 = vld [vmem:[%s9743_s0 + $0x1d8] sm:$0xff]  }
  0xe3   :  { %v6741_v21 = vpack.c.bf16 %v4426_v16, %v4425_v6  ;;  %v7061_v22 = vpack.c.bf16 %v4554_v17, %v4553_v7  ;;  %v4424_v23 = vsel %vm3912_vm7, %v3656_v8, %v4168_v12  ;;  %v4552_v24 = vsel %vm4040_vm8, %v3784_v9, %v4296_v13  ;;  %v1870_v25 = vpop.f32.mrb[5].mxu0  ;;  %v2382_v26 = vpop.f32.mrb[5].mxu1  ;;  %v8011_v6 = vld [vmem:[%s9743_s0 + $0x3e0] sm:$0xff]  }
  0xe4   :  { %v6736_v29 = vpack.c.bf16 %v4424_v23, %v4423_v14  ;;  %v7056_v30 = vpack.c.bf16 %v4552_v24, %v4551_v15  ;;  %v3661_v31 = vadd.f32 %v7637_v18, %v8484_v47  ;;  %v3789_v32 = vadd.f32 %v7765_v19, %v8484_v47  ;;  %v7638_v33 = vpop.f32.mrb[6].mxu0  ;;  %v7766_v34 = vpop.f32.mrb[6].mxu1  ;;  %v8012_v24 = vld [vmem:[%s9743_s0 + $0x1e8] sm:$0xff]  }
  0xe5   :  { %7373 = vst [vmem:[%s9745_s3 + $0x8] sm:$0xff] %v6741_v21   ;;  %7437 = vst [vmem:[%s9745_s3 + $0x208] sm:$0xff] %v7061_v22   ;;  %v3659_v36 = vadd.f32 %v8484_v47, %v1870_v25  ;;  %v3787_v37 = vadd.f32 %v8484_v47, %v2382_v26  ;;  %v3662_v38 = vadd.f32 %v7638_v33, %v8484_v47  ;;  %v1873_v40 = vpop.f32.mrb[7].mxu0  ;;  %v2385_v41 = vpop.f32.mrb[7].mxu1 }
  0xe6   :  { %v3790_v39 = vadd.f32 %v7766_v34, %v8484_v47  ;;  %6737 = vst [vmem:[%s9745_s3] sm:$0xff] %v6736_v29   ;;  %7436 = vst [vmem:[%s9745_s3 + $0x200] sm:$0xff] %v7056_v30   ;;  %vm3917_vm9 = vcmp.gt.f32.partialorder %v3661_v31, 0.0  ;;  %v4173_v42 = vmul.f32 0.01, %v3661_v31  ;;  %vm4045_vm10 = vcmp.gt.f32.partialorder %v3789_v32, 0.0  ;;  %7744 = vmatmul.mubr.msk.bf16.gmra.mrb[112].mxu0 %vm1435_vm0, %v8004_v20  ;;  %v8013_v30 = vld [vmem:[%s9743_s0 + $0x3e8] sm:$0xff]  }
  0xe7   :  { %v4301_v43 = vmul.f32 0.01, %v3789_v32  ;;  %vm3915_vm11 = vcmp.gt.f32.partialorder %v3659_v36, 0.0  ;;  %v4171_v44 = vmul.f32 0.01, %v3659_v36  ;;  %vm4043_vm12 = vcmp.gt.f32.partialorder %v3787_v37, 0.0  ;;  %7872 = vmatmul.mubr.msk.bf16.gmra.mrb[112].mxu1 %vm1435_vm0, %v8005_v27  ;;  %7747 = vmatprep.mubr.msk.bf16.mxu0 %vm1435_vm0, %v8006_v28 }
  0xe8   :  { %v4299_v45 = vmul.f32 0.01, %v3787_v37  ;;  %v4429_v46 = vsel %vm3917_vm9, %v3661_v31, %v4173_v42  ;;  %vm3918_vm13 = vcmp.gt.f32.partialorder %v3662_v38, 0.0  ;;  %v4174_v49 = vmul.f32 0.01, %v3662_v38  ;;  %7875 = vmatprep.mubr.msk.bf16.mxu1 %vm1435_vm0, %v8007_v35 }
  0xe9   :  { %v4557_v48 = vsel %vm4045_vm10, %v3789_v32, %v4301_v43  ;;  %v4427_v50 = vsel %vm3915_vm11, %v3659_v36, %v4171_v44  ;;  %vm4046_vm14 = vcmp.gt.f32.partialorder %v3790_v39, 0.0  ;;  %v4302_v52 = vmul.f32 0.01, %v3790_v39  ;;  %v7641_v53 = vpop.f32.mrb[8].mxu0  ;;  %v7769_v54 = vpop.f32.mrb[8].mxu1  ;;  %v8014_v36 = vld [vmem:[%s9743_s0 + $0x1f0] sm:$0xff]  }
  0xea   :  { %v4555_v51 = vsel %vm4043_vm12, %v3787_v37, %v4299_v45  ;;  %v4430_v55 = vsel %vm3918_vm13, %v3662_v38, %v4174_v49  ;;  %v3660_v56 = vadd.f32 %v8484_v47, %v1873_v40  ;;  %v3788_v57 = vadd.f32 %v8484_v47, %v2385_v41  ;;  %v1886_v59 = vpop.f32.mrb[9].mxu0  ;;  %v2398_v60 = vpop.f32.mrb[9].mxu1  ;;  %v8015_v37 = vld [vmem:[%s9743_s0 + $0x3f0] sm:$0xff]  }
  0xeb   :  { %v3665_v58 = vadd.f32 %v7641_v53, %v8484_v47  ;;  %v6751_v62 = vpack.c.bf16 %v4430_v55, %v4429_v46  ;;  %v4558_v63 = vsel %vm4046_vm14, %v3790_v39, %v4302_v52  ;;  %v3793_v0 = vadd.f32 %v7769_v54, %v8484_v47  ;;  %v7642_v2 = vpop.f32.mrb[10].mxu0  ;;  %v7770_v3 = vpop.f32.mrb[10].mxu1 }
  0xec   :  { %v3663_v1 = vadd.f32 %v8484_v47, %v1886_v59  ;;  %v7071_v7 = vpack.c.bf16 %v4558_v63, %v4557_v48  ;;  %vm3916_vm15 = vcmp.gt.f32.partialorder %v3660_v56, 0.0  ;;  %v4172_v8 = vmul.f32 0.01, %v3660_v56  ;;  %v1889_v9 = vpop.f32.mrb[11].mxu0  ;;  %v2401_v10 = vpop.f32.mrb[11].mxu1 }
  0xed   :  { %vm4044_vm1 = vcmp.gt.f32.partialorder %v3788_v57, 0.0  ;;  %7375 = vst [vmem:[%s9745_s3 + $0x18] sm:$0xff] %v6751_v62   ;;  %v4300_v11 = vmul.f32 0.01, %v3788_v57  ;;  %vm3921_vm2 = vcmp.gt.f32.partialorder %v3665_v58, 0.0  ;;  %vm4049_vm3 = vcmp.gt.f32.partialorder %v3793_v0, 0.0 }
  0xee   :  { %v4177_v12 = vmul.f32 0.01, %v3665_v58  ;;  %7439 = vst [vmem:[%s9745_s3 + $0x218] sm:$0xff] %v7071_v7   ;;  %v4428_v13 = vsel %vm3916_vm15, %v3660_v56, %v4172_v8  ;;  %v4305_v14 = vmul.f32 0.01, %v3793_v0  ;;  %vm3919_vm4 = vcmp.gt.f32.partialorder %v3663_v1, 0.0  ;;  %7748 = vmatmul.mubr.msk.bf16.gmra.mrb[116].mxu0 %vm1435_vm0, %v8008_v61 }
  0xef   :  { %v4175_v15 = vmul.f32 0.01, %v3663_v1  ;;  %v6746_v16 = vpack.c.bf16 %v4428_v13, %v4427_v50  ;;  %v4556_v17 = vsel %vm4044_vm1, %v3788_v57, %v4300_v11  ;;  %v3791_v19 = vadd.f32 %v8484_v47, %v2398_v60  ;;  %7876 = vmatmul.mubr.msk.bf16.gmra.mrb[116].mxu1 %vm1435_vm0, %v8009_v4  ;;  %7751 = vmatprep.mubr.msk.bf16.mxu0 %vm1435_vm0, %v8010_v5  ;;  %v8016_v62 = vld [vmem:[%s9743_s0 + $0x1f8] sm:$0xff]  }
  0xf0   :  { %v4433_v18 = vsel %vm3921_vm2, %v3665_v58, %v4177_v12  ;;  %v7066_v20 = vpack.c.bf16 %v4556_v17, %v4555_v51  ;;  %v4561_v21 = vsel %vm4049_vm3, %v3793_v0, %v4305_v14  ;;  %v3666_v23 = vadd.f32 %v7642_v2, %v8484_v47  ;;  %7879 = vmatprep.mubr.msk.bf16.mxu1 %vm1435_vm0, %v8011_v6  ;;  %v8017_v4 = vld [vmem:[%s9743_s0 + $0x3f8] sm:$0xff]  }
  0xf1   :  { %v4431_v22 = vsel %vm3919_vm4, %v3663_v1, %v4175_v15  ;;  %7374 = vst [vmem:[%s9745_s3 + $0x10] sm:$0xff] %v6746_v16   ;;  %vm4047_vm5 = vcmp.gt.f32.partialorder %v3791_v19, 0.0  ;;  %v4303_v25 = vmul.f32 0.01, %v3791_v19  ;;  %v3794_v26 = vadd.f32 %v7770_v3, %v8484_v47  ;;  %v7645_v28 = vpop.f32.mrb[12].mxu0  ;;  %v7773_v29 = vpop.f32.mrb[12].mxu1 }
  0xf2   :  { %v3664_v27 = vadd.f32 %v8484_v47, %v1889_v9  ;;  %7438 = vst [vmem:[%s9745_s3 + $0x210] sm:$0xff] %v7066_v20   ;;  %vm3922_vm6 = vcmp.gt.f32.partialorder %v3666_v23, 0.0  ;;  %v4178_v31 = vmul.f32 0.01, %v3666_v23  ;;  %v3792_v32 = vadd.f32 %v8484_v47, %v2401_v10  ;;  %v1902_v34 = vpop.f32.mrb[13].mxu0  ;;  %v2414_v35 = vpop.f32.mrb[13].mxu1 }
  0xf3   :  { %v3669_v33 = vadd.f32 %v7645_v28, %v8484_v47  ;;  %v4559_v38 = vsel %vm4047_vm5, %v3791_v19, %v4303_v25  ;;  %vm4050_vm7 = vcmp.gt.f32.partialorder %v3794_v26, 0.0  ;;  %v4306_v39 = vmul.f32 0.01, %v3794_v26  ;;  %v7646_v40 = vpop.f32.mrb[14].mxu0  ;;  %v7774_v41 = vpop.f32.mrb[14].mxu1 }
  0xf4   :  { %vm3920_vm8 = vcmp.gt.f32.partialorder %v3664_v27, 0.0  ;;  %v4434_v42 = vsel %vm3922_vm6, %v3666_v23, %v4178_v31  ;;  %v4176_v43 = vmul.f32 0.01, %v3664_v27  ;;  %vm4048_vm9 = vcmp.gt.f32.partialorder %v3792_v32, 0.0  ;;  %v1905_v45 = vpop.f32.mrb[15].mxu0  ;;  %v2417_v50 = vpop.f32.mrb[15].mxu1 }
  0xf5   :  { %v4304_v44 = vmul.f32 0.01, %v3792_v32  ;;  %v6761_v46 = vpack.c.bf16 %v4434_v42, %v4433_v18  ;;  %v4562_v48 = vsel %vm4050_vm7, %v3794_v26, %v4306_v39  ;;  %vm3925_vm10 = vcmp.gt.f32.partialorder %v3669_v33, 0.0 }
  0xf6   :  { %v4181_v49 = vmul.f32 0.01, %v3669_v33  ;;  %v7081_v51 = vpack.c.bf16 %v4562_v48, %v4561_v21  ;;  %v4432_v52 = vsel %vm3920_vm8, %v3664_v27, %v4176_v43  ;;  %v3797_v54 = vadd.f32 %v7773_v29, %v8484_v47  ;;  %7752 = vmatmul.mubr.msk.bf16.gmra.mrb[120].mxu0 %vm1435_vm0, %v8012_v24 }
  0xf7   :  { %v4560_v53 = vsel %vm4048_vm9, %v3792_v32, %v4304_v44  ;;  %7377 = vst [vmem:[%s9745_s3 + $0x28] sm:$0xff] %v6761_v46   ;;  %v6756_v55 = vpack.c.bf16 %v4432_v52, %v4431_v22  ;;  %v3667_v58 = vadd.f32 %v8484_v47, %v1902_v34  ;;  %7880 = vmatmul.mubr.msk.bf16.gmra.mrb[120].mxu1 %vm1435_vm0, %v8013_v30 }
  0xf8   :  { %v7076_v56 = vpack.c.bf16 %v4560_v53, %v4559_v38  ;;  %v4437_v57 = vsel %vm3925_vm10, %v3669_v33, %v4181_v49  ;;  %7441 = vst [vmem:[%s9745_s3 + $0x228] sm:$0xff] %v7081_v51   ;;  %vm4053_vm11 = vcmp.gt.f32.partialorder %v3797_v54, 0.0  ;;  %v4309_v59 = vmul.f32 0.01, %v3797_v54  ;;  %7755 = vmatprep.mubr.msk.bf16.mxu0 %vm1435_vm0, %v8014_v36  ;;  %7883 = vmatprep.mubr.msk.bf16.mxu1 %vm1435_vm0, %v8015_v37 }
  0xf9   :  { %v3795_v60 = vadd.f32 %v8484_v47, %v2414_v35  ;;  %v3670_v61 = vadd.f32 %v7646_v40, %v8484_v47  ;;  %7376 = vst [vmem:[%s9745_s3 + $0x20] sm:$0xff] %v6756_v55   ;;  %vm3923_vm12 = vcmp.gt.f32.partialorder %v3667_v58, 0.0  ;;  %v4179_v63 = vmul.f32 0.01, %v3667_v58  ;;  %v7649_v2 = vpop.f32.mrb[16].mxu0  ;;  %v7777_v3 = vpop.f32.mrb[16].mxu1 }
  0xfa   :  { %7440 = vst [vmem:[%s9745_s3 + $0x220] sm:$0xff] %v7076_v56   ;;  %v3798_v0 = vadd.f32 %v7774_v41, %v8484_v47  ;;  %v3668_v1 = vadd.f32 %v8484_v47, %v1905_v45  ;;  %v4565_v5 = vsel %vm4053_vm11, %v3797_v54, %v4309_v59  ;;  %v1918_v7 = vpop.f32.mrb[17].mxu0  ;;  %v2430_v8 = vpop.f32.mrb[17].mxu1  ;;  %v3796_v15 = vadd.f32 %v8484_v47, %v2417_v50 }
  0xfb   :  { %vm4051_vm13 = vcmp.gt.f32.partialorder %v3795_v60, 0.0  ;;  %v4307_v6 = vmul.f32 0.01, %v3795_v60  ;;  %vm3926_vm14 = vcmp.gt.f32.partialorder %v3670_v61, 0.0  ;;  %v4435_v9 = vsel %vm3923_vm12, %v3667_v58, %v4179_v63  ;;  %v7650_v12 = vpop.f32.mrb[18].mxu0  ;;  %v7778_v16 = vpop.f32.mrb[18].mxu1 }
  0xfc   :  { %v4182_v10 = vmul.f32 0.01, %v3670_v61  ;;  %vm4054_vm15 = vcmp.gt.f32.partialorder %v3798_v0, 0.0  ;;  %v4310_v11 = vmul.f32 0.01, %v3798_v0  ;;  %vm3924_vm1 = vcmp.gt.f32.partialorder %v3668_v1, 0.0 }
  0xfd   :  { %v4563_v13 = vsel %vm4051_vm13, %v3795_v60, %v4307_v6  ;;  %v4180_v14 = vmul.f32 0.01, %v3668_v1  ;;  %v1921_v17 = vpop.f32.mrb[19].mxu0  ;;  %v3673_v20 = vadd.f32 %v7649_v2, %v8484_v47  ;;  %v3801_v21 = vadd.f32 %v7777_v3, %v8484_v47  ;;  %v2433_v22 = vpop.f32.mrb[19].mxu1 }
  0xfe   :  { %v4438_v18 = vsel %vm3926_vm14, %v3670_v61, %v4182_v10  ;;  %v4566_v19 = vsel %vm4054_vm15, %v3798_v0, %v4310_v11  ;;  %vm4052_vm2 = vcmp.gt.f32.partialorder %v3796_v15, 0.0  ;;  %7756 = vmatmul.mubr.msk.bf16.gmra.mrb[124].mxu0 %vm1435_vm0, %v8016_v62  ;;  %v4308_v27 = vmul.f32 0.01, %v3796_v15 }
  0xff   :  { %v6771_v23 = vpack.c.bf16 %v4438_v18, %v4437_v57  ;;  %v7091_v24 = vpack.c.bf16 %v4566_v19, %v4565_v5  ;;  %v4436_v25 = vsel %vm3924_vm1, %v3668_v1, %v4180_v14  ;;  %vm3929_vm3 = vcmp.gt.f32.partialorder %v3673_v20, 0.0  ;;  %7884 = vmatmul.mubr.msk.bf16.gmra.mrb[124].mxu1 %vm1435_vm0, %v8017_v4 }
 0x100   :  { %v6766_v26 = vpack.c.bf16 %v4436_v25, %v4435_v9  ;;  %v4185_v28 = vmul.f32 0.01, %v3673_v20  ;;  %vm4057_vm4 = vcmp.gt.f32.partialorder %v3801_v21, 0.0  ;;  %v4313_v29 = vmul.f32 0.01, %v3801_v21 }
 0x101   :  { %7379 = vst [vmem:[%s9745_s3 + $0x38] sm:$0xff] %v6771_v23   ;;  %7443 = vst [vmem:[%s9745_s3 + $0x238] sm:$0xff] %v7091_v24   ;;  %v3671_v30 = vadd.f32 %v8484_v47, %v1918_v7  ;;  %v3799_v31 = vadd.f32 %v8484_v47, %v2430_v8  ;;  %v4564_v32 = vsel %vm4052_vm2, %v3796_v15, %v4308_v27  ;;  %v7653_v36 = vpop.f32.mrb[20].mxu0  ;;  %v7781_v37 = vpop.f32.mrb[20].mxu1 }
 0x102   :  { %7378 = vst [vmem:[%s9745_s3 + $0x30] sm:$0xff] %v6766_v26   ;;  %v4441_v33 = vsel %vm3929_vm3, %v3673_v20, %v4185_v28  ;;  %v3674_v34 = vadd.f32 %v7650_v12, %v8484_v47  ;;  %v3802_v35 = vadd.f32 %v7778_v16, %v8484_v47  ;;  %v7086_v38 = vpack.c.bf16 %v4564_v32, %v4563_v13  ;;  %v1934_v41 = vpop.f32.mrb[21].mxu0  ;;  %v2446_v42 = vpop.f32.mrb[21].mxu1 }
 0x103   :  { %v4569_v39 = vsel %vm4057_vm4, %v3801_v21, %v4313_v29  ;;  %vm3927_vm0 = vcmp.gt.f32.partialorder %v3671_v30, 0.0  ;;  %v4183_v40 = vmul.f32 0.01, %v3671_v30  ;;  %vm4055_vm5 = vcmp.gt.f32.partialorder %v3799_v31, 0.0  ;;  %v7654_v49 = vpop.f32.mrb[22].mxu0  ;;  %v7782_v50 = vpop.f32.mrb[22].mxu1 }
 0x104   :  { %v4311_v43 = vmul.f32 0.01, %v3799_v31  ;;  %vm3930_vm6 = vcmp.gt.f32.partialorder %v3674_v34, 0.0  ;;  %v4186_v44 = vmul.f32 0.01, %v3674_v34  ;;  %7442 = vst [vmem:[%s9745_s3 + $0x230] sm:$0xff] %v7086_v38   ;;  %v3672_v48 = vadd.f32 %v8484_v47, %v1921_v17 }
 0x105   :  { %v4439_v45 = vsel %vm3927_vm0, %v3671_v30, %v4183_v40  ;;  %vm4058_vm7 = vcmp.gt.f32.partialorder %v3802_v35, 0.0  ;;  %v4314_v46 = vmul.f32 0.01, %v3802_v35  ;;  %v3800_v53 = vadd.f32 %v8484_v47, %v2433_v22  ;;  %v1937_v55 = vpop.f32.mrb[23].mxu0  ;;  %v2449_v56 = vpop.f32.mrb[23].mxu1 }
 0x106   :  { %v4567_v51 = vsel %vm4055_vm5, %v3799_v31, %v4311_v43  ;;  %v4442_v52 = vsel %vm3930_vm6, %v3674_v34, %v4186_v44  ;;  %v3677_v54 = vadd.f32 %v7653_v36, %v8484_v47  ;;  %vm3928_vm8 = vcmp.gt.f32.partialorder %v3672_v48, 0.0 }
 0x107   :  { %v6781_v57 = vpack.c.bf16 %v4442_v52, %v4441_v33  ;;  %v4570_v58 = vsel %vm4058_vm7, %v3802_v35, %v4314_v46  ;;  %v4184_v59 = vmul.f32 0.01, %v3672_v48  ;;  %vm4056_vm9 = vcmp.gt.f32.partialorder %v3800_v53, 0.0 }
 0x108   :  { %v7101_v60 = vpack.c.bf16 %v4570_v58, %v4569_v39  ;;  %v4312_v61 = vmul.f32 0.01, %v3800_v53  ;;  %vm3933_vm10 = vcmp.gt.f32.partialorder %v3677_v54, 0.0  ;;  %v4189_v63 = vmul.f32 0.01, %v3677_v54 }
 0x109   :  { %7381 = vst [vmem:[%s9745_s3 + $0x48] sm:$0xff] %v6781_v57   ;;  %v4440_v62 = vsel %vm3928_vm8, %v3672_v48, %v4184_v59  ;;  %v3805_v0 = vadd.f32 %v7781_v37, %v8484_v47  ;;  %v3675_v1 = vadd.f32 %v8484_v47, %v1934_v41  ;;  %v3803_v4 = vadd.f32 %v8484_v47, %v2446_v42  ;;  %v7657_v6 = vpop.f32.mrb[24].mxu0  ;;  %v7785_v7 = vpop.f32.mrb[24].mxu1 }
 0x10a   :  { %7445 = vst [vmem:[%s9745_s3 + $0x248] sm:$0xff] %v7101_v60   ;;  %v6776_v2 = vpack.c.bf16 %v4440_v62, %v4439_v45  ;;  %v4568_v3 = vsel %vm4056_vm9, %v3800_v53, %v4312_v61  ;;  %v3678_v5 = vadd.f32 %v7654_v49, %v8484_v47  ;;  %v4445_v9 = vsel %vm3933_vm10, %v3677_v54, %v4189_v63  ;;  %v1950_v11 = vpop.f32.mrb[25].mxu0  ;;  %v2462_v12 = vpop.f32.mrb[25].mxu1 }
 0x10b   :  { %v7096_v8 = vpack.c.bf16 %v4568_v3, %v4567_v51  ;;  %vm4061_vm11 = vcmp.gt.f32.partialorder %v3805_v0, 0.0  ;;  %v4317_v10 = vmul.f32 0.01, %v3805_v0  ;;  %vm3931_vm12 = vcmp.gt.f32.partialorder %v3675_v1, 0.0  ;;  %v7658_v18 = vpop.f32.mrb[26].mxu0  ;;  %v7786_v19 = vpop.f32.mrb[26].mxu1 }
 0x10c   :  { %7380 = vst [vmem:[%s9745_s3 + $0x40] sm:$0xff] %v6776_v2   ;;  %v4187_v13 = vmul.f32 0.01, %v3675_v1  ;;  %vm4059_vm13 = vcmp.gt.f32.partialorder %v3803_v4, 0.0  ;;  %v4315_v14 = vmul.f32 0.01, %v3803_v4  ;;  %v3806_v17 = vadd.f32 %v7782_v50, %v8484_v47 }
 0x10d   :  { %7444 = vst [vmem:[%s9745_s3 + $0x240] sm:$0xff] %v7096_v8   ;;  %v4573_v15 = vsel %vm4061_vm11, %v3805_v0, %v4317_v10  ;;  %vm3934_vm14 = vcmp.gt.f32.partialorder %v3678_v5, 0.0  ;;  %v4190_v16 = vmul.f32 0.01, %v3678_v5  ;;  %v3676_v22 = vadd.f32 %v8484_v47, %v1937_v55  ;;  %v1953_v24 = vpop.f32.mrb[27].mxu0  ;;  %v2465_v25 = vpop.f32.mrb[27].mxu1 }
 0x10e   :  { %v4443_v20 = vsel %vm3931_vm12, %v3675_v1, %v4187_v13  ;;  %v4571_v21 = vsel %vm4059_vm13, %v3803_v4, %v4315_v14  ;;  %v3804_v23 = vadd.f32 %v8484_v47, %v2449_v56  ;;  %vm4062_vm15 = vcmp.gt.f32.partialorder %v3806_v17, 0.0 }
 0x10f   :  { %v4446_v26 = vsel %vm3934_vm14, %v3678_v5, %v4190_v16  ;;  %v4318_v27 = vmul.f32 0.01, %v3806_v17  ;;  %v3681_v28 = vadd.f32 %v7657_v6, %v8484_v47  ;;  %vm3932_vm1 = vcmp.gt.f32.partialorder %v3676_v22, 0.0 }
 0x110   :  { %v6791_v29 = vpack.c.bf16 %v4446_v26, %v4445_v9  ;;  %v4188_v30 = vmul.f32 0.01, %v3676_v22  ;;  %vm4060_vm2 = vcmp.gt.f32.partialorder %v3804_v23, 0.0  ;;  %v4316_v32 = vmul.f32 0.01, %v3804_v23 }
 0x111   :  { %v4574_v31 = vsel %vm4062_vm15, %v3806_v17, %v4318_v27  ;;  %vm3937_vm3 = vcmp.gt.f32.partialorder %v3681_v28, 0.0  ;;  %v4193_v33 = vmul.f32 0.01, %v3681_v28  ;;  %v3809_v36 = vadd.f32 %v7785_v7, %v8484_v47  ;;  %v7661_v38 = vpop.f32.mrb[28].mxu0  ;;  %v7789_v39 = vpop.f32.mrb[28].mxu1 }
 0x112   :  { %7383 = vst [vmem:[%s9745_s3 + $0x58] sm:$0xff] %v6791_v29   ;;  %v7111_v34 = vpack.c.bf16 %v4574_v31, %v4573_v15  ;;  %v4444_v35 = vsel %vm3932_vm1, %v3676_v22, %v4188_v30  ;;  %v3679_v37 = vadd.f32 %v8484_v47, %v1950_v11  ;;  %v4572_v41 = vsel %vm4060_vm2, %v3804_v23, %v4316_v32  ;;  %v1966_v44 = vpop.f32.mrb[29].mxu0  ;;  %v2478_v45 = vpop.f32.mrb[29].mxu1 }
 0x113   :  { %v6786_v40 = vpack.c.bf16 %v4444_v35, %v4443_v20  ;;  %v4449_v42 = vsel %vm3937_vm3, %v3681_v28, %v4193_v33  ;;  %v3807_v43 = vadd.f32 %v8484_v47, %v2462_v12  ;;  %v7106_v46 = vpack.c.bf16 %v4572_v41, %v4571_v21  ;;  %v7662_v49 = vpop.f32.mrb[30].mxu0  ;;  %v7790_v50 = vpop.f32.mrb[30].mxu1 }
 0x114   :  { %7447 = vst [vmem:[%s9745_s3 + $0x258] sm:$0xff] %v7111_v34   ;;  %vm4065_vm4 = vcmp.gt.f32.partialorder %v3809_v36, 0.0  ;;  %v4321_v48 = vmul.f32 0.01, %v3809_v36  ;;  %vm3935_vm0 = vcmp.gt.f32.partialorder %v3679_v37, 0.0  ;;  %v3682_v53 = vadd.f32 %v7658_v18, %v8484_v47  ;;  %v1969_v54 = vpop.f32.mrb[31].mxu0 }
 0x115   :  { %7382 = vst [vmem:[%s9745_s3 + $0x50] sm:$0xff] %v6786_v40   ;;  %v4191_v51 = vmul.f32 0.01, %v3679_v37  ;;  %vm4063_vm5 = vcmp.gt.f32.partialorder %v3807_v43, 0.0  ;;  %v4319_v52 = vmul.f32 0.01, %v3807_v43  ;;  %v3810_v56 = vadd.f32 %v7786_v19, %v8484_v47 }
 0x116   :  { %7446 = vst [vmem:[%s9745_s3 + $0x250] sm:$0xff] %v7106_v46   ;;  %v4577_v55 = vsel %vm4065_vm4, %v3809_v36, %v4321_v48  ;;  %v3680_v57 = vadd.f32 %v8484_v47, %v1953_v24  ;;  %v3808_v58 = vadd.f32 %v8484_v47, %v2465_v25  ;;  %v2481_v59 = vpop.f32.mrb[31].mxu1  ;;  %vm3938_vm6 = vcmp.gt.f32.partialorder %v3682_v53, 0.0 }
 0x117   :  { %v4447_v60 = vsel %vm3935_vm0, %v3679_v37, %v4191_v51  ;;  %v4575_v61 = vsel %vm4063_vm5, %v3807_v43, %v4319_v52  ;;  %v4194_v62 = vmul.f32 0.01, %v3682_v53  ;;  %vm4066_vm7 = vcmp.gt.f32.partialorder %v3810_v56, 0.0 }
 0x118   :  { %v4322_v63 = vmul.f32 0.01, %v3810_v56  ;;  %vm3936_vm8 = vcmp.gt.f32.partialorder %v3680_v57, 0.0  ;;  %v4192_v0 = vmul.f32 0.01, %v3680_v57  ;;  %vm4064_vm9 = vcmp.gt.f32.partialorder %v3808_v58, 0.0 }
 0x119   :  { %v4450_v1 = vsel %vm3938_vm6, %v3682_v53, %v4194_v62  ;;  %v4320_v2 = vmul.f32 0.01, %v3808_v58  ;;  %v3685_v3 = vadd.f32 %v7661_v38, %v8484_v47  ;;  %v3813_v7 = vadd.f32 %v7789_v39, %v8484_v47  ;;  %v7665_v8 = vpop.f32.mrb[32].mxu0  ;;  %v7793_v9 = vpop.f32.mrb[32].mxu1 }
 0x11a   :  { %v6801_v4 = vpack.c.bf16 %v4450_v1, %v4449_v42  ;;  %v4578_v5 = vsel %vm4066_vm7, %v3810_v56, %v4322_v63  ;;  %v4448_v6 = vsel %vm3936_vm8, %v3680_v57, %v4192_v0  ;;  %v1982_v13 = vpop.f32.mrb[33].mxu0  ;;  %v2494_v14 = vpop.f32.mrb[33].mxu1  ;;  %v3683_v19 = vadd.f32 %v8484_v47, %v1966_v44 }
 0x11b   :  { %v7121_v10 = vpack.c.bf16 %v4578_v5, %v4577_v55  ;;  %v6796_v11 = vpack.c.bf16 %v4448_v6, %v4447_v60  ;;  %v4576_v12 = vsel %vm4064_vm9, %v3808_v58, %v4320_v2  ;;  %vm3941_vm10 = vcmp.gt.f32.partialorder %v3685_v3, 0.0  ;;  %v7666_v18 = vpop.f32.mrb[34].mxu0  ;;  %v7794_v23 = vpop.f32.mrb[34].mxu1 }
 0x11c   :  { %7385 = vst [vmem:[%s9745_s3 + $0x68] sm:$0xff] %v6801_v4   ;;  %v7116_v15 = vpack.c.bf16 %v4576_v12, %v4575_v61  ;;  %v4197_v16 = vmul.f32 0.01, %v3685_v3  ;;  %vm4069_vm11 = vcmp.gt.f32.partialorder %v3813_v7, 0.0  ;;  %v4325_v17 = vmul.f32 0.01, %v3813_v7 }
 0x11d   :  { %7449 = vst [vmem:[%s9745_s3 + $0x268] sm:$0xff] %v7121_v10   ;;  %7384 = vst [vmem:[%s9745_s3 + $0x60] sm:$0xff] %v6796_v11   ;;  %v3811_v20 = vadd.f32 %v8484_v47, %v2478_v45  ;;  %v3686_v21 = vadd.f32 %v7662_v49, %v8484_v47  ;;  %v3814_v22 = vadd.f32 %v7790_v50, %v8484_v47  ;;  %v1985_v24 = vpop.f32.mrb[35].mxu0  ;;  %v2497_v29 = vpop.f32.mrb[35].mxu1  ;;  %vm3939_vm12 = vcmp.gt.f32.partialorder %v3683_v19, 0.0 }
 0x11e   :  { %7448 = vst [vmem:[%s9745_s3 + $0x260] sm:$0xff] %v7116_v15   ;;  %v4453_v25 = vsel %vm3941_vm10, %v3685_v3, %v4197_v16  ;;  %v4581_v26 = vsel %vm4069_vm11, %v3813_v7, %v4325_v17  ;;  %v3684_v27 = vadd.f32 %v8484_v47, %v1969_v54  ;;  %v3812_v28 = vadd.f32 %v8484_v47, %v2481_v59 }
 0x11f   :  { %v4195_v30 = vmul.f32 0.01, %v3683_v19  ;;  %vm4067_vm13 = vcmp.gt.f32.partialorder %v3811_v20, 0.0  ;;  %v4323_v31 = vmul.f32 0.01, %v3811_v20  ;;  %vm3942_vm14 = vcmp.gt.f32.partialorder %v3686_v21, 0.0 }
 0x120   :  { %v4198_v32 = vmul.f32 0.01, %v3686_v21  ;;  %vm4070_vm15 = vcmp.gt.f32.partialorder %v3814_v22, 0.0  ;;  %v4326_v33 = vmul.f32 0.01, %v3814_v22  ;;  %vm3940_vm1 = vcmp.gt.f32.partialorder %v3684_v27, 0.0 }
 0x121   :  { %v4451_v34 = vsel %vm3939_vm12, %v3683_v19, %v4195_v30  ;;  %v4579_v35 = vsel %vm4067_vm13, %v3811_v20, %v4323_v31  ;;  %v4196_v36 = vmul.f32 0.01, %v3684_v27  ;;  %vm4068_vm2 = vcmp.gt.f32.partialorder %v3812_v28, 0.0  ;;  %v7669_v40 = vpop.f32.mrb[36].mxu0  ;;  %v7797_v41 = vpop.f32.mrb[36].mxu1 }
 0x122   :  { %v4454_v37 = vsel %vm3942_vm14, %v3686_v21, %v4198_v32  ;;  %v4582_v38 = vsel %vm4070_vm15, %v3814_v22, %v4326_v33  ;;  %v4324_v39 = vmul.f32 0.01, %v3812_v28  ;;  %v3689_v45 = vadd.f32 %v7665_v8, %v8484_v47  ;;  %v8714_v46 = vpop.f32.mrb[37].mxu0  ;;  %v8716_v48 = vpop.f32.mrb[37].mxu1 }
 0x123   :  { %v6811_v42 = vpack.c.bf16 %v4454_v37, %v4453_v25  ;;  %v7131_v43 = vpack.c.bf16 %v4582_v38, %v4581_v26  ;;  %v4452_v44 = vsel %vm3940_vm1, %v3684_v27, %v4196_v36  ;;  %v3817_v51 = vadd.f32 %v7793_v9, %v8484_v47  ;;  %v7670_v53 = vpop.f32.mrb[38].mxu0  ;;  %v7798_v54 = vpop.f32.mrb[38].mxu1 }
 0x124   :  { %v6806_v49 = vpack.c.bf16 %v4452_v44, %v4451_v34  ;;  %v4580_v50 = vsel %vm4068_vm2, %v3812_v28, %v4324_v39  ;;  %v3687_v52 = vadd.f32 %v8484_v47, %v1982_v13  ;;  %vm3945_vm3 = vcmp.gt.f32.partialorder %v3689_v45, 0.0  ;;  %v2001_v58 = vpop.f32.mrb[39].mxu0  ;;  %v2513_v59 = vpop.f32.mrb[39].mxu1 }
 0x125   :  { %7387 = vst [vmem:[%s9745_s3 + $0x78] sm:$0xff] %v6811_v42   ;;  %7451 = vst [vmem:[%s9745_s3 + $0x278] sm:$0xff] %v7131_v43   ;;  %v7126_v55 = vpack.c.bf16 %v4580_v50, %v4579_v35  ;;  %v4201_v56 = vmul.f32 0.01, %v3689_v45  ;;  %v3815_v57 = vadd.f32 %v8484_v47, %v2494_v14  ;;  %vm4073_vm4 = vcmp.gt.f32.partialorder %v3817_v51, 0.0 }
 0x126   :  { %7386 = vst [vmem:[%s9745_s3 + $0x70] sm:$0xff] %v6806_v49   ;;  %v4329_v60 = vmul.f32 0.01, %v3817_v51  ;;  %vm3943_vm0 = vcmp.gt.f32.partialorder %v3687_v52, 0.0  ;;  %v4199_v61 = vmul.f32 0.01, %v3687_v52  ;;  %v3690_v0 = vadd.f32 %v7666_v18, %v8484_v47 }
 0x127   :  { %7450 = vst [vmem:[%s9745_s3 + $0x270] sm:$0xff] %v7126_v55   ;;  %v4457_v62 = vsel %vm3945_vm3, %v3689_v45, %v4201_v56  ;;  %vm4071_vm5 = vcmp.gt.f32.partialorder %v3815_v57, 0.0  ;;  %v4327_v63 = vmul.f32 0.01, %v3815_v57  ;;  %v3818_v3 = vadd.f32 %v7794_v23, %v8484_v47  ;;  %v8777_v56 = vld [vmem:[%s9744_s2] ss:$0 sm:$0xff] }
 0x128   :  { %v4585_v1 = vsel %vm4073_vm4, %v3817_v51, %v4329_v60  ;;  %v4455_v2 = vsel %vm3943_vm0, %v3687_v52, %v4199_v61  ;;  %v3688_v4 = vadd.f32 %v8484_v47, %v1985_v24  ;;  %vm3946_vm6 = vcmp.gt.f32.partialorder %v3690_v0, 0.0 }
 0x129   :  { %v4583_v5 = vsel %vm4071_vm5, %v3815_v57, %v4327_v63  ;;  %v4202_v6 = vmul.f32 0.01, %v3690_v0  ;;  %v3816_v7 = vadd.f32 %v8484_v47, %v2497_v29  ;;  %vm4074_vm7 = vcmp.gt.f32.partialorder %v3818_v3, 0.0  ;;  %v7673_v13 = vpop.f32.mrb[40].mxu0  ;;  %v7801_v14 = vpop.f32.mrb[40].mxu1 }
 0x12a   :  { %v4330_v8 = vmul.f32 0.01, %v3818_v3  ;;  %vm3944_vm8 = vcmp.gt.f32.partialorder %v3688_v4, 0.0  ;;  %v4200_v9 = vmul.f32 0.01, %v3688_v4  ;;  %v3693_v12 = vadd.f32 %v7669_v40, %v8484_v47  ;;  %v2014_v19 = vpop.f32.mrb[41].mxu0 }
 0x12b   :  { %v4458_v10 = vsel %vm3946_vm6, %v3690_v0, %v4202_v6  ;;  %vm4072_vm9 = vcmp.gt.f32.partialorder %v3816_v7, 0.0  ;;  %v4328_v11 = vmul.f32 0.01, %v3816_v7  ;;  %v3821_v18 = vadd.f32 %v7797_v41, %v8484_v47  ;;  %v8739_v20 = vpop.f32.mrb[41].mxu1  ;;  %v8741_v24 = vpop.f32.mrb[42].mxu0 }
 0x12c   :  { %v6821_v15 = vpack.c.bf16 %v4458_v10, %v4457_v62  ;;  %v4586_v16 = vsel %vm4074_vm7, %v3818_v3, %v4330_v8  ;;  %v4456_v17 = vsel %vm3944_vm8, %v3688_v4, %v4200_v9  ;;  %vm3949_vm10 = vcmp.gt.f32.partialorder %v3693_v12, 0.0  ;;  %v8743_v25 = vpop.f32.mrb[42].mxu1  ;;  %v8748_v29 = vpop.f32.mrb[43].mxu0 }
 0x12d   :  { %v7141_v21 = vpack.c.bf16 %v4586_v16, %v4585_v1  ;;  %v6816_v22 = vpack.c.bf16 %v4456_v17, %v4455_v2  ;;  %v4584_v23 = vsel %vm4072_vm9, %v3816_v7, %v4328_v11  ;;  %v4205_v27 = vmul.f32 0.01, %v3693_v12  ;;  %v8762_v34 = vpop.f32.mrb[43].mxu1 }
 0x12e   :  { %7389 = vst [vmem:[%s9745_s3 + $0x88] sm:$0xff] %v6821_v15   ;;  %v7136_v26 = vpack.c.bf16 %v4584_v23, %v4583_v5  ;;  %vm4077_vm11 = vcmp.gt.f32.partialorder %v3821_v18, 0.0  ;;  %v4333_v28 = vmul.f32 0.01, %v3821_v18  ;;  %v3691_v30 = vadd.f32 %v8484_v47, %v8714_v46 }
 0x12f   :  { %7453 = vst [vmem:[%s9745_s3 + $0x288] sm:$0xff] %v7141_v21   ;;  %7388 = vst [vmem:[%s9745_s3 + $0x80] sm:$0xff] %v6816_v22   ;;  %v3819_v31 = vadd.f32 %v8484_v47, %v8716_v48  ;;  %v3694_v32 = vadd.f32 %v7670_v53, %v8484_v47  ;;  %v3822_v33 = vadd.f32 %v7798_v54, %v8484_v47 }
 0x130   :  { %7452 = vst [vmem:[%s9745_s3 + $0x280] sm:$0xff] %v7136_v26   ;;  %v4461_v35 = vsel %vm3949_vm10, %v3693_v12, %v4205_v27  ;;  %v4589_v36 = vsel %vm4077_vm11, %v3821_v18, %v4333_v28  ;;  %v3692_v37 = vadd.f32 %v8484_v47, %v2001_v58  ;;  %v3820_v38 = vadd.f32 %v8484_v47, %v2513_v59 }
 0x131   :  { %vm3947_vm12 = vcmp.gt.f32.partialorder %v3691_v30, 0.0  ;;  %v4203_v39 = vmul.f32 0.01, %v3691_v30  ;;  %vm4075_vm13 = vcmp.gt.f32.partialorder %v3819_v31, 0.0  ;;  %v4331_v40 = vmul.f32 0.01, %v3819_v31 }
 0x132   :  { %vm3950_vm14 = vcmp.gt.f32.partialorder %v3694_v32, 0.0  ;;  %v4206_v41 = vmul.f32 0.01, %v3694_v32  ;;  %vm4078_vm15 = vcmp.gt.f32.partialorder %v3822_v33, 0.0  ;;  %v4334_v42 = vmul.f32 0.01, %v3822_v33 }
 0x133   :  { %v4459_v43 = vsel %vm3947_vm12, %v3691_v30, %v4203_v39  ;;  %v4587_v44 = vsel %vm4075_vm13, %v3819_v31, %v4331_v40  ;;  %vm3948_vm1 = vcmp.gt.f32.partialorder %v3692_v37, 0.0  ;;  %v4204_v45 = vmul.f32 0.01, %v3692_v37  ;;  %v7677_v46 = vpop.f32.mrb[44].mxu0  ;;  %v7805_v48 = vpop.f32.mrb[44].mxu1 }
 0x134   :  { %v4462_v49 = vsel %vm3950_vm14, %v3694_v32, %v4206_v41  ;;  %v4590_v50 = vsel %vm4078_vm15, %v3822_v33, %v4334_v42  ;;  %vm4076_vm2 = vcmp.gt.f32.partialorder %v3820_v38, 0.0  ;;  %v4332_v51 = vmul.f32 0.01, %v3820_v38  ;;  %v8770_v52 = vpop.f32.mrb[45].mxu0  ;;  %v8772_v47 = vpop.f32.mrb[45].mxu1 }
 0x135   :  { %v6831_v53 = vpack.c.bf16 %v4462_v49, %v4461_v35  ;;  %v7151_v54 = vpack.c.bf16 %v4590_v50, %v4589_v36  ;;  %v4460_v55 = vsel %vm3948_vm1, %v3692_v37, %v4204_v45  ;;  %v3697_v57 = vadd.f32 %v8777_v56, %v7673_v13  ;;  %v8780_v58 = vpop.f32.mrb[46].mxu0  ;;  %v8782_v59 = vpop.f32.mrb[46].mxu1 }
 0x136   :  { %v6826_v60 = vpack.c.bf16 %v4460_v55, %v4459_v43  ;;  %v4588_v61 = vsel %vm4076_vm2, %v3820_v38, %v4332_v51  ;;  %v3825_v62 = vadd.f32 %v8777_v56, %v7801_v14  ;;  %v3695_v63 = vadd.f32 %v8777_v56, %v2014_v19  ;;  %v8786_v0 = vpop.f32.mrb[47].mxu0  ;;  %v8788_v1 = vpop.f32.mrb[47].mxu1 }
 0x137   :  { %7391 = vst [vmem:[%s9745_s3 + $0x98] sm:$0xff] %v6831_v53   ;;  %7455 = vst [vmem:[%s9745_s3 + $0x298] sm:$0xff] %v7151_v54   ;;  %v7146_v2 = vpack.c.bf16 %v4588_v61, %v4587_v44  ;;  %vm3953_vm3 = vcmp.gt.f32.partialorder %v3697_v57, 0.0  ;;  %v4209_v3 = vmul.f32 0.01, %v3697_v57  ;;  %v3823_v4 = vadd.f32 %v8777_v56, %v8739_v20 }
 0x138   :  { %7390 = vst [vmem:[%s9745_s3 + $0x90] sm:$0xff] %v6826_v60   ;;  %vm4081_vm4 = vcmp.gt.f32.partialorder %v3825_v62, 0.0  ;;  %v4337_v5 = vmul.f32 0.01, %v3825_v62  ;;  %vm3951_vm0 = vcmp.gt.f32.partialorder %v3695_v63, 0.0  ;;  %v3698_v9 = vadd.f32 %v8777_v56, %v8741_v24 }
 0x139   :  { %v4207_v6 = vmul.f32 0.01, %v3695_v63  ;;  %7454 = vst [vmem:[%s9745_s3 + $0x290] sm:$0xff] %v7146_v2   ;;  %v4465_v7 = vsel %vm3953_vm3, %v3697_v57, %v4209_v3  ;;  %vm4079_vm5 = vcmp.gt.f32.partialorder %v3823_v4, 0.0  ;;  %v4335_v8 = vmul.f32 0.01, %v3823_v4 }
 0x13a   :  { %v4593_v10 = vsel %vm4081_vm4, %v3825_v62, %v4337_v5  ;;  %v3826_v12 = vadd.f32 %v8777_v56, %v8743_v25  ;;  %v3696_v13 = vadd.f32 %v8777_v56, %v8748_v29  ;;  %v8810_v14 = vpop.f32.mrb[48].mxu0  ;;  %v8812_v15 = vpop.f32.mrb[48].mxu1  ;;  %vm3954_vm6 = vcmp.gt.f32.partialorder %v3698_v9, 0.0 }
 0x13b   :  { %v4463_v11 = vsel %vm3951_vm0, %v3695_v63, %v4207_v6  ;;  %v4591_v16 = vsel %vm4079_vm5, %v3823_v4, %v4335_v8  ;;  %v4210_v17 = vmul.f32 0.01, %v3698_v9  ;;  %v3824_v18 = vadd.f32 %v8777_v56, %v8762_v34  ;;  %v8816_v19 = vpop.f32.mrb[49].mxu0  ;;  %v8818_v20 = vpop.f32.mrb[49].mxu1 }
 0x13c   :  { %vm4082_vm7 = vcmp.gt.f32.partialorder %v3826_v12, 0.0  ;;  %v4338_v21 = vmul.f32 0.01, %v3826_v12  ;;  %vm3952_vm8 = vcmp.gt.f32.partialorder %v3696_v13, 0.0  ;;  %v4208_v22 = vmul.f32 0.01, %v3696_v13 }
 0x13d   :  { %v4466_v23 = vsel %vm3954_vm6, %v3698_v9, %v4210_v17  ;;  %vm4080_vm9 = vcmp.gt.f32.partialorder %v3824_v18, 0.0  ;;  %v4336_v24 = vmul.f32 0.01, %v3824_v18  ;;  %v3701_v25 = vadd.f32 %v8777_v56, %v7677_v46  ;;  %v8821_v26 = vpop.f32.mrb[50].mxu0  ;;  %v8823_v27 = vpop.f32.mrb[50].mxu1 }
 0x13e   :  { %v6841_v28 = vpack.c.bf16 %v4466_v23, %v4465_v7  ;;  %v4594_v29 = vsel %vm4082_vm7, %v3826_v12, %v4338_v21  ;;  %v4464_v30 = vsel %vm3952_vm8, %v3696_v13, %v4208_v22  ;;  %v3829_v31 = vadd.f32 %v8777_v56, %v7805_v48  ;;  %v8826_v32 = vpop.f32.mrb[51].mxu0  ;;  %v8828_v33 = vpop.f32.mrb[51].mxu1 }
 0x13f   :  { %v7161_v34 = vpack.c.bf16 %v4594_v29, %v4593_v10  ;;  %v6836_v35 = vpack.c.bf16 %v4464_v30, %v4463_v11  ;;  %v4592_v36 = vsel %vm4080_vm9, %v3824_v18, %v4336_v24  ;;  %vm3957_vm10 = vcmp.gt.f32.partialorder %v3701_v25, 0.0 }
 0x140   :  { %7393 = vst [vmem:[%s9745_s3 + $0xa8] sm:$0xff] %v6841_v28   ;;  %v7156_v37 = vpack.c.bf16 %v4592_v36, %v4591_v16  ;;  %v4213_v38 = vmul.f32 0.01, %v3701_v25  ;;  %vm4085_vm11 = vcmp.gt.f32.partialorder %v3829_v31, 0.0  ;;  %v4341_v39 = vmul.f32 0.01, %v3829_v31 }
 0x141   :  { %7457 = vst [vmem:[%s9745_s3 + $0x2a8] sm:$0xff] %v7161_v34   ;;  %7392 = vst [vmem:[%s9745_s3 + $0xa0] sm:$0xff] %v6836_v35   ;;  %v3699_v40 = vadd.f32 %v8777_v56, %v8770_v52  ;;  %v3827_v41 = vadd.f32 %v8777_v56, %v8772_v47  ;;  %v3702_v42 = vadd.f32 %v8777_v56, %v8780_v58  ;;  %v8854_v49 = vpop.f32.mrb[52].mxu0  ;;  %v8856_v50 = vpop.f32.mrb[52].mxu1 }
 0x142   :  { %v3830_v43 = vadd.f32 %v8777_v56, %v8782_v59  ;;  %7456 = vst [vmem:[%s9745_s3 + $0x2a0] sm:$0xff] %v7156_v37   ;;  %v4469_v44 = vsel %vm3957_vm10, %v3701_v25, %v4213_v38  ;;  %v4597_v45 = vsel %vm4085_vm11, %v3829_v31, %v4341_v39  ;;  %v3700_v46 = vadd.f32 %v8777_v56, %v8786_v0  ;;  %v8858_v58 = vpop.f32.mrb[53].mxu0  ;;  %v8860_v59 = vpop.f32.mrb[53].mxu1 }
 0x143   :  { %v3828_v48 = vadd.f32 %v8777_v56, %v8788_v1  ;;  %vm3955_vm12 = vcmp.gt.f32.partialorder %v3699_v40, 0.0  ;;  %v4211_v51 = vmul.f32 0.01, %v3699_v40  ;;  %vm4083_vm13 = vcmp.gt.f32.partialorder %v3827_v41, 0.0  ;;  %v8862_v63 = vpop.f32.mrb[54].mxu0  ;;  %v8864_v0 = vpop.f32.mrb[54].mxu1 }
 0x144   :  { %v4339_v52 = vmul.f32 0.01, %v3827_v41  ;;  %vm3958_vm14 = vcmp.gt.f32.partialorder %v3702_v42, 0.0  ;;  %v4214_v47 = vmul.f32 0.01, %v3702_v42  ;;  %vm4086_vm15 = vcmp.gt.f32.partialorder %v3830_v43, 0.0 }
 0x145   :  { %v4342_v53 = vmul.f32 0.01, %v3830_v43  ;;  %v4467_v54 = vsel %vm3955_vm12, %v3699_v40, %v4211_v51  ;;  %vm3956_vm1 = vcmp.gt.f32.partialorder %v3700_v46, 0.0  ;;  %v4212_v57 = vmul.f32 0.01, %v3700_v46  ;;  %v8868_v5 = vpop.f32.mrb[55].mxu0 }
 0x146   :  { %v4595_v55 = vsel %vm4083_vm13, %v3827_v41, %v4339_v52  ;;  %v4470_v60 = vsel %vm3958_vm14, %v3702_v42, %v4214_v47  ;;  %vm4084_vm2 = vcmp.gt.f32.partialorder %v3828_v48, 0.0  ;;  %v4340_v62 = vmul.f32 0.01, %v3828_v48  ;;  %v8870_v6 = vpop.f32.mrb[55].mxu1 }
 0x147   :  { %v4598_v61 = vsel %vm4086_vm15, %v3830_v43, %v4342_v53  ;;  %v6851_v1 = vpack.c.bf16 %v4470_v60, %v4469_v44  ;;  %v4468_v3 = vsel %vm3956_vm1, %v3700_v46, %v4212_v57  ;;  %v3705_v4 = vadd.f32 %v8777_v56, %v8810_v14 }
 0x148   :  { %v7171_v2 = vpack.c.bf16 %v4598_v61, %v4597_v45  ;;  %v6846_v7 = vpack.c.bf16 %v4468_v3, %v4467_v54  ;;  %v4596_v8 = vsel %vm4084_vm2, %v3828_v48, %v4340_v62  ;;  %v3833_v9 = vadd.f32 %v8777_v56, %v8812_v15 }
 0x149   :  { %v3703_v10 = vadd.f32 %v8777_v56, %v8816_v19  ;;  %7395 = vst [vmem:[%s9745_s3 + $0xb8] sm:$0xff] %v6851_v1   ;;  %v7166_v11 = vpack.c.bf16 %v4596_v8, %v4595_v55  ;;  %vm3961_vm3 = vcmp.gt.f32.partialorder %v3705_v4, 0.0  ;;  %v4217_v12 = vmul.f32 0.01, %v3705_v4  ;;  %v8892_v19 = vpop.f32.mrb[56].mxu0 }
 0x14a   :  { %7459 = vst [vmem:[%s9745_s3 + $0x2b8] sm:$0xff] %v7171_v2   ;;  %v3831_v13 = vadd.f32 %v8777_v56, %v8818_v20  ;;  %7394 = vst [vmem:[%s9745_s3 + $0xb0] sm:$0xff] %v6846_v7   ;;  %vm4089_vm4 = vcmp.gt.f32.partialorder %v3833_v9, 0.0  ;;  %v4345_v14 = vmul.f32 0.01, %v3833_v9  ;;  %v3706_v18 = vadd.f32 %v8777_v56, %v8821_v26  ;;  %v8894_v20 = vpop.f32.mrb[56].mxu1 }
 0x14b   :  { %vm3959_vm0 = vcmp.gt.f32.partialorder %v3703_v10, 0.0  ;;  %v4215_v15 = vmul.f32 0.01, %v3703_v10  ;;  %7458 = vst [vmem:[%s9745_s3 + $0x2b0] sm:$0xff] %v7166_v11   ;;  %v4473_v16 = vsel %vm3961_vm3, %v3705_v4, %v4217_v12  ;;  %v3834_v23 = vadd.f32 %v8777_v56, %v8823_v27  ;;  %v8900_v25 = vpop.f32.mrb[57].mxu0  ;;  %v8902_v28 = vpop.f32.mrb[57].mxu1 }
 0x14c   :  { %vm4087_vm5 = vcmp.gt.f32.partialorder %v3831_v13, 0.0  ;;  %v4343_v17 = vmul.f32 0.01, %v3831_v13  ;;  %v4601_v21 = vsel %vm4089_vm4, %v3833_v9, %v4345_v14  ;;  %v3704_v24 = vadd.f32 %v8777_v56, %v8826_v32  ;;  %v8906_v31 = vpop.f32.mrb[58].mxu0  ;;  %v8908_v34 = vpop.f32.mrb[58].mxu1 }
 0x14d   :  { %v4471_v22 = vsel %vm3959_vm0, %v3703_v10, %v4215_v15  ;;  %vm3962_vm6 = vcmp.gt.f32.partialorder %v3706_v18, 0.0  ;;  %v4218_v30 = vmul.f32 0.01, %v3706_v18  ;;  %v3832_v26 = vadd.f32 %v8777_v56, %v8828_v33  ;;  %v8912_v38 = vpop.f32.mrb[59].mxu0  ;;  %v8914_v39 = vpop.f32.mrb[59].mxu1 }
 0x14e   :  { %v4599_v29 = vsel %vm4087_vm5, %v3831_v13, %v4343_v17  ;;  %vm4090_vm7 = vcmp.gt.f32.partialorder %v3834_v23, 0.0  ;;  %v4346_v35 = vmul.f32 0.01, %v3834_v23  ;;  %vm3960_vm8 = vcmp.gt.f32.partialorder %v3704_v24, 0.0 }
 0x14f   :  { %v4216_v27 = vmul.f32 0.01, %v3704_v24  ;;  %v4474_v36 = vsel %vm3962_vm6, %v3706_v18, %v4218_v30  ;;  %vm4088_vm9 = vcmp.gt.f32.partialorder %v3832_v26, 0.0  ;;  %v4344_v32 = vmul.f32 0.01, %v3832_v26 }
 0x150   :  { %v3709_v37 = vadd.f32 %v8777_v56, %v8854_v49  ;;  %v6861_v40 = vpack.c.bf16 %v4474_v36, %v4473_v16  ;;  %v4602_v33 = vsel %vm4090_vm7, %v3834_v23, %v4346_v35  ;;  %v3837_v42 = vadd.f32 %v8777_v56, %v8856_v50 }
 0x151   :  { %v4472_v41 = vsel %vm3960_vm8, %v3704_v24, %v4216_v27  ;;  %v7181_v43 = vpack.c.bf16 %v4602_v33, %v4601_v21  ;;  %v4600_v45 = vsel %vm4088_vm9, %v3832_v26, %v4344_v32  ;;  %v8921_v51 = vpop.f32.mrb[60].mxu0  ;;  %v3707_v50 = vadd.f32 %v8777_v56, %v8858_v58  ;;  %v8937_v54 = vpop.f32.mrb[60].mxu1 }
 0x152   :  { %v6856_v44 = vpack.c.bf16 %v4472_v41, %v4471_v22  ;;  %vm3965_vm10 = vcmp.gt.f32.partialorder %v3709_v37, 0.0  ;;  %7397 = vst [vmem:[%s9745_s3 + $0xc8] sm:$0xff] %v6861_v40   ;;  %v7176_v46 = vpack.c.bf16 %v4600_v45, %v4599_v29  ;;  %v4221_v48 = vmul.f32 0.01, %v3709_v37  ;;  %v8939_v55 = vpop.f32.mrb[61].mxu0  ;;  %v8949_v61 = vpop.f32.mrb[61].mxu1 }
 0x153   :  { %vm4093_vm11 = vcmp.gt.f32.partialorder %v3837_v42, 0.0  ;;  %v4349_v49 = vmul.f32 0.01, %v3837_v42  ;;  %7461 = vst [vmem:[%s9745_s3 + $0x2c8] sm:$0xff] %v7181_v43   ;;  %v3835_v52 = vadd.f32 %v8777_v56, %v8860_v59  ;;  %v3710_v47 = vadd.f32 %v8777_v56, %v8862_v63  ;;  %v8951_v62 = vpop.f32.mrb[62].mxu0 }
 0x154   :  { %7396 = vst [vmem:[%s9745_s3 + $0xc0] sm:$0xff] %v6856_v44   ;;  %v3838_v53 = vadd.f32 %v8777_v56, %v8864_v0  ;;  %7460 = vst [vmem:[%s9745_s3 + $0x2c0] sm:$0xff] %v7176_v46   ;;  %v4477_v57 = vsel %vm3965_vm10, %v3709_v37, %v4221_v48  ;;  %v3708_v59 = vadd.f32 %v8777_v56, %v8868_v5  ;;  %vm3963_vm12 = vcmp.gt.f32.partialorder %v3707_v50, 0.0  ;;  %v8953_v5 = vpop.f32.mrb[62].mxu1  ;;  %v8955_v8 = vpop.f32.mrb[63].mxu0 }
 0x155   :  { %v4605_v58 = vsel %vm4093_vm11, %v3837_v42, %v4349_v49  ;;  %v3836_v60 = vadd.f32 %v8777_v56, %v8870_v6  ;;  %v4219_v63 = vmul.f32 0.01, %v3707_v50  ;;  %vm4091_vm13 = vcmp.gt.f32.partialorder %v3835_v52, 0.0  ;;  %v8957_v11 = vpop.f32.mrb[63].mxu1 }
 0x156   :  { %v4347_v0 = vmul.f32 0.01, %v3835_v52  ;;  %vm3966_vm14 = vcmp.gt.f32.partialorder %v3710_v47, 0.0  ;;  %v4222_v1 = vmul.f32 0.01, %v3710_v47  ;;  %vm4094_vm15 = vcmp.gt.f32.partialorder %v3838_v53, 0.0 }
 0x157   :  { %v4350_v2 = vmul.f32 0.01, %v3838_v53  ;;  %v4475_v3 = vsel %vm3963_vm12, %v3707_v50, %v4219_v63  ;;  %vm3964_vm1 = vcmp.gt.f32.partialorder %v3708_v59, 0.0  ;;  %v4220_v7 = vmul.f32 0.01, %v3708_v59 }
 0x158   :  { %v4603_v4 = vsel %vm4091_vm13, %v3835_v52, %v4347_v0  ;;  %v4478_v6 = vsel %vm3966_vm14, %v3710_v47, %v4222_v1  ;;  %vm4092_vm2 = vcmp.gt.f32.partialorder %v3836_v60, 0.0  ;;  %v4348_v10 = vmul.f32 0.01, %v3836_v60 }
 0x159   :  { %v4606_v9 = vsel %vm4094_vm15, %v3838_v53, %v4350_v2  ;;  %v6871_v12 = vpack.c.bf16 %v4478_v6, %v4477_v57  ;;  %v4476_v14 = vsel %vm3964_vm1, %v3708_v59, %v4220_v7  ;;  %v3713_v15 = vadd.f32 %v8777_v56, %v8892_v19  ;;  %v8965_v22 = vpop.f32.mrb[64].mxu0  ;;  %v8967_v23 = vpop.f32.mrb[64].mxu1 }
 0x15a   :  { %v7191_v13 = vpack.c.bf16 %v4606_v9, %v4605_v58  ;;  %v6866_v16 = vpack.c.bf16 %v4476_v14, %v4475_v3  ;;  %v4604_v17 = vsel %vm4092_vm2, %v3836_v60, %v4348_v10  ;;  %v3841_v18 = vadd.f32 %v8777_v56, %v8894_v20  ;;  %v8977_v29 = vpop.f32.mrb[65].mxu0 }
 0x15b   :  { %v3711_v21 = vadd.f32 %v8777_v56, %v8900_v25  ;;  %7399 = vst [vmem:[%s9745_s3 + $0xd8] sm:$0xff] %v6871_v12   ;;  %v7186_v19 = vpack.c.bf16 %v4604_v17, %v4603_v4  ;;  %vm3969_vm3 = vcmp.gt.f32.partialorder %v3713_v15, 0.0  ;;  %v4225_v24 = vmul.f32 0.01, %v3713_v15  ;;  %v8979_v25 = vpop.f32.mrb[65].mxu1  ;;  %v8989_v36 = vpop.f32.mrb[66].mxu0 }
 0x15c   :  { %7463 = vst [vmem:[%s9745_s3 + $0x2d8] sm:$0xff] %v7191_v13   ;;  %v3839_v20 = vadd.f32 %v8777_v56, %v8902_v28  ;;  %7398 = vst [vmem:[%s9745_s3 + $0xd0] sm:$0xff] %v6866_v16   ;;  %vm4097_vm4 = vcmp.gt.f32.partialorder %v3841_v18, 0.0  ;;  %v4353_v30 = vmul.f32 0.01, %v3841_v18  ;;  %v3714_v28 = vadd.f32 %v8777_v56, %v8906_v31  ;;  %v8991_v32 = vpop.f32.mrb[66].mxu1 }
 0x15d   :  { %vm3967_vm0 = vcmp.gt.f32.partialorder %v3711_v21, 0.0  ;;  %v4223_v26 = vmul.f32 0.01, %v3711_v21  ;;  %7462 = vst [vmem:[%s9745_s3 + $0x2d0] sm:$0xff] %v7186_v19   ;;  %v4481_v35 = vsel %vm3969_vm3, %v3713_v15, %v4225_v24  ;;  %v3842_v33 = vadd.f32 %v8777_v56, %v8908_v34  ;;  %v8997_v42 = vpop.f32.mrb[67].mxu0  ;;  %v8999_v43 = vpop.f32.mrb[67].mxu1 }
 0x15e   :  { %vm4095_vm5 = vcmp.gt.f32.partialorder %v3839_v20, 0.0  ;;  %v4351_v27 = vmul.f32 0.01, %v3839_v20  ;;  %v4609_v37 = vsel %vm4097_vm4, %v3841_v18, %v4353_v30  ;;  %v3712_v41 = vadd.f32 %v8777_v56, %v8912_v38 }
 0x15f   :  { %v4479_v40 = vsel %vm3967_vm0, %v3711_v21, %v4223_v26  ;;  %vm3970_vm6 = vcmp.gt.f32.partialorder %v3714_v28, 0.0  ;;  %v4226_v45 = vmul.f32 0.01, %v3714_v28  ;;  %v3840_v31 = vadd.f32 %v8777_v56, %v8914_v39 }
 0x160   :  { %v4607_v44 = vsel %vm4095_vm5, %v3839_v20, %v4351_v27  ;;  %vm4098_vm7 = vcmp.gt.f32.partialorder %v3842_v33, 0.0  ;;  %v4354_v46 = vmul.f32 0.01, %v3842_v33  ;;  %vm3968_vm8 = vcmp.gt.f32.partialorder %v3712_v41, 0.0 }
 0x161   :  { %v4224_v48 = vmul.f32 0.01, %v3712_v41  ;;  %v4482_v49 = vsel %vm3970_vm6, %v3714_v28, %v4226_v45  ;;  %vm4096_vm9 = vcmp.gt.f32.partialorder %v3840_v31, 0.0  ;;  %v4352_v34 = vmul.f32 0.01, %v3840_v31  ;;  %v9007_v57 = vpop.f32.mrb[68].mxu0 }
 0x162   :  { %v3717_v38 = vadd.f32 %v8777_v56, %v8921_v51  ;;  %v6881_v50 = vpack.c.bf16 %v4482_v49, %v4481_v35  ;;  %v4610_v52 = vsel %vm4098_vm7, %v3842_v33, %v4354_v46  ;;  %v3845_v53 = vadd.f32 %v8777_v56, %v8937_v54  ;;  %v9009_v58 = vpop.f32.mrb[68].mxu1  ;;  %v9011_v63 = vpop.f32.mrb[69].mxu0 }
 0x163   :  { %v4480_v47 = vsel %vm3968_vm8, %v3712_v41, %v4224_v48  ;;  %v7201_v39 = vpack.c.bf16 %v4610_v52, %v4609_v37  ;;  %v4608_v60 = vsel %vm4096_vm9, %v3840_v31, %v4352_v34  ;;  %v9013_v0 = vpop.f32.mrb[69].mxu1  ;;  %v9018_v2 = vpop.f32.mrb[70].mxu0  ;;  %v3715_v3 = vadd.f32 %v8777_v56, %v8939_v55 }
 0x164   :  { %v6876_v59 = vpack.c.bf16 %v4480_v47, %v4479_v40  ;;  %vm3973_vm10 = vcmp.gt.f32.partialorder %v3717_v38, 0.0  ;;  %7401 = vst [vmem:[%s9745_s3 + $0xe8] sm:$0xff] %v6881_v50   ;;  %v7196_v51 = vpack.c.bf16 %v4608_v60, %v4607_v44  ;;  %v4229_v1 = vmul.f32 0.01, %v3717_v38  ;;  %v9034_v9 = vpop.f32.mrb[70].mxu1  ;;  %v9036_v10 = vpop.f32.mrb[71].mxu0 }
 0x165   :  { %vm4101_vm11 = vcmp.gt.f32.partialorder %v3845_v53, 0.0  ;;  %v4357_v54 = vmul.f32 0.01, %v3845_v53  ;;  %7465 = vst [vmem:[%s9745_s3 + $0x2e8] sm:$0xff] %v7201_v39   ;;  %v3843_v4 = vadd.f32 %v8777_v56, %v8949_v61  ;;  %v3718_v7 = vadd.f32 %v8777_v56, %v8951_v62  ;;  %v9046_v13 = vpop.f32.mrb[71].mxu1 }
 0x166   :  { %7400 = vst [vmem:[%s9745_s3 + $0xe0] sm:$0xff] %v6876_v59   ;;  %v3846_v6 = vadd.f32 %v8777_v56, %v8953_v5  ;;  %7464 = vst [vmem:[%s9745_s3 + $0x2e0] sm:$0xff] %v7196_v51   ;;  %v4485_v12 = vsel %vm3973_vm10, %v3717_v38, %v4229_v1  ;;  %v3716_v61 = vadd.f32 %v8777_v56, %v8955_v8  ;;  %vm3971_vm12 = vcmp.gt.f32.partialorder %v3715_v3, 0.0 }
 0x167   :  { %v4613_v55 = vsel %vm4101_vm11, %v3845_v53, %v4357_v54  ;;  %v3844_v62 = vadd.f32 %v8777_v56, %v8957_v11  ;;  %v4227_v5 = vmul.f32 0.01, %v3715_v3  ;;  %vm4099_vm13 = vcmp.gt.f32.partialorder %v3843_v4, 0.0 }
 0x168   :  { %v4355_v14 = vmul.f32 0.01, %v3843_v4  ;;  %vm3974_vm14 = vcmp.gt.f32.partialorder %v3718_v7, 0.0  ;;  %v4230_v15 = vmul.f32 0.01, %v3718_v7  ;;  %vm4102_vm15 = vcmp.gt.f32.partialorder %v3846_v6, 0.0 }
 0x169   :  { %v4358_v16 = vmul.f32 0.01, %v3846_v6  ;;  %v4483_v17 = vsel %vm3971_vm12, %v3715_v3, %v4227_v5  ;;  %vm3972_vm1 = vcmp.gt.f32.partialorder %v3716_v61, 0.0  ;;  %v4228_v21 = vmul.f32 0.01, %v3716_v61  ;;  %v9048_v20 = vpop.f32.mrb[72].mxu0 }
 0x16a   :  { %v4611_v18 = vsel %vm4099_vm13, %v3843_v4, %v4355_v14  ;;  %v4486_v19 = vsel %vm3974_vm14, %v3718_v7, %v4230_v15  ;;  %vm4100_vm2 = vcmp.gt.f32.partialorder %v3844_v62, 0.0  ;;  %v4356_v8 = vmul.f32 0.01, %v3844_v62  ;;  %v9050_v11 = vpop.f32.mrb[72].mxu1  ;;  %v9054_v28 = vpop.f32.mrb[73].mxu0 }
 0x16b   :  { %v4614_v24 = vsel %vm4102_vm15, %v3846_v6, %v4358_v16  ;;  %v6891_v30 = vpack.c.bf16 %v4486_v19, %v4485_v12  ;;  %v4484_v35 = vsel %vm3972_vm1, %v3716_v61, %v4228_v21  ;;  %v3721_v27 = vadd.f32 %v8777_v56, %v8965_v22  ;;  %v9056_v37 = vpop.f32.mrb[73].mxu1  ;;  %v9062_v45 = vpop.f32.mrb[74].mxu0 }
 0x16c   :  { %v7211_v26 = vpack.c.bf16 %v4614_v24, %v4613_v55  ;;  %v6886_v40 = vpack.c.bf16 %v4484_v35, %v4483_v17  ;;  %v4612_v33 = vsel %vm4100_vm2, %v3844_v62, %v4356_v8  ;;  %v3849_v41 = vadd.f32 %v8777_v56, %v8967_v23  ;;  %v9064_v31 = vpop.f32.mrb[74].mxu1  ;;  %v9074_v48 = vpop.f32.mrb[75].mxu0 }
 0x16d   :  { %v3719_v44 = vadd.f32 %v8777_v56, %v8977_v29  ;;  %7403 = vst [vmem:[%s9745_s3 + $0xf8] sm:$0xff] %v6891_v30   ;;  %v7206_v22 = vpack.c.bf16 %v4612_v33, %v4611_v18  ;;  %vm3977_vm3 = vcmp.gt.f32.partialorder %v3721_v27, 0.0  ;;  %v4233_v46 = vmul.f32 0.01, %v3721_v27  ;;  %v9076_v29 = vpop.f32.mrb[75].mxu1 }
 0x16e   :  { %7467 = vst [vmem:[%s9745_s3 + $0x2f8] sm:$0xff] %v7211_v26   ;;  %v3847_v23 = vadd.f32 %v8777_v56, %v8979_v25  ;;  %7402 = vst [vmem:[%s9745_s3 + $0xf0] sm:$0xff] %v6886_v40   ;;  %vm4105_vm4 = vcmp.gt.f32.partialorder %v3849_v41, 0.0  ;;  %v4361_v49 = vmul.f32 0.01, %v3849_v41  ;;  %v3722_v25 = vadd.f32 %v8777_v56, %v8989_v36 }
 0x16f   :  { %vm3975_vm0 = vcmp.gt.f32.partialorder %v3719_v44, 0.0  ;;  %v4231_v34 = vmul.f32 0.01, %v3719_v44  ;;  %7466 = vst [vmem:[%s9745_s3 + $0x2f0] sm:$0xff] %v7206_v22   ;;  %v4489_v38 = vsel %vm3977_vm3, %v3721_v27, %v4233_v46  ;;  %v3850_v53 = vadd.f32 %v8777_v56, %v8991_v32 }
 0x170   :  { %vm4103_vm5 = vcmp.gt.f32.partialorder %v3847_v23, 0.0  ;;  %v4359_v50 = vmul.f32 0.01, %v3847_v23  ;;  %v4617_v52 = vsel %vm4105_vm4, %v3849_v41, %v4361_v49  ;;  %v3720_v39 = vadd.f32 %v8777_v56, %v8997_v42 }
 0x171   :  { %v4487_v47 = vsel %vm3975_vm0, %v3719_v44, %v4231_v34  ;;  %vm3978_vm6 = vcmp.gt.f32.partialorder %v3722_v25, 0.0  ;;  %v4234_v60 = vmul.f32 0.01, %v3722_v25  ;;  %v3848_v51 = vadd.f32 %v8777_v56, %v8999_v43  ;;  %v9094_v32 = vpop.f32.mrb[76].mxu0  ;;  %v9096_v7 = vpop.f32.mrb[76].mxu1 }
 0x172   :  { %v4615_v59 = vsel %vm4103_vm5, %v3847_v23, %v4359_v50  ;;  %vm4106_vm7 = vcmp.gt.f32.partialorder %v3850_v53, 0.0  ;;  %v4362_v1 = vmul.f32 0.01, %v3850_v53  ;;  %vm3976_vm8 = vcmp.gt.f32.partialorder %v3720_v39, 0.0  ;;  %v9100_v55 = vpop.f32.mrb[77].mxu0  ;;  %v9102_v61 = vpop.f32.mrb[77].mxu1 }
 0x173   :  { %v4232_v54 = vmul.f32 0.01, %v3720_v39  ;;  %v4490_v3 = vsel %vm3978_vm6, %v3722_v25, %v4234_v60  ;;  %vm4104_vm9 = vcmp.gt.f32.partialorder %v3848_v51, 0.0  ;;  %v4360_v36 = vmul.f32 0.01, %v3848_v51  ;;  %v9104_v15 = vpop.f32.mrb[78].mxu0 }
 0x174   :  { %v3725_v4 = vadd.f32 %v8777_v56, %v9007_v57  ;;  %v6901_v42 = vpack.c.bf16 %v4490_v3, %v4489_v38  ;;  %v4618_v6 = vsel %vm4106_vm7, %v3850_v53, %v4362_v1  ;;  %v3853_v43 = vadd.f32 %v8777_v56, %v9009_v58  ;;  %v9106_v57 = vpop.f32.mrb[78].mxu1  ;;  %v9111_v18 = vpop.f32.mrb[79].mxu0 }
 0x175   :  { %v4488_v12 = vsel %vm3976_vm8, %v3720_v39, %v4232_v54  ;;  %v7221_v62 = vpack.c.bf16 %v4618_v6, %v4617_v52  ;;  %v4616_v14 = vsel %vm4104_vm9, %v3848_v51, %v4360_v36  ;;  %v3723_v21 = vadd.f32 %v8777_v56, %v9011_v63  ;;  %v9127_v30 = vpop.f32.mrb[79].mxu1 }
 0x176   :  { %v6896_v5 = vpack.c.bf16 %v4488_v12, %v4487_v47  ;;  %vm3981_vm10 = vcmp.gt.f32.partialorder %v3725_v4, 0.0  ;;  %7405 = vst [vmem:[%s9745_s3 + $0x108] sm:$0xff] %v6901_v42   ;;  %v7216_v16 = vpack.c.bf16 %v4616_v14, %v4615_v59  ;;  %v4237_v17 = vmul.f32 0.01, %v3725_v4 }
 0x177   :  { %vm4109_vm11 = vcmp.gt.f32.partialorder %v3853_v43, 0.0  ;;  %v4365_v58 = vmul.f32 0.01, %v3853_v43  ;;  %7469 = vst [vmem:[%s9745_s3 + $0x308] sm:$0xff] %v7221_v62   ;;  %v3851_v19 = vadd.f32 %v8777_v56, %v9013_v0  ;;  %v3726_v24 = vadd.f32 %v8777_v56, %v9018_v2 }
 0x178   :  { %7404 = vst [vmem:[%s9745_s3 + $0x100] sm:$0xff] %v6896_v5   ;;  %v3854_v8 = vadd.f32 %v8777_v56, %v9034_v9  ;;  %7468 = vst [vmem:[%s9745_s3 + $0x300] sm:$0xff] %v7216_v16   ;;  %v4493_v26 = vsel %vm3981_vm10, %v3725_v4, %v4237_v17  ;;  %v3724_v63 = vadd.f32 %v8777_v56, %v9036_v10  ;;  %vm3979_vm12 = vcmp.gt.f32.partialorder %v3723_v21, 0.0 }
 0x179   :  { %v4621_v35 = vsel %vm4109_vm11, %v3853_v43, %v4365_v58  ;;  %v3852_v0 = vadd.f32 %v8777_v56, %v9046_v13  ;;  %v4235_v2 = vmul.f32 0.01, %v3723_v21  ;;  %vm4107_vm13 = vcmp.gt.f32.partialorder %v3851_v19, 0.0  ;;  %v9137_v22 = vpop.f32.mrb[80].mxu0  ;;  %v9139_v46 = vpop.f32.mrb[80].mxu1 }
 0x17a   :  { %v4363_v27 = vmul.f32 0.01, %v3851_v19  ;;  %vm3982_vm14 = vcmp.gt.f32.partialorder %v3726_v24, 0.0  ;;  %v4238_v9 = vmul.f32 0.01, %v3726_v24  ;;  %vm4110_vm15 = vcmp.gt.f32.partialorder %v3854_v8, 0.0 }
 0x17b   :  { %v4366_v40 = vmul.f32 0.01, %v3854_v8  ;;  %v4491_v33 = vsel %vm3979_vm12, %v3723_v21, %v4235_v2  ;;  %vm3980_vm1 = vcmp.gt.f32.partialorder %v3724_v63, 0.0  ;;  %v4236_v44 = vmul.f32 0.01, %v3724_v63  ;;  %v9141_v49 = vpop.f32.mrb[81].mxu0 }
 0x17c   :  { %v4619_v41 = vsel %vm4107_vm13, %v3851_v19, %v4363_v27  ;;  %v4494_v10 = vsel %vm3982_vm14, %v3726_v24, %v4238_v9  ;;  %vm4108_vm2 = vcmp.gt.f32.partialorder %v3852_v0, 0.0  ;;  %v4364_v13 = vmul.f32 0.01, %v3852_v0  ;;  %v9143_v34 = vpop.f32.mrb[81].mxu1  ;;  %v9147_v47 = vpop.f32.mrb[82].mxu0 }
 0x17d   :  { %v4622_v23 = vsel %vm4110_vm15, %v3854_v8, %v4366_v40  ;;  %v6911_v38 = vpack.c.bf16 %v4494_v10, %v4493_v26  ;;  %v4492_v25 = vsel %vm3980_vm1, %v3724_v63, %v4236_v44  ;;  %v3729_v52 = vadd.f32 %v8777_v56, %v9048_v20  ;;  %v9149_v53 = vpop.f32.mrb[82].mxu1  ;;  %v9155_v1 = vpop.f32.mrb[83].mxu0 }
 0x17e   :  { %v7231_v50 = vpack.c.bf16 %v4622_v23, %v4621_v35  ;;  %v6906_v39 = vpack.c.bf16 %v4492_v25, %v4491_v33  ;;  %v4620_v59 = vsel %vm4108_vm2, %v3852_v0, %v4364_v13  ;;  %v3857_v60 = vadd.f32 %v8777_v56, %v9050_v11  ;;  %v9157_v54 = vpop.f32.mrb[83].mxu1 }
 0x17f   :  { %v3727_v51 = vadd.f32 %v8777_v56, %v9054_v28  ;;  %7407 = vst [vmem:[%s9745_s3 + $0x118] sm:$0xff] %v6911_v38   ;;  %v7226_v20 = vpack.c.bf16 %v4620_v59, %v4619_v41  ;;  %vm3985_vm3 = vcmp.gt.f32.partialorder %v3729_v52, 0.0  ;;  %v4241_v3 = vmul.f32 0.01, %v3729_v52 }
 0x180   :  { %7471 = vst [vmem:[%s9745_s3 + $0x318] sm:$0xff] %v7231_v50   ;;  %v3855_v11 = vadd.f32 %v8777_v56, %v9056_v37  ;;  %7406 = vst [vmem:[%s9745_s3 + $0x110] sm:$0xff] %v6906_v39   ;;  %vm4113_vm4 = vcmp.gt.f32.partialorder %v3857_v60, 0.0  ;;  %v4369_v28 = vmul.f32 0.01, %v3857_v60  ;;  %v3730_v6 = vadd.f32 %v8777_v56, %v9062_v45 }
 0x181   :  { %vm3983_vm0 = vcmp.gt.f32.partialorder %v3727_v51, 0.0  ;;  %v4239_v36 = vmul.f32 0.01, %v3727_v51  ;;  %7470 = vst [vmem:[%s9745_s3 + $0x310] sm:$0xff] %v7226_v20   ;;  %v4497_v4 = vsel %vm3985_vm3, %v3729_v52, %v4241_v3  ;;  %v3858_v43 = vadd.f32 %v8777_v56, %v9064_v31  ;;  %v9179_v5 = vpop.f32.mrb[84].mxu0  ;;  %v9181_v14 = vpop.f32.mrb[84].mxu1 }
 0x182   :  { %vm4111_vm5 = vcmp.gt.f32.partialorder %v3855_v11, 0.0  ;;  %v4367_v42 = vmul.f32 0.01, %v3855_v11  ;;  %v4625_v12 = vsel %vm4113_vm4, %v3857_v60, %v4369_v28  ;;  %v3728_v62 = vadd.f32 %v8777_v56, %v9074_v48  ;;  %v9185_v21 = vpop.f32.mrb[85].mxu0  ;;  %v9187_v45 = vpop.f32.mrb[85].mxu1 }
 0x183   :  { %v4495_v37 = vsel %vm3983_vm0, %v3727_v51, %v4239_v36  ;;  %vm3986_vm6 = vcmp.gt.f32.partialorder %v3730_v6, 0.0  ;;  %v4242_v17 = vmul.f32 0.01, %v3730_v6  ;;  %v3856_v58 = vadd.f32 %v8777_v56, %v9076_v29  ;;  %v9191_v26 = vpop.f32.mrb[86].mxu0  ;;  %v9193_v35 = vpop.f32.mrb[86].mxu1 }
 0x184   :  { %v4623_v16 = vsel %vm4111_vm5, %v3855_v11, %v4367_v42  ;;  %vm4114_vm7 = vcmp.gt.f32.partialorder %v3858_v43, 0.0  ;;  %v4370_v19 = vmul.f32 0.01, %v3858_v43  ;;  %vm3984_vm8 = vcmp.gt.f32.partialorder %v3728_v62, 0.0  ;;  %v9197_v27 = vpop.f32.mrb[87].mxu0  ;;  %v9199_v9 = vpop.f32.mrb[87].mxu1 }
 0x185   :  { %v4240_v31 = vmul.f32 0.01, %v3728_v62  ;;  %v4498_v24 = vsel %vm3986_vm6, %v3730_v6, %v4242_v17  ;;  %vm4112_vm9 = vcmp.gt.f32.partialorder %v3856_v58, 0.0  ;;  %v4368_v48 = vmul.f32 0.01, %v3856_v58 }
 0x186   :  { %v3733_v8 = vadd.f32 %v8777_v56, %v9094_v32  ;;  %v6921_v63 = vpack.c.bf16 %v4498_v24, %v4497_v4  ;;  %v4626_v29 = vsel %vm4114_vm7, %v3858_v43, %v4370_v19  ;;  %v3861_v2 = vadd.f32 %v8777_v56, %v9096_v7 }
 0x187   :  { %v4496_v0 = vsel %vm3984_vm8, %v3728_v62, %v4240_v31  ;;  %v7241_v40 = vpack.c.bf16 %v4626_v29, %v4625_v12  ;;  %v4624_v41 = vsel %vm4112_vm9, %v3856_v58, %v4368_v48  ;;  %v3731_v7 = vadd.f32 %v8777_v56, %v9100_v55  ;;  %v9264_v29 = vld [vmem:[%s9744_s2] ss:$0 sm:$0xff] }
 0x188   :  { %v6916_v33 = vpack.c.bf16 %v4496_v0, %v4495_v37  ;;  %vm3989_vm10 = vcmp.gt.f32.partialorder %v3733_v8, 0.0  ;;  %7409 = vst [vmem:[%s9745_s3 + $0x128] sm:$0xff] %v6921_v63   ;;  %v7236_v32 = vpack.c.bf16 %v4624_v41, %v4623_v16  ;;  %v4245_v44 = vmul.f32 0.01, %v3733_v8 }
 0x189   :  { %vm4117_vm11 = vcmp.gt.f32.partialorder %v3861_v2, 0.0  ;;  %v4373_v10 = vmul.f32 0.01, %v3861_v2  ;;  %7473 = vst [vmem:[%s9745_s3 + $0x328] sm:$0xff] %v7241_v40   ;;  %v3859_v23 = vadd.f32 %v8777_v56, %v9102_v61  ;;  %v3734_v13 = vadd.f32 %v8777_v56, %v9104_v15  ;;  %v9225_v39 = vpop.f32.mrb[88].mxu0  ;;  %v9227_v61 = vpop.f32.mrb[88].mxu1 }
 0x18a   :  { %7408 = vst [vmem:[%s9745_s3 + $0x120] sm:$0xff] %v6916_v33   ;;  %v3862_v38 = vadd.f32 %v8777_v56, %v9106_v57  ;;  %7472 = vst [vmem:[%s9745_s3 + $0x320] sm:$0xff] %v7236_v32   ;;  %v4501_v50 = vsel %vm3989_vm10, %v3733_v8, %v4245_v44  ;;  %v3732_v52 = vadd.f32 %v8777_v56, %v9111_v18  ;;  %vm3987_vm12 = vcmp.gt.f32.partialorder %v3731_v7, 0.0  ;;  %v9229_v18 = vpop.f32.mrb[89].mxu0  ;;  %v9231_v11 = vpop.f32.mrb[89].mxu1 }
 0x18b   :  { %v4629_v25 = vsel %vm4117_vm11, %v3861_v2, %v4373_v10  ;;  %v3860_v55 = vadd.f32 %v8777_v56, %v9127_v30  ;;  %v4243_v15 = vmul.f32 0.01, %v3731_v7  ;;  %vm4115_vm13 = vcmp.gt.f32.partialorder %v3859_v23, 0.0  ;;  %v9233_v4 = vpop.f32.mrb[90].mxu0  ;;  %v9235_v42 = vpop.f32.mrb[90].mxu1 }
 0x18c   :  { %v4371_v57 = vmul.f32 0.01, %v3859_v23  ;;  %vm3990_vm14 = vcmp.gt.f32.partialorder %v3734_v13, 0.0  ;;  %v4246_v59 = vmul.f32 0.01, %v3734_v13  ;;  %vm4118_vm15 = vcmp.gt.f32.partialorder %v3862_v38, 0.0 }
 0x18d   :  { %v4374_v60 = vmul.f32 0.01, %v3862_v38  ;;  %v4499_v51 = vsel %vm3987_vm12, %v3731_v7, %v4243_v15  ;;  %vm3988_vm1 = vcmp.gt.f32.partialorder %v3732_v52, 0.0  ;;  %v4244_v3 = vmul.f32 0.01, %v3732_v52  ;;  %v9239_v62 = vpop.f32.mrb[91].mxu0 }
 0x18e   :  { %v4627_v20 = vsel %vm4115_vm13, %v3859_v23, %v4371_v57  ;;  %v4502_v30 = vsel %vm3990_vm14, %v3734_v13, %v4246_v59  ;;  %vm4116_vm2 = vcmp.gt.f32.partialorder %v3860_v55, 0.0  ;;  %v4372_v36 = vmul.f32 0.01, %v3860_v55  ;;  %v9241_v16 = vpop.f32.mrb[91].mxu1 }
 0x18f   :  { %v4630_v28 = vsel %vm4118_vm15, %v3862_v38, %v4374_v60  ;;  %v6931_v6 = vpack.c.bf16 %v4502_v30, %v4501_v50  ;;  %v4500_v37 = vsel %vm3988_vm1, %v3732_v52, %v4244_v3  ;;  %v3737_v43 = vadd.f32 %v8777_v56, %v9137_v22 }
 0x190   :  { %v7251_v12 = vpack.c.bf16 %v4630_v28, %v4629_v25  ;;  %v6926_v17 = vpack.c.bf16 %v4500_v37, %v4499_v51  ;;  %v4628_v58 = vsel %vm4116_vm2, %v3860_v55, %v4372_v36  ;;  %v3865_v19 = vadd.f32 %v8777_v56, %v9139_v46 }
 0x191   :  { %v3735_v31 = vadd.f32 %v8777_v56, %v9141_v49  ;;  %7411 = vst [vmem:[%s9745_s3 + $0x138] sm:$0xff] %v6931_v6   ;;  %v7246_v22 = vpack.c.bf16 %v4628_v58, %v4627_v20  ;;  %vm3993_vm3 = vcmp.gt.f32.partialorder %v3737_v43, 0.0  ;;  %v4249_v24 = vmul.f32 0.01, %v3737_v43  ;;  %v9270_v0 = vpop.f32.mrb[92].mxu1 }
 0x192   :  { %7475 = vst [vmem:[%s9745_s3 + $0x338] sm:$0xff] %v7251_v12   ;;  %v3863_v48 = vadd.f32 %v8777_v56, %v9143_v34  ;;  %7410 = vst [vmem:[%s9745_s3 + $0x130] sm:$0xff] %v6926_v17   ;;  %vm4121_vm4 = vcmp.gt.f32.partialorder %v3865_v19, 0.0  ;;  %v4377_v46 = vmul.f32 0.01, %v3865_v19  ;;  %v3738_v56 = vadd.f32 %v9264_v29, %v9147_v47  ;;  %v9268_v34 = vpop.f32.mrb[92].mxu0 }
 0x193   :  { %vm3991_vm0 = vcmp.gt.f32.partialorder %v3735_v31, 0.0  ;;  %v4247_v49 = vmul.f32 0.01, %v3735_v31  ;;  %7474 = vst [vmem:[%s9745_s3 + $0x330] sm:$0xff] %v7246_v22   ;;  %v4505_v8 = vsel %vm3993_vm3, %v3737_v43, %v4249_v24  ;;  %v3866_v33 = vadd.f32 %v9264_v29, %v9149_v53  ;;  %v9276_v32 = vpop.f32.mrb[93].mxu0  ;;  %v9278_v44 = vpop.f32.mrb[93].mxu1 }
 0x194   :  { %vm4119_vm5 = vcmp.gt.f32.partialorder %v3863_v48, 0.0  ;;  %v4375_v63 = vmul.f32 0.01, %v3863_v48  ;;  %v4633_v2 = vsel %vm4121_vm4, %v3865_v19, %v4377_v46  ;;  %v3736_v41 = vadd.f32 %v9264_v29, %v9155_v1  ;;  %v9282_v23 = vpop.f32.mrb[94].mxu0  ;;  %v9284_v13 = vpop.f32.mrb[94].mxu1 }
 0x195   :  { %v4503_v40 = vsel %vm3991_vm0, %v3735_v31, %v4247_v49  ;;  %vm3994_vm6 = vcmp.gt.f32.partialorder %v3738_v56, 0.0  ;;  %v4250_v7 = vmul.f32 0.01, %v3738_v56  ;;  %v3864_v47 = vadd.f32 %v9264_v29, %v9157_v54  ;;  %v9288_v52 = vpop.f32.mrb[95].mxu0  ;;  %v9290_v55 = vpop.f32.mrb[95].mxu1 }
 0x196   :  { %v4631_v10 = vsel %vm4119_vm5, %v3863_v48, %v4375_v63  ;;  %vm4122_vm7 = vcmp.gt.f32.partialorder %v3866_v33, 0.0  ;;  %v4378_v38 = vmul.f32 0.01, %v3866_v33  ;;  %vm3992_vm8 = vcmp.gt.f32.partialorder %v3736_v41, 0.0 }
 0x197   :  { %v4248_v53 = vmul.f32 0.01, %v3736_v41  ;;  %v4506_v50 = vsel %vm3994_vm6, %v3738_v56, %v4250_v7  ;;  %vm4120_vm9 = vcmp.gt.f32.partialorder %v3864_v47, 0.0  ;;  %v4376_v1 = vmul.f32 0.01, %v3864_v47 }
 0x198   :  { %v3741_v25 = vadd.f32 %v9264_v29, %v9179_v5  ;;  %v6941_v15 = vpack.c.bf16 %v4506_v50, %v4505_v8  ;;  %v4634_v54 = vsel %vm4122_vm7, %v3866_v33, %v4378_v38  ;;  %v3869_v59 = vadd.f32 %v9264_v29, %v9181_v14 }
 0x199   :  { %v4504_v57 = vsel %vm3992_vm8, %v3736_v41, %v4248_v53  ;;  %v7261_v60 = vpack.c.bf16 %v4634_v54, %v4633_v2  ;;  %v4632_v20 = vsel %vm4120_vm9, %v3864_v47, %v4376_v1  ;;  %v9297_v28 = vpop.f32.mrb[96].mxu0  ;;  %v3739_v14 = vadd.f32 %v9264_v29, %v9185_v21  ;;  %v9313_v37 = vpop.f32.mrb[96].mxu1 }
 0x19a   :  { %v6936_v51 = vpack.c.bf16 %v4504_v57, %v4503_v40  ;;  %vm3997_vm10 = vcmp.gt.f32.partialorder %v3741_v25, 0.0  ;;  %7413 = vst [vmem:[%s9745_s3 + $0x148] sm:$0xff] %v6941_v15   ;;  %v7256_v3 = vpack.c.bf16 %v4632_v20, %v4631_v10  ;;  %v4253_v5 = vmul.f32 0.01, %v3741_v25  ;;  %v9315_v43 = vpop.f32.mrb[97].mxu0  ;;  %v9325_v58 = vpop.f32.mrb[97].mxu1 }
 0x19b   :  { %vm4125_vm11 = vcmp.gt.f32.partialorder %v3869_v59, 0.0  ;;  %v4381_v30 = vmul.f32 0.01, %v3869_v59  ;;  %7477 = vst [vmem:[%s9745_s3 + $0x348] sm:$0xff] %v7261_v60   ;;  %v3867_v36 = vadd.f32 %v9264_v29, %v9187_v45  ;;  %v3742_v6 = vadd.f32 %v9264_v29, %v9191_v26 }
 0x19c   :  { %7412 = vst [vmem:[%s9745_s3 + $0x140] sm:$0xff] %v6936_v51   ;;  %v3870_v12 = vadd.f32 %v9264_v29, %v9193_v35  ;;  %7476 = vst [vmem:[%s9745_s3 + $0x340] sm:$0xff] %v7256_v3   ;;  %v4509_v17 = vsel %vm3997_vm10, %v3741_v25, %v4253_v5  ;;  %v3740_v45 = vadd.f32 %v9264_v29, %v9197_v27  ;;  %v9327_v35 = vpop.f32.mrb[98].mxu0  ;;  %vm3995_vm12 = vcmp.gt.f32.partialorder %v3739_v14, 0.0  ;;  %v9329_v27 = vpop.f32.mrb[98].mxu1 }
 0x19d   :  { %v4637_v21 = vsel %vm4125_vm11, %v3869_v59, %v4381_v30  ;;  %v3868_v26 = vadd.f32 %v9264_v29, %v9199_v9  ;;  %v4251_v19 = vmul.f32 0.01, %v3739_v14  ;;  %vm4123_vm13 = vcmp.gt.f32.partialorder %v3867_v36, 0.0  ;;  %v9331_v8 = vpop.f32.mrb[99].mxu0  ;;  %v9333_v2 = vpop.f32.mrb[99].mxu1 }
 0x19e   :  { %v4379_v31 = vmul.f32 0.01, %v3867_v36  ;;  %vm3998_vm14 = vcmp.gt.f32.partialorder %v3742_v6, 0.0  ;;  %v4254_v22 = vmul.f32 0.01, %v3742_v6  ;;  %vm4126_vm15 = vcmp.gt.f32.partialorder %v3870_v12, 0.0 }
 0x19f   :  { %v4382_v24 = vmul.f32 0.01, %v3870_v12  ;;  %v4507_v48 = vsel %vm3995_vm12, %v3739_v14, %v4251_v19  ;;  %vm3996_vm1 = vcmp.gt.f32.partialorder %v3740_v45, 0.0  ;;  %v4252_v49 = vmul.f32 0.01, %v3740_v45 }
 0x1a0   :  { %v4635_v46 = vsel %vm4123_vm13, %v3867_v36, %v4379_v31  ;;  %v4510_v9 = vsel %vm3998_vm14, %v3742_v6, %v4254_v22  ;;  %vm4124_vm2 = vcmp.gt.f32.partialorder %v3868_v26, 0.0  ;;  %v4380_v56 = vmul.f32 0.01, %v3868_v26 }
 0x1a1   :  { %v4638_v63 = vsel %vm4126_vm15, %v3870_v12, %v4382_v24  ;;  %v6951_v40 = vpack.c.bf16 %v4510_v9, %v4509_v17  ;;  %v4508_v41 = vsel %vm3996_vm1, %v3740_v45, %v4252_v49  ;;  %v3745_v10 = vadd.f32 %v9264_v29, %v9225_v39  ;;  %v9341_v50 = vpop.f32.mrb[100].mxu0  ;;  %v9343_v1 = vpop.f32.mrb[100].mxu1 }
 0x1a2   :  { %v7271_v33 = vpack.c.bf16 %v4638_v63, %v4637_v21  ;;  %v6946_v7 = vpack.c.bf16 %v4508_v41, %v4507_v48  ;;  %v4636_v47 = vsel %vm4124_vm2, %v3868_v26, %v4380_v56  ;;  %v3873_v38 = vadd.f32 %v9264_v29, %v9227_v61  ;;  %v9353_v15 = vpop.f32.mrb[101].mxu0 }
 0x1a3   :  { %v3743_v53 = vadd.f32 %v9264_v29, %v9229_v18  ;;  %7415 = vst [vmem:[%s9745_s3 + $0x158] sm:$0xff] %v6951_v40   ;;  %v7266_v39 = vpack.c.bf16 %v4636_v47, %v4635_v46  ;;  %vm4001_vm3 = vcmp.gt.f32.partialorder %v3745_v10, 0.0  ;;  %v4257_v25 = vmul.f32 0.01, %v3745_v10  ;;  %v9355_v18 = vpop.f32.mrb[101].mxu1  ;;  %v9365_v51 = vpop.f32.mrb[102].mxu0 }
 0x1a4   :  { %7479 = vst [vmem:[%s9745_s3 + $0x358] sm:$0xff] %v7271_v33   ;;  %v3871_v61 = vadd.f32 %v9264_v29, %v9231_v11  ;;  %7414 = vst [vmem:[%s9745_s3 + $0x150] sm:$0xff] %v6946_v7   ;;  %vm4129_vm4 = vcmp.gt.f32.partialorder %v3873_v38, 0.0  ;;  %v4385_v54 = vmul.f32 0.01, %v3873_v38  ;;  %v3746_v11 = vadd.f32 %v9264_v29, %v9233_v4  ;;  %v9367_v20 = vpop.f32.mrb[102].mxu1 }
 0x1a5   :  { %vm3999_vm0 = vcmp.gt.f32.partialorder %v3743_v53, 0.0  ;;  %v4255_v57 = vmul.f32 0.01, %v3743_v53  ;;  %7478 = vst [vmem:[%s9745_s3 + $0x350] sm:$0xff] %v7266_v39   ;;  %v4513_v59 = vsel %vm4001_vm3, %v3745_v10, %v4257_v25  ;;  %v3874_v30 = vadd.f32 %v9264_v29, %v9235_v42  ;;  %v9373_v36 = vpop.f32.mrb[103].mxu0  ;;  %v9375_v6 = vpop.f32.mrb[103].mxu1 }
 0x1a6   :  { %vm4127_vm5 = vcmp.gt.f32.partialorder %v3871_v61, 0.0  ;;  %v4383_v60 = vmul.f32 0.01, %v3871_v61  ;;  %v4641_v3 = vsel %vm4129_vm4, %v3873_v38, %v4385_v54  ;;  %v3744_v14 = vadd.f32 %v9264_v29, %v9239_v62 }
 0x1a7   :  { %v4511_v5 = vsel %vm3999_vm0, %v3743_v53, %v4255_v57  ;;  %vm4002_vm6 = vcmp.gt.f32.partialorder %v3746_v11, 0.0  ;;  %v4258_v17 = vmul.f32 0.01, %v3746_v11  ;;  %v3872_v4 = vadd.f32 %v9264_v29, %v9241_v16 }
 0x1a8   :  { %v4639_v12 = vsel %vm4127_vm5, %v3871_v61, %v4383_v60  ;;  %vm4130_vm7 = vcmp.gt.f32.partialorder %v3874_v30, 0.0  ;;  %v4386_v21 = vmul.f32 0.01, %v3874_v30  ;;  %vm4000_vm8 = vcmp.gt.f32.partialorder %v3744_v14, 0.0 }
 0x1a9   :  { %v4256_v45 = vmul.f32 0.01, %v3744_v14  ;;  %v4514_v26 = vsel %vm4002_vm6, %v3746_v11, %v4258_v17  ;;  %vm4128_vm9 = vcmp.gt.f32.partialorder %v3872_v4, 0.0  ;;  %v4384_v42 = vmul.f32 0.01, %v3872_v4  ;;  %v9383_v48 = vpop.f32.mrb[104].mxu0 }
 0x1aa   :  { %v3749_v62 = vadd.f32 %v9264_v29, %v9268_v34  ;;  %v6961_v19 = vpack.c.bf16 %v4514_v26, %v4513_v59  ;;  %v4642_v31 = vsel %vm4130_vm7, %v3874_v30, %v4386_v21  ;;  %v3877_v24 = vadd.f32 %v9264_v29, %v9270_v0  ;;  %v9385_v46 = vpop.f32.mrb[104].mxu1  ;;  %v9387_v63 = vpop.f32.mrb[105].mxu0 }
 0x1ab   :  { %v4512_v22 = vsel %vm4000_vm8, %v3744_v14, %v4256_v45  ;;  %v7281_v16 = vpack.c.bf16 %v4642_v31, %v4641_v3  ;;  %v4640_v9 = vsel %vm4128_vm9, %v3872_v4, %v4384_v42  ;;  %v9389_v56 = vpop.f32.mrb[105].mxu1  ;;  %v9394_v33 = vpop.f32.mrb[106].mxu0  ;;  %v3747_v41 = vadd.f32 %v9264_v29, %v9276_v32 }
 0x1ac   :  { %v6956_v49 = vpack.c.bf16 %v4512_v22, %v4511_v5  ;;  %vm4005_vm10 = vcmp.gt.f32.partialorder %v3749_v62, 0.0  ;;  %7417 = vst [vmem:[%s9745_s3 + $0x168] sm:$0xff] %v6961_v19   ;;  %v7276_v34 = vpack.c.bf16 %v4640_v9, %v4639_v12  ;;  %v4261_v40 = vmul.f32 0.01, %v3749_v62  ;;  %v9410_v38 = vpop.f32.mrb[106].mxu1  ;;  %v9412_v53 = vpop.f32.mrb[107].mxu0 }
 0x1ad   :  { %vm4133_vm11 = vcmp.gt.f32.partialorder %v3877_v24, 0.0  ;;  %v4389_v0 = vmul.f32 0.01, %v3877_v24  ;;  %7481 = vst [vmem:[%s9745_s3 + $0x368] sm:$0xff] %v7281_v16   ;;  %v3875_v10 = vadd.f32 %v9264_v29, %v9278_v44  ;;  %v3750_v7 = vadd.f32 %v9264_v29, %v9282_v23  ;;  %v9422_v25 = vpop.f32.mrb[107].mxu1 }
 0x1ae   :  { %7416 = vst [vmem:[%s9745_s3 + $0x160] sm:$0xff] %v6956_v49   ;;  %v3878_v47 = vadd.f32 %v9264_v29, %v9284_v13  ;;  %7480 = vst [vmem:[%s9745_s3 + $0x360] sm:$0xff] %v7276_v34   ;;  %v4517_v39 = vsel %vm4005_vm10, %v3749_v62, %v4261_v40  ;;  %v3748_v44 = vadd.f32 %v9264_v29, %v9288_v52  ;;  %vm4003_vm12 = vcmp.gt.f32.partialorder %v3747_v41, 0.0 }
 0x1af   :  { %v4645_v32 = vsel %vm4133_vm11, %v3877_v24, %v4389_v0  ;;  %v3876_v23 = vadd.f32 %v9264_v29, %v9290_v55  ;;  %v4259_v13 = vmul.f32 0.01, %v3747_v41  ;;  %vm4131_vm13 = vcmp.gt.f32.partialorder %v3875_v10, 0.0 }
 0x1b0   :  { %v4387_v61 = vmul.f32 0.01, %v3875_v10  ;;  %vm4006_vm14 = vcmp.gt.f32.partialorder %v3750_v7, 0.0  ;;  %v4262_v54 = vmul.f32 0.01, %v3750_v7  ;;  %vm4134_vm15 = vcmp.gt.f32.partialorder %v3878_v47, 0.0 }
 0x1b1   :  { %v4390_v57 = vmul.f32 0.01, %v3878_v47  ;;  %v4515_v59 = vsel %vm4003_vm12, %v3747_v41, %v4259_v13  ;;  %vm4004_vm1 = vcmp.gt.f32.partialorder %v3748_v44, 0.0  ;;  %v4260_v11 = vmul.f32 0.01, %v3748_v44  ;;  %v9424_v30 = vpop.f32.mrb[108].mxu0 }
 0x1b2   :  { %v4643_v60 = vsel %vm4131_vm13, %v3875_v10, %v4387_v61  ;;  %v4518_v3 = vsel %vm4006_vm14, %v3750_v7, %v4262_v54  ;;  %vm4132_vm2 = vcmp.gt.f32.partialorder %v3876_v23, 0.0  ;;  %v4388_v52 = vmul.f32 0.01, %v3876_v23  ;;  %v9428_v4 = vpop.f32.mrb[108].mxu1  ;;  %v9430_v21 = vpop.f32.mrb[109].mxu0 }
 0x1b3   :  { %v4646_v5 = vsel %vm4134_vm15, %v3878_v47, %v4390_v57  ;;  %v6971_v55 = vpack.c.bf16 %v4518_v3, %v4517_v39  ;;  %v4516_v12 = vsel %vm4004_vm1, %v3748_v44, %v4260_v11  ;;  %v3753_v17 = vadd.f32 %v9264_v29, %v9297_v28  ;;  %v9436_v19 = vpop.f32.mrb[109].mxu1  ;;  %v9438_v31 = vpop.f32.mrb[110].mxu0 }
 0x1b4   :  { %v7291_v14 = vpack.c.bf16 %v4646_v5, %v4645_v32  ;;  %v6966_v45 = vpack.c.bf16 %v4516_v12, %v4515_v59  ;;  %v4644_v26 = vsel %vm4132_vm2, %v3876_v23, %v4388_v52  ;;  %v3881_v42 = vadd.f32 %v9264_v29, %v9313_v37  ;;  %v9448_v24 = vpop.f32.mrb[110].mxu1 }
 0x1b5   :  { %v3751_v62 = vadd.f32 %v9264_v29, %v9315_v43  ;;  %7419 = vst [vmem:[%s9745_s3 + $0x178] sm:$0xff] %v6971_v55   ;;  %v7286_v28 = vpack.c.bf16 %v4644_v26, %v4643_v60  ;;  %vm4009_vm3 = vcmp.gt.f32.partialorder %v3753_v17, 0.0  ;;  %v4265_v22 = vmul.f32 0.01, %v3753_v17  ;;  %v9450_v43 = vpop.f32.mrb[111].mxu0  ;;  %v9460_v40 = vpop.f32.mrb[111].mxu1 }
 0x1b6   :  { %7483 = vst [vmem:[%s9745_s3 + $0x378] sm:$0xff] %v7291_v14   ;;  %v3879_v37 = vadd.f32 %v9264_v29, %v9325_v58  ;;  %7418 = vst [vmem:[%s9745_s3 + $0x170] sm:$0xff] %v6966_v45   ;;  %vm4137_vm4 = vcmp.gt.f32.partialorder %v3881_v42, 0.0  ;;  %v4393_v16 = vmul.f32 0.01, %v3881_v42  ;;  %v3754_v58 = vadd.f32 %v9264_v29, %v9327_v35 }
 0x1b7   :  { %vm4007_vm0 = vcmp.gt.f32.partialorder %v3751_v62, 0.0  ;;  %v4263_v49 = vmul.f32 0.01, %v3751_v62  ;;  %7482 = vst [vmem:[%s9745_s3 + $0x370] sm:$0xff] %v7286_v28   ;;  %v4521_v9 = vsel %vm4009_vm3, %v3753_v17, %v4265_v22  ;;  %v3882_v10 = vadd.f32 %v9264_v29, %v9329_v27 }
 0x1b8   :  { %vm4135_vm5 = vcmp.gt.f32.partialorder %v3879_v37, 0.0  ;;  %v4391_v34 = vmul.f32 0.01, %v3879_v37  ;;  %v4649_v0 = vsel %vm4137_vm4, %v3881_v42, %v4393_v16  ;;  %v3752_v7 = vadd.f32 %v9264_v29, %v9331_v8 }
 0x1b9   :  { %v4519_v41 = vsel %vm4007_vm0, %v3751_v62, %v4263_v49  ;;  %vm4010_vm6 = vcmp.gt.f32.partialorder %v3754_v58, 0.0  ;;  %v4266_v39 = vmul.f32 0.01, %v3754_v58  ;;  %v3880_v32 = vadd.f32 %v9264_v29, %v9333_v2  ;;  %v9470_v27 = vpop.f32.mrb[112].mxu0 }
 0x1ba   :  { %v4647_v47 = vsel %vm4135_vm5, %v3879_v37, %v4391_v34  ;;  %vm4138_vm7 = vcmp.gt.f32.partialorder %v3882_v10, 0.0  ;;  %v4394_v44 = vmul.f32 0.01, %v3882_v10  ;;  %vm4008_vm8 = vcmp.gt.f32.partialorder %v3752_v7, 0.0  ;;  %v9472_v54 = vpop.f32.mrb[112].mxu1  ;;  %v9476_v60 = vpop.f32.mrb[113].mxu0 }
 0x1bb   :  { %v4264_v35 = vmul.f32 0.01, %v3752_v7  ;;  %v4522_v23 = vsel %vm4010_vm6, %v3754_v58, %v4266_v39  ;;  %vm4136_vm9 = vcmp.gt.f32.partialorder %v3880_v32, 0.0  ;;  %v4392_v13 = vmul.f32 0.01, %v3880_v32  ;;  %v9478_v11 = vpop.f32.mrb[113].mxu1 }
 0x1bc   :  { %v3757_v61 = vadd.f32 %v9264_v29, %v9341_v50  ;;  %v6981_v8 = vpack.c.bf16 %v4522_v23, %v4521_v9  ;;  %v4650_v57 = vsel %vm4138_vm7, %v3882_v10, %v4394_v44  ;;  %v3885_v2 = vadd.f32 %v9264_v29, %v9343_v1  ;;  %v9480_v55 = vpop.f32.mrb[114].mxu0  ;;  %v9482_v50 = vpop.f32.mrb[114].mxu1 }
 0x1bd   :  { %v4520_v59 = vsel %vm4008_vm8, %v3752_v7, %v4264_v35  ;;  %v7301_v3 = vpack.c.bf16 %v4650_v57, %v4649_v0  ;;  %v4648_v52 = vsel %vm4136_vm9, %v3880_v32, %v4392_v13  ;;  %v9487_v17 = vpop.f32.mrb[115].mxu0  ;;  %v3755_v45 = vadd.f32 %v9264_v29, %v9353_v15  ;;  %v9503_v28 = vpop.f32.mrb[115].mxu1 }
 0x1be   :  { %v6976_v5 = vpack.c.bf16 %v4520_v59, %v4519_v41  ;;  %vm4013_vm10 = vcmp.gt.f32.partialorder %v3757_v61, 0.0  ;;  %7421 = vst [vmem:[%s9745_s3 + $0x188] sm:$0xff] %v6981_v8   ;;  %v7296_v14 = vpack.c.bf16 %v4648_v52, %v4647_v47  ;;  %v4269_v12 = vmul.f32 0.01, %v3757_v61 }
 0x1bf   :  { %vm4141_vm11 = vcmp.gt.f32.partialorder %v3885_v2, 0.0  ;;  %v4397_v1 = vmul.f32 0.01, %v3885_v2  ;;  %7485 = vst [vmem:[%s9745_s3 + $0x388] sm:$0xff] %v7301_v3   ;;  %v3883_v26 = vadd.f32 %v9264_v29, %v9355_v18  ;;  %v3758_v42 = vadd.f32 %v9264_v29, %v9365_v51 }
 0x1c0   :  { %7420 = vst [vmem:[%s9745_s3 + $0x180] sm:$0xff] %v6976_v5   ;;  %v3886_v62 = vadd.f32 %v9264_v29, %v9367_v20  ;;  %7484 = vst [vmem:[%s9745_s3 + $0x380] sm:$0xff] %v7296_v14   ;;  %v4525_v22 = vsel %vm4013_vm10, %v3757_v61, %v4269_v12  ;;  %v3756_v15 = vadd.f32 %v9264_v29, %v9373_v36  ;;  %vm4011_vm12 = vcmp.gt.f32.partialorder %v3755_v45, 0.0 }
 0x1c1   :  { %v4653_v37 = vsel %vm4141_vm11, %v3885_v2, %v4397_v1  ;;  %v3884_v18 = vadd.f32 %v9264_v29, %v9375_v6  ;;  %v4267_v51 = vmul.f32 0.01, %v3755_v45  ;;  %vm4139_vm13 = vcmp.gt.f32.partialorder %v3883_v26, 0.0  ;;  %v9513_v0 = vpop.f32.mrb[116].mxu0 }
 0x1c2   :  { %v4395_v16 = vmul.f32 0.01, %v3883_v26  ;;  %vm4014_vm14 = vcmp.gt.f32.partialorder %v3758_v42, 0.0  ;;  %v4270_v20 = vmul.f32 0.01, %v3758_v42  ;;  %vm4142_vm15 = vcmp.gt.f32.partialorder %v3886_v62, 0.0 }
 0x1c3   :  { %v4398_v49 = vmul.f32 0.01, %v3886_v62  ;;  %v4523_v9 = vsel %vm4011_vm12, %v3755_v45, %v4267_v51  ;;  %vm4012_vm1 = vcmp.gt.f32.partialorder %v3756_v15, 0.0  ;;  %v4268_v58 = vmul.f32 0.01, %v3756_v15  ;;  %v9515_v41 = vpop.f32.mrb[116].mxu1 }
 0x1c4   :  { %v4651_v34 = vsel %vm4139_vm13, %v3883_v26, %v4395_v16  ;;  %v4526_v36 = vsel %vm4014_vm14, %v3758_v42, %v4270_v20  ;;  %vm4140_vm2 = vcmp.gt.f32.partialorder %v3884_v18, 0.0  ;;  %v4396_v6 = vmul.f32 0.01, %v3884_v18  ;;  %v9517_v7 = vpop.f32.mrb[117].mxu0  ;;  %v9519_v47 = vpop.f32.mrb[117].mxu1 }
 0x1c5   :  { %v4654_v10 = vsel %vm4142_vm15, %v3886_v62, %v4398_v49  ;;  %v6991_v39 = vpack.c.bf16 %v4526_v36, %v4525_v22  ;;  %v4524_v44 = vsel %vm4012_vm1, %v3756_v15, %v4268_v58  ;;  %v3761_v35 = vadd.f32 %v9264_v29, %v9383_v48  ;;  %v9523_v23 = vpop.f32.mrb[118].mxu0  ;;  %v9525_v13 = vpop.f32.mrb[118].mxu1 }
 0x1c6   :  { %v7311_v32 = vpack.c.bf16 %v4654_v10, %v4653_v37  ;;  %v6986_v61 = vpack.c.bf16 %v4524_v44, %v4523_v9  ;;  %v4652_v8 = vsel %vm4140_vm2, %v3884_v18, %v4396_v6  ;;  %v3889_v57 = vadd.f32 %v9264_v29, %v9385_v46  ;;  %v9531_v2 = vpop.f32.mrb[119].mxu0  ;;  %v9533_v3 = vpop.f32.mrb[119].mxu1 }
 0x1c7   :  { %v3759_v59 = vadd.f32 %v9264_v29, %v9387_v63  ;;  %7423 = vst [vmem:[%s9745_s3 + $0x198] sm:$0xff] %v6991_v39   ;;  %v7306_v48 = vpack.c.bf16 %v4652_v8, %v4651_v34  ;;  %vm4017_vm3 = vcmp.gt.f32.partialorder %v3761_v35, 0.0  ;;  %v4273_v5 = vmul.f32 0.01, %v3761_v35 }
 0x1c8   :  { %7487 = vst [vmem:[%s9745_s3 + $0x398] sm:$0xff] %v7311_v32   ;;  %v3887_v46 = vadd.f32 %v9264_v29, %v9389_v56  ;;  %7422 = vst [vmem:[%s9745_s3 + $0x190] sm:$0xff] %v6986_v61   ;;  %vm4145_vm4 = vcmp.gt.f32.partialorder %v3889_v57, 0.0  ;;  %v4401_v63 = vmul.f32 0.01, %v3889_v57  ;;  %v3762_v1 = vadd.f32 %v9264_v29, %v9394_v33 }
 0x1c9   :  { %vm4015_vm0 = vcmp.gt.f32.partialorder %v3759_v59, 0.0  ;;  %v4271_v52 = vmul.f32 0.01, %v3759_v59  ;;  %7486 = vst [vmem:[%s9745_s3 + $0x390] sm:$0xff] %v7306_v48   ;;  %v4529_v14 = vsel %vm4017_vm3, %v3761_v35, %v4273_v5  ;;  %v3890_v26 = vadd.f32 %v9264_v29, %v9410_v38  ;;  %v9555_v62 = vpop.f32.mrb[120].mxu0 }
 0x1ca   :  { %vm4143_vm5 = vcmp.gt.f32.partialorder %v3887_v46, 0.0  ;;  %v4399_v12 = vmul.f32 0.01, %v3887_v46  ;;  %v4657_v45 = vsel %vm4145_vm4, %v3889_v57, %v4401_v63  ;;  %v3760_v42 = vadd.f32 %v9264_v29, %v9412_v53  ;;  %v9559_v18 = vpop.f32.mrb[120].mxu1  ;;  %v9561_v51 = vpop.f32.mrb[121].mxu0 }
 0x1cb   :  { %v4527_v56 = vsel %vm4015_vm0, %v3759_v59, %v4271_v52  ;;  %vm4018_vm6 = vcmp.gt.f32.partialorder %v3762_v1, 0.0  ;;  %v4274_v37 = vmul.f32 0.01, %v3762_v1  ;;  %v3888_v15 = vadd.f32 %v9264_v29, %v9422_v25  ;;  %v9565_v49 = vpop.f32.mrb[121].mxu1  ;;  %v9567_v9 = vpop.f32.mrb[122].mxu0 }
 0x1cc   :  { %v4655_v22 = vsel %vm4143_vm5, %v3887_v46, %v4399_v12  ;;  %vm4146_vm7 = vcmp.gt.f32.partialorder %v3890_v26, 0.0  ;;  %v4402_v33 = vmul.f32 0.01, %v3890_v26  ;;  %vm4016_vm8 = vcmp.gt.f32.partialorder %v3760_v42, 0.0  ;;  %v9571_v10 = vpop.f32.mrb[122].mxu1  ;;  %v9573_v6 = vpop.f32.mrb[123].mxu0 }
 0x1cd   :  { %v4272_v16 = vmul.f32 0.01, %v3760_v42  ;;  %v4530_v38 = vsel %vm4018_vm6, %v3762_v1, %v4274_v37  ;;  %vm4144_vm9 = vcmp.gt.f32.partialorder %v3888_v15, 0.0  ;;  %v4400_v20 = vmul.f32 0.01, %v3888_v15  ;;  %v9575_v35 = vpop.f32.mrb[123].mxu1 }
 0x1ce   :  { %v3765_v53 = vadd.f32 %v9264_v29, %v9424_v30  ;;  %v7001_v34 = vpack.c.bf16 %v4530_v38, %v4529_v14  ;;  %v4658_v25 = vsel %vm4146_vm7, %v3890_v26, %v4402_v33  ;;  %v3893_v36 = vadd.f32 %v9264_v29, %v9428_v4 }
 0x1cf   :  { %v4528_v58 = vsel %vm4016_vm8, %v3760_v42, %v4272_v16  ;;  %v7321_v39 = vpack.c.bf16 %v4658_v25, %v4657_v45  ;;  %v4656_v44 = vsel %vm4144_vm9, %v3888_v15, %v4400_v20  ;;  %v3763_v4 = vadd.f32 %v9264_v29, %v9430_v21 }
 0x1d0   :  { %v6996_v32 = vpack.c.bf16 %v4528_v58, %v4527_v56  ;;  %vm4021_vm10 = vcmp.gt.f32.partialorder %v3765_v53, 0.0  ;;  %7425 = vst [vmem:[%s9745_s3 + $0x1a8] sm:$0xff] %v7001_v34   ;;  %v7316_v30 = vpack.c.bf16 %v4656_v44, %v4655_v22  ;;  %v4277_v61 = vmul.f32 0.01, %v3765_v53 }
 0x1d1   :  { %vm4149_vm11 = vcmp.gt.f32.partialorder %v3893_v36, 0.0  ;;  %v4405_v8 = vmul.f32 0.01, %v3893_v36  ;;  %7489 = vst [vmem:[%s9745_s3 + $0x3a8] sm:$0xff] %v7321_v39   ;;  %v3891_v57 = vadd.f32 %v9264_v29, %v9436_v19  ;;  %v3766_v59 = vadd.f32 %v9264_v29, %v9438_v31  ;;  %v9601_v52 = vpop.f32.mrb[124].mxu0 }
 0x1d2   :  { %7424 = vst [vmem:[%s9745_s3 + $0x1a0] sm:$0xff] %v6996_v32   ;;  %v3894_v48 = vadd.f32 %v9264_v29, %v9448_v24  ;;  %7488 = vst [vmem:[%s9745_s3 + $0x3a0] sm:$0xff] %v7316_v30   ;;  %v4533_v5 = vsel %vm4021_vm10, %v3765_v53, %v4277_v61  ;;  %v3764_v63 = vadd.f32 %v9264_v29, %v9450_v43  ;;  %vm4019_vm12 = vcmp.gt.f32.partialorder %v3763_v4, 0.0  ;;  %v9603_v56 = vpop.f32.mrb[124].mxu1  ;;  %v9605_v43 = vpop.f32.mrb[125].mxu0 }
 0x1d3   :  { %v4661_v46 = vsel %vm4149_vm11, %v3893_v36, %v4405_v8  ;;  %v3892_v21 = vadd.f32 %v9264_v29, %v9460_v40  ;;  %v4275_v19 = vmul.f32 0.01, %v3763_v4  ;;  %vm4147_vm13 = vcmp.gt.f32.partialorder %v3891_v57, 0.0  ;;  %v9607_v22 = vpop.f32.mrb[125].mxu1  ;;  %v9609_v37 = vpop.f32.mrb[126].mxu0 }
 0x1d4   :  { %v4403_v31 = vmul.f32 0.01, %v3891_v57  ;;  %vm4022_vm14 = vcmp.gt.f32.partialorder %v3766_v59, 0.0  ;;  %v4278_v24 = vmul.f32 0.01, %v3766_v59  ;;  %vm4150_vm15 = vcmp.gt.f32.partialorder %v3894_v48, 0.0 }
 0x1d5   :  { %v4406_v14 = vmul.f32 0.01, %v3894_v48  ;;  %v4531_v12 = vsel %vm4019_vm12, %v3763_v4, %v4275_v19  ;;  %vm4020_vm1 = vcmp.gt.f32.partialorder %v3764_v63, 0.0  ;;  %v4276_v45 = vmul.f32 0.01, %v3764_v63  ;;  %v9613_v20 = vpop.f32.mrb[126].mxu1 }
 0x1d6   :  { %v4659_v1 = vsel %vm4147_vm13, %v3891_v57, %v4403_v31  ;;  %v4534_v26 = vsel %vm4022_vm14, %v3766_v59, %v4278_v24  ;;  %vm4148_vm2 = vcmp.gt.f32.partialorder %v3892_v21, 0.0  ;;  %v4404_v42 = vmul.f32 0.01, %v3892_v21  ;;  %v9615_v53 = vpop.f32.mrb[127].mxu0  ;;  %v9621_v39 = vpop.f32.mrb[127].mxu1 }
 0x1d7   :  { %v4662_v40 = vsel %vm4150_vm15, %v3894_v48, %v4406_v14  ;;  %v7011_v15 = vpack.c.bf16 %v4534_v26, %v4533_v5  ;;  %v4532_v16 = vsel %vm4020_vm1, %v3764_v63, %v4276_v45  ;;  %v3769_v38 = vadd.f32 %v9264_v29, %v9470_v27 }
 0x1d8   :  { %v7331_v33 = vpack.c.bf16 %v4662_v40, %v4661_v46  ;;  %v7006_v34 = vpack.c.bf16 %v4532_v16, %v4531_v12  ;;  %v4660_v25 = vsel %vm4148_vm2, %v3892_v21, %v4404_v42  ;;  %v3897_v58 = vadd.f32 %v9264_v29, %v9472_v54 }
 0x1d9   :  { %v3767_v36 = vadd.f32 %v9264_v29, %v9476_v60  ;;  %7427 = vst [vmem:[%s9745_s3 + $0x1b8] sm:$0xff] %v7011_v15   ;;  %v7326_v27 = vpack.c.bf16 %v4660_v25, %v4659_v1  ;;  %vm4025_vm3 = vcmp.gt.f32.partialorder %v3769_v38, 0.0  ;;  %v4281_v32 = vmul.f32 0.01, %v3769_v38 }
 0x1da   :  { %7491 = vst [vmem:[%s9745_s3 + $0x3b8] sm:$0xff] %v7331_v33   ;;  %v3895_v44 = vadd.f32 %v9264_v29, %v9478_v11  ;;  %7426 = vst [vmem:[%s9745_s3 + $0x1b0] sm:$0xff] %v7006_v34   ;;  %vm4153_vm4 = vcmp.gt.f32.partialorder %v3897_v58, 0.0  ;;  %v4409_v54 = vmul.f32 0.01, %v3897_v58  ;;  %v3770_v8 = vadd.f32 %v9264_v29, %v9480_v55 }
 0x1db   :  { %vm4023_vm0 = vcmp.gt.f32.partialorder %v3767_v36, 0.0  ;;  %v4279_v60 = vmul.f32 0.01, %v3767_v36  ;;  %7490 = vst [vmem:[%s9745_s3 + $0x3b0] sm:$0xff] %v7326_v27   ;;  %v4537_v30 = vsel %vm4025_vm3, %v3769_v38, %v4281_v32  ;;  %v3898_v57 = vadd.f32 %v9264_v29, %v9482_v50 }
 0x1dc   :  { %vm4151_vm5 = vcmp.gt.f32.partialorder %v3895_v44, 0.0  ;;  %v4407_v61 = vmul.f32 0.01, %v3895_v44  ;;  %v4665_v4 = vsel %vm4153_vm4, %v3897_v58, %v4409_v54  ;;  %v3768_v59 = vadd.f32 %v9264_v29, %v9487_v17 }
 0x1dd   :  { %v4535_v11 = vsel %vm4023_vm0, %v3767_v36, %v4279_v60  ;;  %vm4026_vm6 = vcmp.gt.f32.partialorder %v3770_v8, 0.0  ;;  %v4282_v5 = vmul.f32 0.01, %v3770_v8  ;;  %v3896_v46 = vadd.f32 %v9264_v29, %v9503_v28 }
 0x1de   :  { %v4663_v48 = vsel %vm4151_vm5, %v3895_v44, %v4407_v61  ;;  %vm4154_vm7 = vcmp.gt.f32.partialorder %v3898_v57, 0.0  ;;  %v4410_v63 = vmul.f32 0.01, %v3898_v57  ;;  %vm4024_vm8 = vcmp.gt.f32.partialorder %v3768_v59, 0.0 }
 0x1df   :  { %v4280_v21 = vmul.f32 0.01, %v3768_v59  ;;  %v4538_v19 = vsel %vm4026_vm6, %v3770_v8, %v4282_v5  ;;  %vm4152_vm9 = vcmp.gt.f32.partialorder %v3896_v46, 0.0  ;;  %v4408_v55 = vmul.f32 0.01, %v3896_v46 }
 0x1e0   :  { %v3773_v31 = vadd.f32 %v9264_v29, %v9513_v0  ;;  %v7021_v50 = vpack.c.bf16 %v4538_v19, %v4537_v30  ;;  %v4666_v24 = vsel %vm4154_vm7, %v3898_v57, %v4410_v63  ;;  %v3901_v17 = vadd.f32 %v9264_v29, %v9515_v41 }
 0x1e1   :  { %v4536_v14 = vsel %vm4024_vm8, %v3768_v59, %v4280_v21  ;;  %v7341_v12 = vpack.c.bf16 %v4666_v24, %v4665_v4  ;;  %v4664_v45 = vsel %vm4152_vm9, %v3896_v46, %v4408_v55  ;;  %v3771_v0 = vadd.f32 %v9264_v29, %v9517_v7 }
 0x1e2   :  { %v7016_v1 = vpack.c.bf16 %v4536_v14, %v4535_v11  ;;  %vm4029_vm10 = vcmp.gt.f32.partialorder %v3773_v31, 0.0  ;;  %7429 = vst [vmem:[%s9745_s3 + $0x1c8] sm:$0xff] %v7021_v50   ;;  %v7336_v28 = vpack.c.bf16 %v4664_v45, %v4663_v48  ;;  %v4285_v26 = vmul.f32 0.01, %v3773_v31 }
 0x1e3   :  { %vm4157_vm11 = vcmp.gt.f32.partialorder %v3901_v17, 0.0  ;;  %v4413_v40 = vmul.f32 0.01, %v3901_v17  ;;  %7493 = vst [vmem:[%s9745_s3 + $0x3c8] sm:$0xff] %v7341_v12   ;;  %v3899_v41 = vadd.f32 %v9264_v29, %v9519_v47  ;;  %v3774_v42 = vadd.f32 %v9264_v29, %v9523_v23 }
 0x1e4   :  { %7428 = vst [vmem:[%s9745_s3 + $0x1c0] sm:$0xff] %v7016_v1   ;;  %v3902_v15 = vadd.f32 %v9264_v29, %v9525_v13  ;;  %7492 = vst [vmem:[%s9745_s3 + $0x3c0] sm:$0xff] %v7336_v28   ;;  %v4541_v33 = vsel %vm4029_vm10, %v3773_v31, %v4285_v26  ;;  %v3772_v38 = vadd.f32 %v9264_v29, %v9531_v2  ;;  %vm4027_vm12 = vcmp.gt.f32.partialorder %v3771_v0, 0.0 }
 0x1e5   :  { %v4669_v16 = vsel %vm4157_vm11, %v3901_v17, %v4413_v40  ;;  %v3900_v7 = vadd.f32 %v9264_v29, %v9533_v3  ;;  %v4283_v47 = vmul.f32 0.01, %v3771_v0  ;;  %vm4155_vm13 = vcmp.gt.f32.partialorder %v3899_v41, 0.0 }
 0x1e6   :  { %v4411_v34 = vmul.f32 0.01, %v3899_v41  ;;  %vm4030_vm14 = vcmp.gt.f32.partialorder %v3774_v42, 0.0  ;;  %v4286_v23 = vmul.f32 0.01, %v3774_v42  ;;  %vm4158_vm15 = vcmp.gt.f32.partialorder %v3902_v15, 0.0 }
 0x1e7   :  { %v4414_v13 = vmul.f32 0.01, %v3902_v15  ;;  %v4539_v25 = vsel %vm4027_vm12, %v3771_v0, %v4283_v47  ;;  %vm4028_vm1 = vcmp.gt.f32.partialorder %v3772_v38, 0.0  ;;  %v4284_v36 = vmul.f32 0.01, %v3772_v38 }
 0x1e8   :  { %v4667_v58 = vsel %vm4155_vm13, %v3899_v41, %v4411_v34  ;;  %v4542_v27 = vsel %vm4030_vm14, %v3774_v42, %v4286_v23  ;;  %vm4156_vm2 = vcmp.gt.f32.partialorder %v3900_v7, 0.0  ;;  %v4412_v44 = vmul.f32 0.01, %v3900_v7 }
 0x1e9   :  { %v4670_v32 = vsel %vm4158_vm15, %v3902_v15, %v4414_v13  ;;  %v7031_v2 = vpack.c.bf16 %v4542_v27, %v4541_v33  ;;  %v4540_v60 = vsel %vm4028_vm1, %v3772_v38, %v4284_v36  ;;  %v3777_v3 = vadd.f32 %v9264_v29, %v9555_v62 }
 0x1ea   :  { %v7351_v54 = vpack.c.bf16 %v4670_v32, %v4669_v16  ;;  %v7026_v30 = vpack.c.bf16 %v4540_v60, %v4539_v25  ;;  %v4668_v61 = vsel %vm4156_vm2, %v3900_v7, %v4412_v44  ;;  %v3905_v8 = vadd.f32 %v9264_v29, %v9559_v18 }
 0x1eb   :  { %v3775_v4 = vadd.f32 %v9264_v29, %v9561_v51  ;;  %7431 = vst [vmem:[%s9745_s3 + $0x1d8] sm:$0xff] %v7031_v2   ;;  %v7346_v11 = vpack.c.bf16 %v4668_v61, %v4667_v58  ;;  %vm4033_vm3 = vcmp.gt.f32.partialorder %v3777_v3, 0.0  ;;  %v4289_v57 = vmul.f32 0.01, %v3777_v3 }
 0x1ec   :  { %7495 = vst [vmem:[%s9745_s3 + $0x3d8] sm:$0xff] %v7351_v54   ;;  %v3903_v62 = vadd.f32 %v9264_v29, %v9565_v49  ;;  %7430 = vst [vmem:[%s9745_s3 + $0x1d0] sm:$0xff] %v7026_v30   ;;  %vm4161_vm4 = vcmp.gt.f32.partialorder %v3905_v8, 0.0  ;;  %v4417_v18 = vmul.f32 0.01, %v3905_v8  ;;  %v3778_v48 = vadd.f32 %v9264_v29, %v9567_v9 }
 0x1ed   :  { %vm4031_vm0 = vcmp.gt.f32.partialorder %v3775_v4, 0.0  ;;  %v4287_v51 = vmul.f32 0.01, %v3775_v4  ;;  %7494 = vst [vmem:[%s9745_s3 + $0x3d0] sm:$0xff] %v7346_v11   ;;  %v4545_v59 = vsel %vm4033_vm3, %v3777_v3, %v4289_v57  ;;  %v3906_v49 = vadd.f32 %v9264_v29, %v9571_v10 }
 0x1ee   :  { %vm4159_vm5 = vcmp.gt.f32.partialorder %v3903_v62, 0.0  ;;  %v4673_v5 = vsel %vm4161_vm4, %v3905_v8, %v4417_v18  ;;  %v4415_v46 = vmul.f32 0.01, %v3903_v62  ;;  %v3776_v63 = vadd.f32 %v9264_v29, %v9573_v6 }
 0x1ef   :  { %v4543_v21 = vsel %vm4031_vm0, %v3775_v4, %v4287_v51  ;;  %vm4034_vm6 = vcmp.gt.f32.partialorder %v3778_v48, 0.0  ;;  %v4290_v19 = vmul.f32 0.01, %v3778_v48  ;;  %v3904_v55 = vadd.f32 %v9264_v29, %v9575_v35 }
 0x1f0   :  { %vm4162_vm7 = vcmp.gt.f32.partialorder %v3906_v49, 0.0  ;;  %v4418_v31 = vmul.f32 0.01, %v3906_v49  ;;  %vm4032_vm8 = vcmp.gt.f32.partialorder %v3776_v63, 0.0  ;;  %v4288_v50 = vmul.f32 0.01, %v3776_v63 }
 0x1f1   :  { %v4546_v24 = vsel %vm4034_vm6, %v3778_v48, %v4290_v19  ;;  %vm4160_vm9 = vcmp.gt.f32.partialorder %v3904_v55, 0.0  ;;  %v4416_v9 = vmul.f32 0.01, %v3904_v55  ;;  %v3781_v14 = vadd.f32 %v9264_v29, %v9601_v52 }
 0x1f2   :  { %v7041_v10 = vpack.c.bf16 %v4546_v24, %v4545_v59  ;;  %v4674_v17 = vsel %vm4162_vm7, %v3906_v49, %v4418_v31  ;;  %v4544_v12 = vsel %vm4032_vm8, %v3776_v63, %v4288_v50  ;;  %v3909_v6 = vadd.f32 %v9264_v29, %v9603_v56 }
 0x1f3   :  { %v4671_v1 = vsel %vm4159_vm5, %v3903_v62, %v4415_v46  ;;  %v7361_v45 = vpack.c.bf16 %v4674_v17, %v4673_v5  ;;  %v7036_v35 = vpack.c.bf16 %v4544_v12, %v4543_v21  ;;  %v4672_v28 = vsel %vm4160_vm9, %v3904_v55, %v4416_v9 }
 0x1f4   :  { %7433 = vst [vmem:[%s9745_s3 + $0x1e8] sm:$0xff] %v7041_v10   ;;  %v7356_v26 = vpack.c.bf16 %v4672_v28, %v4671_v1  ;;  %vm4037_vm10 = vcmp.gt.f32.partialorder %v3781_v14, 0.0  ;;  %v4293_v40 = vmul.f32 0.01, %v3781_v14  ;;  %v4421_v0 = vmul.f32 0.01, %v3909_v6 }
 0x1f5   :  { %7497 = vst [vmem:[%s9745_s3 + $0x3e8] sm:$0xff] %v7361_v45   ;;  %7432 = vst [vmem:[%s9745_s3 + $0x1e0] sm:$0xff] %v7036_v35   ;;  %v3779_v52 = vadd.f32 %v9264_v29, %v9605_v43  ;;  %v3907_v56 = vadd.f32 %v9264_v29, %v9607_v22  ;;  %v3782_v41 = vadd.f32 %v9264_v29, %v9609_v37  ;;  %vm4165_vm11 = vcmp.gt.f32.partialorder %v3909_v6, 0.0 }
 0x1f6   :  { %v3910_v42 = vadd.f32 %v9264_v29, %v9613_v20  ;;  %7496 = vst [vmem:[%s9745_s3 + $0x3e0] sm:$0xff] %v7356_v26   ;;  %v3780_v15 = vadd.f32 %v9264_v29, %v9615_v53  ;;  %v3908_v43 = vadd.f32 %v9264_v29, %v9621_v39  ;;  %v4549_v33 = vsel %vm4037_vm10, %v3781_v14, %v4293_v40 }
 0x1f7   :  { %vm4035_vm12 = vcmp.gt.f32.partialorder %v3779_v52, 0.0  ;;  %v4291_v22 = vmul.f32 0.01, %v3779_v52  ;;  %v4419_v16 = vmul.f32 0.01, %v3907_v56  ;;  %vm4038_vm13 = vcmp.gt.f32.partialorder %v3782_v41, 0.0 }
 0x1f8   :  { %v4294_v37 = vmul.f32 0.01, %v3782_v41  ;;  %vm4166_vm14 = vcmp.gt.f32.partialorder %v3910_v42, 0.0  ;;  %v4422_v38 = vmul.f32 0.01, %v3910_v42  ;;  %v4677_v20 = vsel %vm4165_vm11, %v3909_v6, %v4421_v0 }
 0x1f9   :  { %vm4163_vm15 = vcmp.gt.f32.partialorder %v3907_v56, 0.0  ;;  %vm4036_vm1 = vcmp.gt.f32.partialorder %v3780_v15, 0.0  ;;  %v4292_v7 = vmul.f32 0.01, %v3780_v15  ;;  %vm4164_vm2 = vcmp.gt.f32.partialorder %v3908_v43, 0.0 }
 0x1fa   :  { %v4550_v47 = vsel %vm4038_vm13, %v3782_v41, %v4294_v37  ;;  %v4678_v34 = vsel %vm4166_vm14, %v3910_v42, %v4422_v38  ;;  %v4420_v23 = vmul.f32 0.01, %v3908_v43  ;;  %v4547_v53 = vsel %vm4035_vm12, %v3779_v52, %v4291_v22 }
 0x1fb   :  { %v7051_v13 = vpack.c.bf16 %v4550_v47, %v4549_v33  ;;  %v7371_v25 = vpack.c.bf16 %v4678_v34, %v4677_v20  ;;  %v4548_v29 = vsel %vm4036_vm1, %v3780_v15, %v4292_v7  ;;  %v4675_v39 = vsel %vm4163_vm15, %v3907_v56, %v4419_v16 }
 0x1fc   :  { %v7046_v58 = vpack.c.bf16 %v4548_v29, %v4547_v53  ;;  %v4676_v36 = vsel %vm4164_vm2, %v3908_v43, %v4420_v23 }
 0x1fd   :  { %7435 = vst [vmem:[%s9745_s3 + $0x1f8] sm:$0xff] %v7051_v13   ;;  %7499 = vst [vmem:[%s9745_s3 + $0x3f8] sm:$0xff] %v7371_v25   ;;  %v7366_v27 = vpack.c.bf16 %v4676_v36, %v4675_v39 }
 0x1fe   :  { %7434 = vst [vmem:[%s9745_s3 + $0x1f0] sm:$0xff] %v7046_v58  }
 0x1ff   :  { %7498 = vst [vmem:[%s9745_s3 + $0x3f0] sm:$0xff] %v7366_v27  }

// kernel: encoder_mnist_forward.10
= control target key start
LH: loop header
LB: loop body
LE: loop exit
PB: predicated region body
PF: predicated region fallthrough
CT: control target
= control target key end

     0   :  { %s1631_s0 = inlined_call_operand.vmem [shape: bf16[512,128], index: 0, kind: input, shape index: {}]   ;;  %s1632_s1 = inlined_call_operand.vmem [shape: f32[1,128], index: 1, kind: input, shape index: {}]   ;;  %s1633_s2 = inlined_call_operand.vmem [shape: f32[1,128], index: 2, kind: input, shape index: {}]   ;;  %s1634_s3 = inlined_call_operand.vmem [shape: bf16[512,128], index: 3, kind: output, shape index: {}]  }
   0x1   :  { %v931_v0 = vld [vmem:[%s1631_s0] sm:$0xff]   ;;  %v1218_v4 = vld [vmem:[%s1631_s0 + $0x8] sm:$0xff]   ;;  %v1219_v5 = vld [vmem:[%s1631_s0 + $0x10] sm:$0xff]  }
   0x2   :  { %v1306_v1 = vld [vmem:[%s1632_s1] ss:$0 sm:$0xff]  ;;  %v932_v2 = vunpack.c.l.bf16 %v931_v0  ;;  %v933_v3 = vunpack.c.h.bf16 %v931_v0  ;;  %v1220_v6 = vld [vmem:[%s1631_s0 + $0x18] sm:$0xff]   ;;  %v936_v8 = vunpack.c.l.bf16 %v1218_v4  ;;  %v937_v9 = vunpack.c.h.bf16 %v1218_v4  ;;  %v1222_v35 = vld [vmem:[%s1631_s0 + $0x28] sm:$0xff]  }
   0x3   :  { %v1320_v7 = vld [vmem:[%s1633_s2] ss:$0 sm:$0xff]  ;;  %v940_v10 = vunpack.c.l.bf16 %v1219_v5  ;;  %v941_v11 = vunpack.c.h.bf16 %v1219_v5  ;;  %v944_v14 = vunpack.c.l.bf16 %v1220_v6  ;;  %v945_v15 = vunpack.c.h.bf16 %v1220_v6  ;;  %v1223_v48 = vld [vmem:[%s1631_s0 + $0x30] sm:$0xff]   ;;  %v1224_v4 = vld [vmem:[%s1631_s0 + $0x38] sm:$0xff]  }
   0x4   :  { %v149_v12 = vmul.f32 %v932_v2, %v1306_v1  ;;  %v150_v13 = vmul.f32 %v933_v3, %v1306_v1  ;;  %v151_v16 = vmul.f32 %v936_v8, %v1306_v1  ;;  %v152_v17 = vmul.f32 %v937_v9, %v1306_v1  ;;  %v1221_v34 = vld [vmem:[%s1631_s0 + $0x20] sm:$0xff]  }
   0x5   :  { %v153_v18 = vmul.f32 %v940_v10, %v1306_v1  ;;  %v154_v19 = vmul.f32 %v941_v11, %v1306_v1  ;;  %v155_v22 = vmul.f32 %v944_v14, %v1306_v1  ;;  %v156_v23 = vmul.f32 %v945_v15, %v1306_v1  ;;  %v1225_v15 = vld [vmem:[%s1631_s0 + $0x40] sm:$0xff]  }
   0x6   :  { %v220_v20 = vadd.f32 %v1320_v7, %v149_v12  ;;  %v221_v21 = vadd.f32 %v1320_v7, %v150_v13  ;;  %v222_v24 = vadd.f32 %v1320_v7, %v151_v16  ;;  %v223_v25 = vadd.f32 %v1320_v7, %v152_v17 }
   0x7   :  { %v224_v26 = vadd.f32 %v1320_v7, %v153_v18  ;;  %v225_v27 = vadd.f32 %v1320_v7, %v154_v19  ;;  %v226_v42 = vadd.f32 %v1320_v7, %v155_v22  ;;  %v227_v43 = vadd.f32 %v1320_v7, %v156_v23 }
   0x8   :  { %vm284_vm0 = vcmp.gt.f32.partialorder %v220_v20, 0.0  ;;  %vm285_vm1 = vcmp.gt.f32.partialorder %v221_v21, 0.0  ;;  %v348_v28 = vmul.f32 0.01, %v220_v20  ;;  %v349_v29 = vmul.f32 0.01, %v221_v21 }
   0x9   :  { %vm286_vm2 = vcmp.gt.f32.partialorder %v222_v24, 0.0  ;;  %vm287_vm3 = vcmp.gt.f32.partialorder %v223_v25, 0.0  ;;  %v350_v30 = vmul.f32 0.01, %v222_v24  ;;  %v351_v31 = vmul.f32 0.01, %v223_v25 }
   0xa   :  { %v412_v32 = vsel %vm284_vm0, %v220_v20, %v348_v28  ;;  %v413_v33 = vsel %vm285_vm1, %v221_v21, %v349_v29  ;;  %vm288_vm4 = vcmp.gt.f32.partialorder %v224_v26, 0.0  ;;  %vm289_vm5 = vcmp.gt.f32.partialorder %v225_v27, 0.0 }
   0xb   :  { %v1061_v36 = vpack.c.bf16 %v413_v33, %v412_v32  ;;  %v414_v37 = vsel %vm286_vm2, %v222_v24, %v350_v30  ;;  %v415_v38 = vsel %vm287_vm3, %v223_v25, %v351_v31  ;;  %v352_v39 = vmul.f32 0.01, %v224_v26 }
   0xc   :  { %v1066_v40 = vpack.c.bf16 %v415_v38, %v414_v37  ;;  %v353_v41 = vmul.f32 0.01, %v225_v27  ;;  %v948_v45 = vunpack.c.l.bf16 %v1221_v34  ;;  %v949_v46 = vunpack.c.h.bf16 %v1221_v34 }
   0xd   :  { %1062 = vst [vmem:[%s1634_s3] sm:$0xff] %v1061_v36   ;;  %v416_v44 = vsel %vm288_vm4, %v224_v26, %v352_v39  ;;  %v952_v47 = vunpack.c.l.bf16 %v1222_v35  ;;  %vm290_vm6 = vcmp.gt.f32.partialorder %v226_v42, 0.0  ;;  %vm291_vm7 = vcmp.gt.f32.partialorder %v227_v43, 0.0  ;;  %v1226_v26 = vld [vmem:[%s1631_s0 + $0x48] sm:$0xff]  }
   0xe   :  { %1249 = vst [vmem:[%s1634_s3 + $0x8] sm:$0xff] %v1066_v40   ;;  %v417_v49 = vsel %vm289_vm5, %v225_v27, %v353_v41  ;;  %v354_v50 = vmul.f32 0.01, %v226_v42  ;;  %v355_v52 = vmul.f32 0.01, %v227_v43  ;;  %v157_v53 = vmul.f32 %v948_v45, %v1306_v1  ;;  %v1227_v27 = vld [vmem:[%s1631_s0 + $0x50] sm:$0xff]  }
   0xf   :  { %v1071_v51 = vpack.c.bf16 %v417_v49, %v416_v44  ;;  %v158_v54 = vmul.f32 %v949_v46, %v1306_v1  ;;  %v953_v56 = vunpack.c.h.bf16 %v1222_v35  ;;  %v159_v57 = vmul.f32 %v952_v47, %v1306_v1 }
  0x10   :  { %v418_v55 = vsel %vm290_vm6, %v226_v42, %v354_v50  ;;  %v956_v58 = vunpack.c.l.bf16 %v1223_v48  ;;  %v419_v59 = vsel %vm291_vm7, %v227_v43, %v355_v52  ;;  %v228_v60 = vadd.f32 %v1320_v7, %v157_v53 }
  0x11   :  { %1250 = vst [vmem:[%s1634_s3 + $0x10] sm:$0xff] %v1071_v51   ;;  %v229_v61 = vadd.f32 %v1320_v7, %v158_v54  ;;  %v957_v62 = vunpack.c.h.bf16 %v1223_v48  ;;  %v1076_v63 = vpack.c.bf16 %v419_v59, %v418_v55  ;;  %v160_v0 = vmul.f32 %v953_v56, %v1306_v1  ;;  %v1228_v55 = vld [vmem:[%s1631_s0 + $0x58] sm:$0xff]  }
  0x12   :  { %v230_v2 = vadd.f32 %v1320_v7, %v159_v57  ;;  %v161_v3 = vmul.f32 %v956_v58, %v1306_v1  ;;  %vm292_vm8 = vcmp.gt.f32.partialorder %v228_v60, 0.0  ;;  %v356_v5 = vmul.f32 0.01, %v228_v60 }
  0x13   :  { %vm293_vm9 = vcmp.gt.f32.partialorder %v229_v61, 0.0  ;;  %v357_v6 = vmul.f32 0.01, %v229_v61  ;;  %1251 = vst [vmem:[%s1634_s3 + $0x18] sm:$0xff] %v1076_v63   ;;  %v231_v8 = vadd.f32 %v1320_v7, %v160_v0  ;;  %v162_v10 = vmul.f32 %v957_v62, %v1306_v1 }
  0x14   :  { %vm294_vm10 = vcmp.gt.f32.partialorder %v230_v2, 0.0  ;;  %v358_v9 = vmul.f32 0.01, %v230_v2  ;;  %v420_v11 = vsel %vm292_vm8, %v228_v60, %v356_v5  ;;  %v232_v13 = vadd.f32 %v1320_v7, %v161_v3  ;;  %v1229_v60 = vld [vmem:[%s1631_s0 + $0x60] sm:$0xff]  }
  0x15   :  { %v421_v12 = vsel %vm293_vm9, %v229_v61, %v357_v6  ;;  %v960_v14 = vunpack.c.l.bf16 %v1224_v4  ;;  %vm295_vm11 = vcmp.gt.f32.partialorder %v231_v8, 0.0  ;;  %v359_v17 = vmul.f32 0.01, %v231_v8 }
  0x16   :  { %v1081_v16 = vpack.c.bf16 %v421_v12, %v420_v11  ;;  %v422_v18 = vsel %vm294_vm10, %v230_v2, %v358_v9  ;;  %v233_v19 = vadd.f32 %v1320_v7, %v162_v10  ;;  %vm296_vm12 = vcmp.gt.f32.partialorder %v232_v13, 0.0  ;;  %v1230_v9 = vld [vmem:[%s1631_s0 + $0x68] sm:$0xff]  }
  0x17   :  { %v360_v20 = vmul.f32 0.01, %v232_v13  ;;  %v961_v21 = vunpack.c.h.bf16 %v1224_v4  ;;  %v423_v22 = vsel %vm295_vm11, %v231_v8, %v359_v17  ;;  %v163_v23 = vmul.f32 %v960_v14, %v1306_v1 }
  0x18   :  { %1252 = vst [vmem:[%s1634_s3 + $0x20] sm:$0xff] %v1081_v16   ;;  %v964_v24 = vunpack.c.l.bf16 %v1225_v15  ;;  %v965_v25 = vunpack.c.h.bf16 %v1225_v15  ;;  %v1086_v28 = vpack.c.bf16 %v423_v22, %v422_v18  ;;  %vm297_vm13 = vcmp.gt.f32.partialorder %v233_v19, 0.0 }
  0x19   :  { %v361_v29 = vmul.f32 0.01, %v233_v19  ;;  %v424_v30 = vsel %vm296_vm12, %v232_v13, %v360_v20  ;;  %v164_v31 = vmul.f32 %v961_v21, %v1306_v1  ;;  %v234_v32 = vadd.f32 %v1320_v7, %v163_v23 }
  0x1a   :  { %v165_v33 = vmul.f32 %v964_v24, %v1306_v1  ;;  %v166_v34 = vmul.f32 %v965_v25, %v1306_v1  ;;  %1253 = vst [vmem:[%s1634_s3 + $0x28] sm:$0xff] %v1086_v28   ;;  %v968_v36 = vunpack.c.l.bf16 %v1226_v26  ;;  %v969_v37 = vunpack.c.h.bf16 %v1226_v26  ;;  %v1231_v28 = vld [vmem:[%s1631_s0 + $0x70] sm:$0xff]  }
  0x1b   :  { %v425_v35 = vsel %vm297_vm13, %v233_v19, %v361_v29  ;;  %v972_v38 = vunpack.c.l.bf16 %v1227_v27  ;;  %v235_v40 = vadd.f32 %v1320_v7, %v164_v31  ;;  %vm298_vm14 = vcmp.gt.f32.partialorder %v234_v32, 0.0 }
  0x1c   :  { %v1091_v39 = vpack.c.bf16 %v425_v35, %v424_v30  ;;  %v362_v41 = vmul.f32 0.01, %v234_v32  ;;  %v236_v42 = vadd.f32 %v1320_v7, %v165_v33  ;;  %v237_v43 = vadd.f32 %v1320_v7, %v166_v34 }
  0x1d   :  { %v167_v44 = vmul.f32 %v968_v36, %v1306_v1  ;;  %v168_v45 = vmul.f32 %v969_v37, %v1306_v1  ;;  %vm299_vm15 = vcmp.gt.f32.partialorder %v235_v40, 0.0  ;;  %v363_v46 = vmul.f32 0.01, %v235_v40  ;;  %v1232_v37 = vld [vmem:[%s1631_s0 + $0x78] sm:$0xff]  }
  0x1e   :  { %1254 = vst [vmem:[%s1634_s3 + $0x30] sm:$0xff] %v1091_v39   ;;  %v426_v47 = vsel %vm298_vm14, %v234_v32, %v362_v41  ;;  %v973_v48 = vunpack.c.h.bf16 %v1227_v27  ;;  %vm300_vm0 = vcmp.gt.f32.partialorder %v236_v42, 0.0  ;;  %vm301_vm1 = vcmp.gt.f32.partialorder %v237_v43, 0.0 }
  0x1f   :  { %v364_v49 = vmul.f32 0.01, %v236_v42  ;;  %v365_v50 = vmul.f32 0.01, %v237_v43  ;;  %v427_v51 = vsel %vm299_vm15, %v235_v40, %v363_v46  ;;  %v238_v52 = vadd.f32 %v1320_v7, %v167_v44 }
  0x20   :  { %v239_v53 = vadd.f32 %v1320_v7, %v168_v45  ;;  %v169_v54 = vmul.f32 %v972_v38, %v1306_v1  ;;  %v1096_v56 = vpack.c.bf16 %v427_v51, %v426_v47  ;;  %v170_v59 = vmul.f32 %v973_v48, %v1306_v1 }
  0x21   :  { %v428_v57 = vsel %vm300_vm0, %v236_v42, %v364_v49  ;;  %v429_v58 = vsel %vm301_vm1, %v237_v43, %v365_v50  ;;  %vm302_vm2 = vcmp.gt.f32.partialorder %v238_v52, 0.0  ;;  %v366_v62 = vmul.f32 0.01, %v238_v52  ;;  %v1233_v42 = vld [vmem:[%s1631_s0 + $0x80] sm:$0xff]   ;;  %v1234_v50 = vld [vmem:[%s1631_s0 + $0x88] sm:$0xff]  }
  0x22   :  { %v1101_v61 = vpack.c.bf16 %v429_v58, %v428_v57  ;;  %vm303_vm3 = vcmp.gt.f32.partialorder %v239_v53, 0.0  ;;  %1255 = vst [vmem:[%s1634_s3 + $0x38] sm:$0xff] %v1096_v56   ;;  %v367_v63 = vmul.f32 0.01, %v239_v53  ;;  %v240_v0 = vadd.f32 %v1320_v7, %v169_v54 }
  0x23   :  { %v241_v2 = vadd.f32 %v1320_v7, %v170_v59  ;;  %v976_v3 = vunpack.c.l.bf16 %v1228_v55  ;;  %v430_v4 = vsel %vm302_vm2, %v238_v52, %v366_v62  ;;  %v977_v5 = vunpack.c.h.bf16 %v1228_v55 }
  0x24   :  { %1256 = vst [vmem:[%s1634_s3 + $0x40] sm:$0xff] %v1101_v61   ;;  %v980_v6 = vunpack.c.l.bf16 %v1229_v60  ;;  %v981_v8 = vunpack.c.h.bf16 %v1229_v60  ;;  %v431_v10 = vsel %vm303_vm3, %v239_v53, %v367_v63  ;;  %vm304_vm4 = vcmp.gt.f32.partialorder %v240_v0, 0.0 }
  0x25   :  { %vm305_vm5 = vcmp.gt.f32.partialorder %v241_v2, 0.0  ;;  %v368_v11 = vmul.f32 0.01, %v240_v0  ;;  %v1106_v12 = vpack.c.bf16 %v431_v10, %v430_v4  ;;  %v369_v13 = vmul.f32 0.01, %v241_v2 }
  0x26   :  { %v171_v14 = vmul.f32 %v976_v3, %v1306_v1  ;;  %v172_v15 = vmul.f32 %v977_v5, %v1306_v1  ;;  %v173_v17 = vmul.f32 %v980_v6, %v1306_v1  ;;  %v174_v18 = vmul.f32 %v981_v8, %v1306_v1 }
  0x27   :  { %v432_v16 = vsel %vm304_vm4, %v240_v0, %v368_v11  ;;  %v984_v19 = vunpack.c.l.bf16 %v1230_v9  ;;  %1257 = vst [vmem:[%s1634_s3 + $0x48] sm:$0xff] %v1106_v12   ;;  %v433_v20 = vsel %vm305_vm5, %v241_v2, %v369_v13  ;;  %v985_v23 = vunpack.c.h.bf16 %v1230_v9 }
  0x28   :  { %v242_v21 = vadd.f32 %v1320_v7, %v171_v14  ;;  %v243_v22 = vadd.f32 %v1320_v7, %v172_v15  ;;  %v1111_v24 = vpack.c.bf16 %v433_v20, %v432_v16  ;;  %v244_v25 = vadd.f32 %v1320_v7, %v173_v17  ;;  %v1235_v15 = vld [vmem:[%s1631_s0 + $0x90] sm:$0xff]   ;;  %v1236_v20 = vld [vmem:[%s1631_s0 + $0x98] sm:$0xff]  }
  0x29   :  { %v245_v26 = vadd.f32 %v1320_v7, %v174_v18  ;;  %v175_v27 = vmul.f32 %v984_v19, %v1306_v1  ;;  %v176_v35 = vmul.f32 %v985_v23, %v1306_v1  ;;  %v988_v41 = vunpack.c.l.bf16 %v1231_v28 }
  0x2a   :  { %vm306_vm6 = vcmp.gt.f32.partialorder %v242_v21, 0.0  ;;  %vm307_vm7 = vcmp.gt.f32.partialorder %v243_v22, 0.0  ;;  %v370_v29 = vmul.f32 0.01, %v242_v21  ;;  %v371_v30 = vmul.f32 0.01, %v243_v22 }
  0x2b   :  { %1258 = vst [vmem:[%s1634_s3 + $0x50] sm:$0xff] %v1111_v24   ;;  %vm308_vm8 = vcmp.gt.f32.partialorder %v244_v25, 0.0  ;;  %vm309_vm9 = vcmp.gt.f32.partialorder %v245_v26, 0.0  ;;  %v372_v31 = vmul.f32 0.01, %v244_v25  ;;  %v246_v36 = vadd.f32 %v1320_v7, %v175_v27 }
  0x2c   :  { %v373_v32 = vmul.f32 0.01, %v245_v26  ;;  %v434_v33 = vsel %vm306_vm6, %v242_v21, %v370_v29  ;;  %v435_v34 = vsel %vm307_vm7, %v243_v22, %v371_v30  ;;  %v247_v44 = vadd.f32 %v1320_v7, %v176_v35  ;;  %v1237_v21 = vld [vmem:[%s1631_s0 + $0xa0] sm:$0xff]  }
  0x2d   :  { %v1116_v38 = vpack.c.bf16 %v435_v34, %v434_v33  ;;  %v436_v39 = vsel %vm308_vm8, %v244_v25, %v372_v31  ;;  %vm310_vm10 = vcmp.gt.f32.partialorder %v246_v36, 0.0  ;;  %v374_v45 = vmul.f32 0.01, %v246_v36 }
  0x2e   :  { %v437_v40 = vsel %vm309_vm9, %v245_v26, %v373_v32  ;;  %v989_v46 = vunpack.c.h.bf16 %v1231_v28  ;;  %v177_v47 = vmul.f32 %v988_v41, %v1306_v1  ;;  %v992_v48 = vunpack.c.l.bf16 %v1232_v37 }
  0x2f   :  { %v1121_v43 = vpack.c.bf16 %v437_v40, %v436_v39  ;;  %1259 = vst [vmem:[%s1634_s3 + $0x58] sm:$0xff] %v1116_v38   ;;  %v993_v49 = vunpack.c.h.bf16 %v1232_v37  ;;  %vm311_vm11 = vcmp.gt.f32.partialorder %v247_v44, 0.0  ;;  %v375_v51 = vmul.f32 0.01, %v247_v44  ;;  %v1238_v40 = vld [vmem:[%s1631_s0 + $0xa8] sm:$0xff]  }
  0x30   :  { %v438_v52 = vsel %vm310_vm10, %v246_v36, %v374_v45  ;;  %v996_v53 = vunpack.c.l.bf16 %v1233_v42  ;;  %v178_v54 = vmul.f32 %v989_v46, %v1306_v1  ;;  %v248_v55 = vadd.f32 %v1320_v7, %v177_v47 }
  0x31   :  { %1260 = vst [vmem:[%s1634_s3 + $0x60] sm:$0xff] %v1121_v43   ;;  %v179_v56 = vmul.f32 %v992_v48, %v1306_v1  ;;  %v180_v57 = vmul.f32 %v993_v49, %v1306_v1  ;;  %v439_v58 = vsel %vm311_vm11, %v247_v44, %v375_v51  ;;  %v997_v59 = vunpack.c.h.bf16 %v1233_v42 }
  0x32   :  { %v181_v60 = vmul.f32 %v996_v53, %v1306_v1  ;;  %v1000_v61 = vunpack.c.l.bf16 %v1234_v50  ;;  %v1126_v62 = vpack.c.bf16 %v439_v58, %v438_v52  ;;  %v249_v63 = vadd.f32 %v1320_v7, %v178_v54 }
  0x33   :  { %vm312_vm12 = vcmp.gt.f32.partialorder %v248_v55, 0.0  ;;  %v376_v0 = vmul.f32 0.01, %v248_v55  ;;  %v250_v2 = vadd.f32 %v1320_v7, %v179_v56  ;;  %v251_v3 = vadd.f32 %v1320_v7, %v180_v57 }
  0x34   :  { %v182_v4 = vmul.f32 %v997_v59, %v1306_v1  ;;  %v252_v5 = vadd.f32 %v1320_v7, %v181_v60  ;;  %1261 = vst [vmem:[%s1634_s3 + $0x68] sm:$0xff] %v1126_v62   ;;  %vm313_vm13 = vcmp.gt.f32.partialorder %v249_v63, 0.0  ;;  %v377_v6 = vmul.f32 0.01, %v249_v63 }
  0x35   :  { %v440_v8 = vsel %vm312_vm12, %v248_v55, %v376_v0  ;;  %v1001_v9 = vunpack.c.h.bf16 %v1234_v50  ;;  %vm314_vm14 = vcmp.gt.f32.partialorder %v250_v2, 0.0  ;;  %vm315_vm15 = vcmp.gt.f32.partialorder %v251_v3, 0.0  ;;  %v1239_v0 = vld [vmem:[%s1631_s0 + $0xb0] sm:$0xff]  }
  0x36   :  { %v378_v10 = vmul.f32 0.01, %v250_v2  ;;  %v379_v11 = vmul.f32 0.01, %v251_v3  ;;  %v441_v12 = vsel %vm313_vm13, %v249_v63, %v377_v6  ;;  %v253_v13 = vadd.f32 %v1320_v7, %v182_v4 }
  0x37   :  { %vm316_vm0 = vcmp.gt.f32.partialorder %v252_v5, 0.0  ;;  %v380_v14 = vmul.f32 0.01, %v252_v5  ;;  %v1131_v16 = vpack.c.bf16 %v441_v12, %v440_v8  ;;  %v183_v19 = vmul.f32 %v1000_v61, %v1306_v1 }
  0x38   :  { %v442_v17 = vsel %vm314_vm14, %v250_v2, %v378_v10  ;;  %v443_v18 = vsel %vm315_vm15, %v251_v3, %v379_v11  ;;  %vm317_vm1 = vcmp.gt.f32.partialorder %v253_v13, 0.0  ;;  %v381_v23 = vmul.f32 0.01, %v253_v13  ;;  %v1240_v2 = vld [vmem:[%s1631_s0 + $0xb8] sm:$0xff]  }
  0x39   :  { %v1136_v22 = vpack.c.bf16 %v443_v18, %v442_v17  ;;  %v444_v24 = vsel %vm316_vm0, %v252_v5, %v380_v14  ;;  %1262 = vst [vmem:[%s1634_s3 + $0x70] sm:$0xff] %v1131_v16   ;;  %v184_v25 = vmul.f32 %v1001_v9, %v1306_v1  ;;  %v254_v26 = vadd.f32 %v1320_v7, %v183_v19  ;;  %v1241_v18 = vld [vmem:[%s1631_s0 + $0xc0] sm:$0xff]  }
  0x3a   :  { %v1004_v27 = vunpack.c.l.bf16 %v1235_v15  ;;  %v1005_v28 = vunpack.c.h.bf16 %v1235_v15  ;;  %v445_v29 = vsel %vm317_vm1, %v253_v13, %v381_v23  ;;  %v1008_v30 = vunpack.c.l.bf16 %v1236_v20 }
  0x3b   :  { %1263 = vst [vmem:[%s1634_s3 + $0x78] sm:$0xff] %v1136_v22   ;;  %v1009_v31 = vunpack.c.h.bf16 %v1236_v20  ;;  %v1012_v32 = vunpack.c.l.bf16 %v1237_v21  ;;  %v1141_v33 = vpack.c.bf16 %v445_v29, %v444_v24  ;;  %v255_v34 = vadd.f32 %v1320_v7, %v184_v25 }
  0x3c   :  { %vm318_vm2 = vcmp.gt.f32.partialorder %v254_v26, 0.0  ;;  %v382_v35 = vmul.f32 0.01, %v254_v26  ;;  %v185_v36 = vmul.f32 %v1004_v27, %v1306_v1  ;;  %v186_v37 = vmul.f32 %v1005_v28, %v1306_v1 }
  0x3d   :  { %v187_v38 = vmul.f32 %v1008_v30, %v1306_v1  ;;  %v188_v39 = vmul.f32 %v1009_v31, %v1306_v1  ;;  %1264 = vst [vmem:[%s1634_s3 + $0x80] sm:$0xff] %v1141_v33   ;;  %vm319_vm3 = vcmp.gt.f32.partialorder %v255_v34, 0.0  ;;  %v383_v41 = vmul.f32 0.01, %v255_v34 }
  0x3e   :  { %v446_v42 = vsel %vm318_vm2, %v254_v26, %v382_v35  ;;  %v1013_v43 = vunpack.c.h.bf16 %v1237_v21  ;;  %v256_v44 = vadd.f32 %v1320_v7, %v185_v36  ;;  %v257_v45 = vadd.f32 %v1320_v7, %v186_v37  ;;  %v1242_v36 = vld [vmem:[%s1631_s0 + $0xc8] sm:$0xff]  }
  0x3f   :  { %v258_v46 = vadd.f32 %v1320_v7, %v187_v38  ;;  %v259_v47 = vadd.f32 %v1320_v7, %v188_v39  ;;  %v447_v48 = vsel %vm319_vm3, %v255_v34, %v383_v41  ;;  %v189_v49 = vmul.f32 %v1012_v32, %v1306_v1 }
  0x40   :  { %v190_v50 = vmul.f32 %v1013_v43, %v1306_v1  ;;  %v1016_v51 = vunpack.c.l.bf16 %v1238_v40  ;;  %v1146_v52 = vpack.c.bf16 %v447_v48, %v446_v42  ;;  %vm320_vm4 = vcmp.gt.f32.partialorder %v256_v44, 0.0  ;;  %v1243_v42 = vld [vmem:[%s1631_s0 + $0xd0] sm:$0xff]  }
  0x41   :  { %vm321_vm5 = vcmp.gt.f32.partialorder %v257_v45, 0.0  ;;  %v384_v53 = vmul.f32 0.01, %v256_v44  ;;  %v385_v54 = vmul.f32 0.01, %v257_v45  ;;  %vm322_vm6 = vcmp.gt.f32.partialorder %v258_v46, 0.0 }
  0x42   :  { %vm323_vm7 = vcmp.gt.f32.partialorder %v259_v47, 0.0  ;;  %v386_v55 = vmul.f32 0.01, %v258_v46  ;;  %1265 = vst [vmem:[%s1634_s3 + $0x88] sm:$0xff] %v1146_v52   ;;  %v387_v57 = vmul.f32 0.01, %v259_v47  ;;  %v260_v58 = vadd.f32 %v1320_v7, %v189_v49 }
  0x43   :  { %v448_v56 = vsel %vm320_vm4, %v256_v44, %v384_v53  ;;  %v261_v59 = vadd.f32 %v1320_v7, %v190_v50  ;;  %v449_v60 = vsel %vm321_vm5, %v257_v45, %v385_v54  ;;  %v1017_v62 = vunpack.c.h.bf16 %v1238_v40 }
  0x44   :  { %v450_v61 = vsel %vm322_vm6, %v258_v46, %v386_v55  ;;  %v191_v63 = vmul.f32 %v1016_v51, %v1306_v1  ;;  %v1151_v3 = vpack.c.bf16 %v449_v60, %v448_v56  ;;  %v451_v4 = vsel %vm323_vm7, %v259_v47, %v387_v57  ;;  %v1244_v55 = vld [vmem:[%s1631_s0 + $0xd8] sm:$0xff]  }
  0x45   :  { %vm324_vm8 = vcmp.gt.f32.partialorder %v260_v58, 0.0  ;;  %vm325_vm9 = vcmp.gt.f32.partialorder %v261_v59, 0.0  ;;  %v1156_v5 = vpack.c.bf16 %v451_v4, %v450_v61  ;;  %v388_v6 = vmul.f32 0.01, %v260_v58 }
  0x46   :  { %v389_v8 = vmul.f32 0.01, %v261_v59  ;;  %v192_v9 = vmul.f32 %v1017_v62, %v1306_v1  ;;  %1266 = vst [vmem:[%s1634_s3 + $0x90] sm:$0xff] %v1151_v3   ;;  %v262_v10 = vadd.f32 %v1320_v7, %v191_v63  ;;  %v1020_v11 = vunpack.c.l.bf16 %v1239_v0 }
  0x47   :  { %v1021_v12 = vunpack.c.h.bf16 %v1239_v0  ;;  %v1024_v13 = vunpack.c.l.bf16 %v1240_v2  ;;  %1267 = vst [vmem:[%s1634_s3 + $0x98] sm:$0xff] %v1156_v5   ;;  %v452_v14 = vsel %vm324_vm8, %v260_v58, %v388_v6  ;;  %v1025_v17 = vunpack.c.h.bf16 %v1240_v2 }
  0x48   :  { %v453_v15 = vsel %vm325_vm9, %v261_v59, %v389_v8  ;;  %v263_v16 = vadd.f32 %v1320_v7, %v192_v9  ;;  %vm326_vm10 = vcmp.gt.f32.partialorder %v262_v10, 0.0  ;;  %v390_v20 = vmul.f32 0.01, %v262_v10 }
  0x49   :  { %v1161_v19 = vpack.c.bf16 %v453_v15, %v452_v14  ;;  %v193_v21 = vmul.f32 %v1020_v11, %v1306_v1  ;;  %v194_v23 = vmul.f32 %v1021_v12, %v1306_v1  ;;  %v195_v24 = vmul.f32 %v1024_v13, %v1306_v1  ;;  %v1246_v14 = vld [vmem:[%s1631_s0 + $0xe8] sm:$0xff]  }
  0x4a   :  { %vm327_vm11 = vcmp.gt.f32.partialorder %v263_v16, 0.0  ;;  %v391_v22 = vmul.f32 0.01, %v263_v16  ;;  %v454_v25 = vsel %vm326_vm10, %v262_v10, %v390_v20  ;;  %v196_v27 = vmul.f32 %v1025_v17, %v1306_v1  ;;  %v1245_v10 = vld [vmem:[%s1631_s0 + $0xe0] sm:$0xff]  }
  0x4b   :  { %1268 = vst [vmem:[%s1634_s3 + $0xa0] sm:$0xff] %v1161_v19   ;;  %v264_v26 = vadd.f32 %v1320_v7, %v193_v21  ;;  %v1028_v28 = vunpack.c.l.bf16 %v1241_v18  ;;  %v265_v30 = vadd.f32 %v1320_v7, %v194_v23  ;;  %v266_v31 = vadd.f32 %v1320_v7, %v195_v24 }
  0x4c   :  { %v455_v29 = vsel %vm327_vm11, %v263_v16, %v391_v22  ;;  %v1029_v32 = vunpack.c.h.bf16 %v1241_v18  ;;  %v267_v35 = vadd.f32 %v1320_v7, %v196_v27  ;;  %v1032_v46 = vunpack.c.l.bf16 %v1242_v36 }
  0x4d   :  { %v1166_v33 = vpack.c.bf16 %v455_v29, %v454_v25  ;;  %vm328_vm12 = vcmp.gt.f32.partialorder %v264_v26, 0.0  ;;  %v392_v34 = vmul.f32 0.01, %v264_v26  ;;  %vm329_vm13 = vcmp.gt.f32.partialorder %v265_v30, 0.0 }
  0x4e   :  { %v393_v37 = vmul.f32 0.01, %v265_v30  ;;  %vm330_vm14 = vcmp.gt.f32.partialorder %v266_v31, 0.0  ;;  %v394_v38 = vmul.f32 0.01, %v266_v31  ;;  %vm331_vm15 = vcmp.gt.f32.partialorder %v267_v35, 0.0 }
  0x4f   :  { %1269 = vst [vmem:[%s1634_s3 + $0xa8] sm:$0xff] %v1166_v33   ;;  %v456_v39 = vsel %vm328_vm12, %v264_v26, %v392_v34  ;;  %v395_v40 = vmul.f32 0.01, %v267_v35  ;;  %v197_v41 = vmul.f32 %v1028_v28, %v1306_v1  ;;  %v198_v45 = vmul.f32 %v1029_v32, %v1306_v1 }
  0x50   :  { %v457_v43 = vsel %vm329_vm13, %v265_v30, %v393_v37  ;;  %v458_v44 = vsel %vm330_vm14, %v266_v31, %v394_v38  ;;  %v1033_v50 = vunpack.c.h.bf16 %v1242_v36  ;;  %v199_v53 = vmul.f32 %v1032_v46, %v1306_v1  ;;  %v1247_v30 = vld [vmem:[%s1631_s0 + $0xf0] sm:$0xff]  }
  0x51   :  { %v1171_v47 = vpack.c.bf16 %v457_v43, %v456_v39  ;;  %v459_v48 = vsel %vm331_vm15, %v267_v35, %v395_v40  ;;  %v268_v49 = vadd.f32 %v1320_v7, %v197_v41  ;;  %v269_v52 = vadd.f32 %v1320_v7, %v198_v45 }
  0x52   :  { %v1176_v51 = vpack.c.bf16 %v459_v48, %v458_v44  ;;  %v1036_v54 = vunpack.c.l.bf16 %v1243_v42  ;;  %v200_v57 = vmul.f32 %v1033_v50, %v1306_v1  ;;  %v1037_v58 = vunpack.c.h.bf16 %v1243_v42  ;;  %v1248_v44 = vld [vmem:[%s1631_s0 + $0xf8] sm:$0xff]  }
  0x53   :  { %1270 = vst [vmem:[%s1634_s3 + $0xb0] sm:$0xff] %v1171_v47   ;;  %vm332_vm0 = vcmp.gt.f32.partialorder %v268_v49, 0.0  ;;  %v396_v56 = vmul.f32 0.01, %v268_v49  ;;  %vm333_vm1 = vcmp.gt.f32.partialorder %v269_v52, 0.0  ;;  %v270_v60 = vadd.f32 %v1320_v7, %v199_v53 }
  0x54   :  { %1271 = vst [vmem:[%s1634_s3 + $0xb8] sm:$0xff] %v1176_v51   ;;  %v397_v59 = vmul.f32 0.01, %v269_v52  ;;  %v201_v61 = vmul.f32 %v1036_v54, %v1306_v1  ;;  %v271_v63 = vadd.f32 %v1320_v7, %v200_v57  ;;  %v202_v0 = vmul.f32 %v1037_v58, %v1306_v1 }
  0x55   :  { %v460_v62 = vsel %vm332_vm0, %v268_v49, %v396_v56  ;;  %v1040_v2 = vunpack.c.l.bf16 %v1244_v55  ;;  %vm334_vm2 = vcmp.gt.f32.partialorder %v270_v60, 0.0  ;;  %v398_v4 = vmul.f32 0.01, %v270_v60 }
  0x56   :  { %v461_v3 = vsel %vm333_vm1, %v269_v52, %v397_v59  ;;  %v272_v5 = vadd.f32 %v1320_v7, %v201_v61  ;;  %vm335_vm3 = vcmp.gt.f32.partialorder %v271_v63, 0.0  ;;  %v399_v8 = vmul.f32 0.01, %v271_v63 }
  0x57   :  { %v1181_v6 = vpack.c.bf16 %v461_v3, %v460_v62  ;;  %v273_v9 = vadd.f32 %v1320_v7, %v202_v0  ;;  %v462_v11 = vsel %vm334_vm2, %v270_v60, %v398_v4  ;;  %v1041_v13 = vunpack.c.h.bf16 %v1244_v55 }
  0x58   :  { %vm336_vm4 = vcmp.gt.f32.partialorder %v272_v5, 0.0  ;;  %v400_v12 = vmul.f32 0.01, %v272_v5  ;;  %v463_v15 = vsel %vm335_vm3, %v271_v63, %v399_v8  ;;  %v203_v17 = vmul.f32 %v1040_v2, %v1306_v1 }
  0x59   :  { %1272 = vst [vmem:[%s1634_s3 + $0xc0] sm:$0xff] %v1181_v6   ;;  %vm337_vm5 = vcmp.gt.f32.partialorder %v273_v9, 0.0  ;;  %v401_v16 = vmul.f32 0.01, %v273_v9  ;;  %v1186_v18 = vpack.c.bf16 %v463_v15, %v462_v11  ;;  %v204_v20 = vmul.f32 %v1041_v13, %v1306_v1 }
  0x5a   :  { %v464_v19 = vsel %vm336_vm4, %v272_v5, %v400_v12  ;;  %v1044_v21 = vunpack.c.l.bf16 %v1245_v10  ;;  %v274_v23 = vadd.f32 %v1320_v7, %v203_v17  ;;  %v1045_v24 = vunpack.c.h.bf16 %v1245_v10 }
  0x5b   :  { %v465_v22 = vsel %vm337_vm5, %v273_v9, %v401_v16  ;;  %v1048_v25 = vunpack.c.l.bf16 %v1246_v14  ;;  %1273 = vst [vmem:[%s1634_s3 + $0xc8] sm:$0xff] %v1186_v18   ;;  %v275_v27 = vadd.f32 %v1320_v7, %v204_v20  ;;  %v1049_v29 = vunpack.c.h.bf16 %v1246_v14 }
  0x5c   :  { %v1191_v26 = vpack.c.bf16 %v465_v22, %v464_v19  ;;  %v205_v28 = vmul.f32 %v1044_v21, %v1306_v1  ;;  %vm338_vm6 = vcmp.gt.f32.partialorder %v274_v23, 0.0  ;;  %v402_v31 = vmul.f32 0.01, %v274_v23 }
  0x5d   :  { %v206_v32 = vmul.f32 %v1045_v24, %v1306_v1  ;;  %v207_v33 = vmul.f32 %v1048_v25, %v1306_v1  ;;  %vm339_vm7 = vcmp.gt.f32.partialorder %v275_v27, 0.0  ;;  %v403_v34 = vmul.f32 0.01, %v275_v27 }
  0x5e   :  { %1274 = vst [vmem:[%s1634_s3 + $0xd0] sm:$0xff] %v1191_v26   ;;  %v276_v35 = vadd.f32 %v1320_v7, %v205_v28  ;;  %v208_v36 = vmul.f32 %v1049_v29, %v1306_v1  ;;  %v466_v37 = vsel %vm338_vm6, %v274_v23, %v402_v31  ;;  %v1052_v40 = vunpack.c.l.bf16 %v1247_v30 }
  0x5f   :  { %v277_v38 = vadd.f32 %v1320_v7, %v206_v32  ;;  %v278_v39 = vadd.f32 %v1320_v7, %v207_v33  ;;  %v467_v41 = vsel %vm339_vm7, %v275_v27, %v403_v34  ;;  %v1053_v51 = vunpack.c.h.bf16 %v1247_v30 }
  0x60   :  { %vm340_vm8 = vcmp.gt.f32.partialorder %v276_v35, 0.0  ;;  %v404_v42 = vmul.f32 0.01, %v276_v35  ;;  %v279_v43 = vadd.f32 %v1320_v7, %v208_v36  ;;  %v1196_v45 = vpack.c.bf16 %v467_v41, %v466_v37 }
  0x61   :  { %vm341_vm9 = vcmp.gt.f32.partialorder %v277_v38, 0.0  ;;  %v405_v46 = vmul.f32 0.01, %v277_v38  ;;  %vm342_vm10 = vcmp.gt.f32.partialorder %v278_v39, 0.0  ;;  %v406_v48 = vmul.f32 0.01, %v278_v39 }
  0x62   :  { %v468_v47 = vsel %vm340_vm8, %v276_v35, %v404_v42  ;;  %vm343_vm11 = vcmp.gt.f32.partialorder %v279_v43, 0.0  ;;  %v407_v49 = vmul.f32 0.01, %v279_v43  ;;  %1275 = vst [vmem:[%s1634_s3 + $0xd8] sm:$0xff] %v1196_v45   ;;  %v209_v52 = vmul.f32 %v1052_v40, %v1306_v1 }
  0x63   :  { %v469_v50 = vsel %vm341_vm9, %v277_v38, %v405_v46  ;;  %v1056_v53 = vunpack.c.l.bf16 %v1248_v44  ;;  %v470_v55 = vsel %vm342_vm10, %v278_v39, %v406_v48  ;;  %v1057_v57 = vunpack.c.h.bf16 %v1248_v44 }
  0x64   :  { %v1201_v54 = vpack.c.bf16 %v469_v50, %v468_v47  ;;  %v471_v56 = vsel %vm343_vm11, %v279_v43, %v407_v49  ;;  %v210_v59 = vmul.f32 %v1053_v51, %v1306_v1  ;;  %v280_v60 = vadd.f32 %v1320_v7, %v209_v52 }
  0x65   :  { %v1206_v58 = vpack.c.bf16 %v471_v56, %v470_v55  ;;  %v211_v61 = vmul.f32 %v1056_v53, %v1306_v1  ;;  %v212_v62 = vmul.f32 %v1057_v57, %v1306_v1 }
  0x66   :  { %1276 = vst [vmem:[%s1634_s3 + $0xe0] sm:$0xff] %v1201_v54   ;;  %v281_v63 = vadd.f32 %v1320_v7, %v210_v59  ;;  %vm344_vm12 = vcmp.gt.f32.partialorder %v280_v60, 0.0  ;;  %v408_v0 = vmul.f32 0.01, %v280_v60 }
  0x67   :  { %1277 = vst [vmem:[%s1634_s3 + $0xe8] sm:$0xff] %v1206_v58   ;;  %v282_v2 = vadd.f32 %v1320_v7, %v211_v61  ;;  %v283_v3 = vadd.f32 %v1320_v7, %v212_v62 }
  0x68   :  { %vm345_vm13 = vcmp.gt.f32.partialorder %v281_v63, 0.0  ;;  %v409_v4 = vmul.f32 0.01, %v281_v63  ;;  %v472_v5 = vsel %vm344_vm12, %v280_v60, %v408_v0 }
  0x69   :  { %vm346_vm14 = vcmp.gt.f32.partialorder %v282_v2, 0.0  ;;  %vm347_vm15 = vcmp.gt.f32.partialorder %v283_v3, 0.0  ;;  %v410_v6 = vmul.f32 0.01, %v282_v2  ;;  %v411_v8 = vmul.f32 0.01, %v283_v3 }
  0x6a   :  { %v473_v1 = vsel %vm345_vm13, %v281_v63, %v409_v4 }
  0x6b   :  { %v1211_v9 = vpack.c.bf16 %v473_v1, %v472_v5  ;;  %v474_v10 = vsel %vm346_vm14, %v282_v2, %v410_v6  ;;  %v475_v11 = vsel %vm347_vm15, %v283_v3, %v411_v8 }
  0x6c   :  { %v1216_v12 = vpack.c.bf16 %v475_v11, %v474_v10 }
  0x6d   :  { %1278 = vst [vmem:[%s1634_s3 + $0xf0] sm:$0xff] %v1211_v9  }
  0x6e   :  { %1279 = vst [vmem:[%s1634_s3 + $0xf8] sm:$0xff] %v1216_v12  }

// kernel: encoder_mnist_forward.11
= control target key start
LH: loop header
LB: loop body
LE: loop exit
PB: predicated region body
PF: predicated region fallthrough
CT: control target
= control target key end

     0   :  { %vm586_vm0 = vcmask 1040384   ;;  %s1022_s1 = inlined_call_operand.vmem [shape: bf16[256,128], index: 1, kind: input, shape index: {}]   ;;  %s1023_s0 = inlined_call_operand.vmem [shape: bf16[128,256], index: 0, kind: input, shape index: {}]   ;;  %s1024_s2 = inlined_call_operand.vmem [shape: f32[1,128], index: 2, kind: input, shape index: {}]   ;;  %s1025_s3 = inlined_call_operand.vmem [shape: bf16[128,128], index: 3, kind: output, shape index: {0}]   ;;  %s1026_s4 = inlined_call_operand.vmem [shape: f32[1,2,128], index: 4, kind: output, shape index: {1}]  }
   0x1   :  { %v789_v0 = vld [vmem:[%s1022_s1 + $0x40] sm:$0xff]   ;;  %v791_v2 = vld [vmem:[%s1022_s1 + $0x48] sm:$0xff]   ;;  %v793_v4 = vld [vmem:[%s1022_s1 + $0x50] sm:$0xff]  }
   0x2   :  { %v790_v1 = vld [vmem:[%s1022_s1] sm:$0xff]   ;;  %709 = vmatprep.subr.bf16.mxu0 %v789_v0  ;;  %773 = vmatprep.subr.bf16.mxu1 %v789_v0  ;;  %v792_v3 = vld [vmem:[%s1022_s1 + $0x8] sm:$0xff]   ;;  %v794_v5 = vld [vmem:[%s1022_s1 + $0x10] sm:$0xff]  }
   0x3   :  { %710 = vmatpush3.bf16.msra.mxu0 %v790_v1  ;;  %781 = vmatpush3.bf16.msra.mxu1 %v790_v1  ;;  %v795_v6 = vld [vmem:[%s1022_s1 + $0x58] sm:$0xff]   ;;  %v797_v8 = vld [vmem:[%s1022_s1 + $0x60] sm:$0xff]   ;;  %v799_v10 = vld [vmem:[%s1022_s1 + $0x68] sm:$0xff]  }
   0x4   :  { %711 = vmatprep.subr.bf16.mxu0 %v791_v2  ;;  %774 = vmatprep.subr.bf16.mxu1 %v791_v2  ;;  %v796_v7 = vld [vmem:[%s1022_s1 + $0x18] sm:$0xff]   ;;  %v798_v9 = vld [vmem:[%s1022_s1 + $0x20] sm:$0xff]   ;;  %v800_v12 = vld [vmem:[%s1022_s1 + $0x28] sm:$0xff]  }
   0x5   :  { %v807_v11 = vld [vmem:[%s1023_s0 + $0x4] ss:$8 sps:$4 sm:$0xff]   ;;  %v801_v14 = vld [vmem:[%s1022_s1 + $0x70] sm:$0xff]   ;;  %v803_v16 = vld [vmem:[%s1022_s1 + $0x78] sm:$0xff]  }
   0x6   :  { %v813_v13 = vld [vmem:[%s1023_s0 + $0x44] ss:$8 sps:$4 sm:$0xff]   ;;  %309 = vmatprep.mubr.bf16.mxu0 %v807_v11  ;;  %v802_v15 = vld [vmem:[%s1022_s1 + $0x30] sm:$0xff]   ;;  %v804_v17 = vld [vmem:[%s1022_s1 + $0x38] sm:$0xff]  }
   0x7   :  { %712 = vmatpush3.bf16.msra.mxu0 %v792_v3  ;;  %782 = vmatpush3.bf16.msra.mxu1 %v792_v3  ;;  %v805_v18 = vld [vmem:[%s1023_s0] ss:$8 sps:$4 sm:$0xff]   ;;  %v808_v20 = vld [vmem:[%s1023_s0 + $0x14] ss:$8 sps:$4 sm:$0xff]   ;;  %v810_v22 = vld [vmem:[%s1023_s0 + $0x10] ss:$8 sps:$4 sm:$0xff]  }
   0x8   :  { %713 = vmatprep.subr.bf16.mxu0 %v793_v4  ;;  %775 = vmatprep.subr.bf16.mxu1 %v793_v4  ;;  %v811_v19 = vld [vmem:[%s1023_s0 + $0x40] ss:$8 sps:$4 sm:$0xff]   ;;  %v817_v21 = vld [vmem:[%s1023_s0 + $0x54] ss:$8 sps:$4 sm:$0xff]   ;;  %v819_v23 = vld [vmem:[%s1023_s0 + $0x50] ss:$8 sps:$4 sm:$0xff]  }
   0x9   :  { %341 = vmatprep.mubr.bf16.mxu1 %v813_v13  ;;  %v814_v24 = vld [vmem:[%s1023_s0 + $0x24] ss:$8 sps:$4 sm:$0xff]   ;;  %v816_v26 = vld [vmem:[%s1023_s0 + $0x20] ss:$8 sps:$4 sm:$0xff]   ;;  %v820_v28 = vld [vmem:[%s1023_s0 + $0x34] ss:$8 sps:$4 sm:$0xff]  }
   0xa   :  { %v823_v25 = vld [vmem:[%s1023_s0 + $0x64] ss:$8 sps:$4 sm:$0xff]   ;;  %v825_v27 = vld [vmem:[%s1023_s0 + $0x60] ss:$8 sps:$4 sm:$0xff]   ;;  %v826_v29 = vld [vmem:[%s1023_s0 + $0x74] ss:$8 sps:$4 sm:$0xff]  }
   0xb   :  { %714 = vmatpush3.bf16.msra.mxu0 %v794_v5  ;;  %783 = vmatpush3.bf16.msra.mxu1 %v794_v5  ;;  %v822_v30 = vld [vmem:[%s1023_s0 + $0x30] ss:$8 sps:$4 sm:$0xff]   ;;  %v953_v35 = vld [vmem:[%s1024_s2] ss:$0 sm:$0xff] }
   0xc   :  { %715 = vmatprep.subr.bf16.mxu0 %v795_v6  ;;  %776 = vmatprep.subr.bf16.mxu1 %v795_v6  ;;  %v828_v31 = vld [vmem:[%s1023_s0 + $0x70] ss:$8 sps:$4 sm:$0xff]  }
   0xf   :  { %716 = vmatpush3.bf16.msra.mxu0 %v796_v7  ;;  %784 = vmatpush3.bf16.msra.mxu1 %v796_v7 }
  0x10   :  { %717 = vmatprep.subr.bf16.mxu0 %v797_v8  ;;  %777 = vmatprep.subr.bf16.mxu1 %v797_v8 }
  0x13   :  { %718 = vmatpush3.bf16.msra.mxu0 %v798_v9  ;;  %785 = vmatpush3.bf16.msra.mxu1 %v798_v9 }
  0x14   :  { %719 = vmatprep.subr.bf16.mxu0 %v799_v10  ;;  %778 = vmatprep.subr.bf16.mxu1 %v799_v10 }
  0x17   :  { %720 = vmatpush3.bf16.msra.mxu0 %v800_v12  ;;  %786 = vmatpush3.bf16.msra.mxu1 %v800_v12 }
  0x18   :  { %721 = vmatprep.subr.bf16.mxu0 %v801_v14  ;;  %779 = vmatprep.subr.bf16.mxu1 %v801_v14 }
  0x1b   :  { %722 = vmatpush3.bf16.msra.mxu0 %v802_v15  ;;  %787 = vmatpush3.bf16.msra.mxu1 %v802_v15 }
  0x1c   :  { %723 = vmatprep.subr.bf16.mxu0 %v803_v16  ;;  %780 = vmatprep.subr.bf16.mxu1 %v803_v16 }
  0x1f   :  { %724 = vmatpush3.bf16.msra.mxu0 %v804_v17  ;;  %788 = vmatpush3.bf16.msra.mxu1 %v804_v17 }
  0x22   :  { %310 = vmatmul.mubr.bf16.vlgmr.msra.gmra.mrb[0].mxu0 %v805_v18  ;;  %342 = vmatmul.mubr.bf16.vlgmr.msra.gmra.mrb[0].mxu1 %v811_v19 }
  0x23   :  { %317 = vmatprep.mubr.bf16.mxu0 %v808_v20  ;;  %349 = vmatprep.mubr.bf16.mxu1 %v817_v21 }
  0x2a   :  { %318 = vmatmul.mubr.bf16.gmra.mrb[4].mxu0 %v810_v22  ;;  %350 = vmatmul.mubr.bf16.gmra.mrb[4].mxu1 %v819_v23 }
  0x2b   :  { %325 = vmatprep.mubr.bf16.mxu0 %v814_v24  ;;  %357 = vmatprep.mubr.bf16.mxu1 %v823_v25 }
  0x32   :  { %326 = vmatmul.mubr.bf16.gmra.mrb[8].mxu0 %v816_v26  ;;  %358 = vmatmul.mubr.bf16.gmra.mrb[8].mxu1 %v825_v27 }
  0x33   :  { %333 = vmatprep.mubr.bf16.mxu0 %v820_v28  ;;  %365 = vmatprep.mubr.bf16.mxu1 %v826_v29 }
  0x3a   :  { %334 = vmatmul.mubr.bf16.gmra.mrb[12].mxu0 %v822_v30  ;;  %366 = vmatmul.mubr.bf16.gmra.mrb[12].mxu1 %v828_v31 }
  0xf5   :  { %v725_v32 = vpop.f32.mrb[0].mxu0  ;;  %v749_v33 = vpop.f32.mrb[0].mxu1 }
  0xf6   :  { %v726_v34 = vpop.f32.mrb[1].mxu0  ;;  %v750_v36 = vpop.f32.mrb[1].mxu1 }
  0xf7   :  { %v727_v37 = vadd.f32 %v726_v34, %v725_v32  ;;  %v728_v38 = vpop.f32.mrb[2].mxu0  ;;  %v751_v39 = vadd.f32 %v750_v36, %v749_v33  ;;  %v752_v40 = vpop.f32.mrb[2].mxu1 }
  0xf8   :  { %v729_v41 = vpop.f32.mrb[3].mxu0  ;;  %v753_v42 = vpop.f32.mrb[3].mxu1 }
  0xf9   :  { %v432_v43 = vadd.f32 %v727_v37, %v953_v35  ;;  %v730_v44 = vadd.f32 %v729_v41, %v728_v38  ;;  %v957_v45 = vadd.f32 %v751_v39, %v953_v35  ;;  %v754_v46 = vadd.f32 %v753_v42, %v752_v40 }
  0xfb   :  { %v433_v47 = vadd.f32 %v730_v44, %v953_v35  ;;  %v961_v48 = vadd.f32 %v754_v46, %v953_v35  ;;  %v549_v49 = vmul.f32 %v432_v43, %v432_v43 }
  0xfd   :  { %v665_v50 = vpack.c.bf16 %v433_v47, %v432_v43  ;;  %v528_v51 = vadd.f32 %v433_v47, %v432_v43  ;;  %v550_v52 = vmul.f32 %v433_v47, %v433_v47  ;;  %v731_v53 = vpop.f32.mrb[4].mxu0  ;;  %v685_v54 = vpack.c.bf16 %v961_v48, %v957_v45  ;;  %v755_v55 = vpop.f32.mrb[4].mxu1 }
  0xfe   :  { %v732_v56 = vpop.f32.mrb[5].mxu0  ;;  %v756_v57 = vpop.f32.mrb[5].mxu1 }
  0xff   :  { %666 = vst [vmem:[%s1025_s3] sm:$0xff] %v665_v50   ;;  %v565_v58 = vadd.f32 %v550_v52, %v549_v49  ;;  %v733_v59 = vadd.f32 %v732_v56, %v731_v53  ;;  %v734_v60 = vpop.f32.mrb[6].mxu0  ;;  %705 = vst [vmem:[%s1025_s3 + $0x20] sm:$0xff] %v685_v54   ;;  %v757_v61 = vadd.f32 %v756_v57, %v755_v55  ;;  %v758_v62 = vpop.f32.mrb[6].mxu1 }
 0x100   :  { %v735_v63 = vpop.f32.mrb[7].mxu0  ;;  %v759_v0 = vpop.f32.mrb[7].mxu1 }
 0x101   :  { %v434_v1 = vadd.f32 %v733_v59, %v953_v35  ;;  %v736_v2 = vadd.f32 %v735_v63, %v734_v60  ;;  %v760_v3 = vadd.f32 %v759_v0, %v758_v62  ;;  %v973_v4 = vadd.f32 %v757_v61, %v953_v35 }
 0x103   :  { %v529_v5 = vadd.f32 %v528_v51, %v434_v1  ;;  %v551_v6 = vmul.f32 %v434_v1, %v434_v1  ;;  %v435_v7 = vadd.f32 %v736_v2, %v953_v35  ;;  %v977_v8 = vadd.f32 %v760_v3, %v953_v35 }
 0x105   :  { %v566_v9 = vadd.f32 %v565_v58, %v551_v6  ;;  %v670_v10 = vpack.c.bf16 %v435_v7, %v434_v1  ;;  %v530_v11 = vadd.f32 %v529_v5, %v435_v7  ;;  %v552_v12 = vmul.f32 %v435_v7, %v435_v7  ;;  %v737_v13 = vpop.f32.mrb[8].mxu0  ;;  %v761_v14 = vpop.f32.mrb[8].mxu1 }
 0x106   :  { %v738_v15 = vpop.f32.mrb[9].mxu0  ;;  %v690_v16 = vpack.c.bf16 %v977_v8, %v973_v4  ;;  %v762_v17 = vpop.f32.mrb[9].mxu1  ;;  %v557_v1 = vmul.f32 %v957_v45, %v957_v45  ;;  %v559_v7 = vmul.f32 %v973_v4, %v973_v4 }
 0x107   :  { %702 = vst [vmem:[%s1025_s3 + $0x8] sm:$0xff] %v670_v10   ;;  %v567_v18 = vadd.f32 %v566_v9, %v552_v12  ;;  %v739_v19 = vadd.f32 %v738_v15, %v737_v13  ;;  %v740_v20 = vpop.f32.mrb[10].mxu0  ;;  %v763_v21 = vadd.f32 %v762_v17, %v761_v14  ;;  %v764_v22 = vpop.f32.mrb[10].mxu1 }
 0x108   :  { %v741_v23 = vpop.f32.mrb[11].mxu0  ;;  %706 = vst [vmem:[%s1025_s3 + $0x28] sm:$0xff] %v690_v16   ;;  %v765_v24 = vpop.f32.mrb[11].mxu1 }
 0x109   :  { %v436_v25 = vadd.f32 %v739_v19, %v953_v35  ;;  %v742_v26 = vadd.f32 %v741_v23, %v740_v20  ;;  %v766_v27 = vadd.f32 %v765_v24, %v764_v22  ;;  %v444_v28 = vadd.f32 %v763_v21, %v953_v35 }
 0x10b   :  { %v531_v29 = vadd.f32 %v530_v11, %v436_v25  ;;  %v553_v30 = vmul.f32 %v436_v25, %v436_v25  ;;  %v437_v31 = vadd.f32 %v742_v26, %v953_v35  ;;  %v445_v32 = vadd.f32 %v766_v27, %v953_v35 }
 0x10c   :  { %v561_v14 = vmul.f32 %v444_v28, %v444_v28 }
 0x10d   :  { %v568_v33 = vadd.f32 %v567_v18, %v553_v30  ;;  %v675_v34 = vpack.c.bf16 %v437_v31, %v436_v25  ;;  %v532_v36 = vadd.f32 %v531_v29, %v437_v31  ;;  %v554_v37 = vmul.f32 %v437_v31, %v437_v31  ;;  %v743_v38 = vpop.f32.mrb[12].mxu0  ;;  %v767_v39 = vpop.f32.mrb[12].mxu1 }
 0x10e   :  { %v744_v40 = vpop.f32.mrb[13].mxu0  ;;  %v695_v41 = vpack.c.bf16 %v445_v32, %v444_v28  ;;  %v768_v42 = vpop.f32.mrb[13].mxu1  ;;  %v562_v18 = vmul.f32 %v445_v32, %v445_v32 }
 0x10f   :  { %703 = vst [vmem:[%s1025_s3 + $0x10] sm:$0xff] %v675_v34   ;;  %v569_v43 = vadd.f32 %v568_v33, %v554_v37  ;;  %v745_v44 = vadd.f32 %v744_v40, %v743_v38  ;;  %v746_v46 = vpop.f32.mrb[14].mxu0  ;;  %v769_v47 = vadd.f32 %v768_v42, %v767_v39  ;;  %v770_v49 = vpop.f32.mrb[14].mxu1 }
 0x110   :  { %v747_v50 = vpop.f32.mrb[15].mxu0  ;;  %707 = vst [vmem:[%s1025_s3 + $0x30] sm:$0xff] %v695_v41   ;;  %v771_v51 = vpop.f32.mrb[15].mxu1 }
 0x111   :  { %v438_v52 = vadd.f32 %v745_v44, %v953_v35  ;;  %v748_v53 = vadd.f32 %v747_v50, %v746_v46  ;;  %v772_v54 = vadd.f32 %v771_v51, %v770_v49  ;;  %v446_v55 = vadd.f32 %v769_v47, %v953_v35 }
 0x113   :  { %v533_v56 = vadd.f32 %v532_v36, %v438_v52  ;;  %v555_v57 = vmul.f32 %v438_v52, %v438_v52  ;;  %v439_v58 = vadd.f32 %v748_v53, %v953_v35  ;;  %v447_v59 = vadd.f32 %v772_v54, %v953_v35 }
 0x114   :  { %v558_v35 = vmul.f32 %v961_v48, %v961_v48 }
 0x115   :  { %v570_v60 = vadd.f32 %v569_v43, %v555_v57  ;;  %v680_v61 = vpack.c.bf16 %v439_v58, %v438_v52  ;;  %v534_v62 = vadd.f32 %v533_v56, %v439_v58  ;;  %v556_v63 = vmul.f32 %v439_v58, %v439_v58 }
 0x116   :  { %v700_v0 = vpack.c.bf16 %v447_v59, %v446_v55  ;;  %v564_v23 = vmul.f32 %v447_v59, %v447_v59 }
 0x117   :  { %704 = vst [vmem:[%s1025_s3 + $0x18] sm:$0xff] %v680_v61   ;;  %v535_v2 = vadd.f32 %v534_v62, %v957_v45  ;;  %v571_v3 = vadd.f32 %v570_v60, %v556_v63  ;;  %v560_v45 = vmul.f32 %v977_v8, %v977_v8 }
 0x118   :  { %708 = vst [vmem:[%s1025_s3 + $0x38] sm:$0xff] %v700_v0  }
 0x119   :  { %v536_v5 = vadd.f32 %v535_v2, %v961_v48  ;;  %v572_v6 = vadd.f32 %v571_v3, %v557_v1  ;;  %v563_v48 = vmul.f32 %v446_v55, %v446_v55 }
 0x11b   :  { %v573_v9 = vadd.f32 %v572_v6, %v558_v35  ;;  %v537_v10 = vadd.f32 %v536_v5, %v973_v4 }
 0x11d   :  { %v538_v11 = vadd.f32 %v537_v10, %v977_v8  ;;  %v574_v12 = vadd.f32 %v573_v9, %v559_v7 }
 0x11f   :  { %v539_v13 = vadd.f32 %v538_v11, %v444_v28  ;;  %v575_v15 = vadd.f32 %v574_v12, %v560_v45 }
 0x121   :  { %v576_v16 = vadd.f32 %v575_v15, %v561_v14  ;;  %v540_v17 = vadd.f32 %v539_v13, %v445_v32 }
 0x123   :  { %v577_v19 = vadd.f32 %v576_v16, %v562_v18  ;;  %v541_v20 = vadd.f32 %v540_v17, %v446_v55 }
 0x125   :  { %v578_v21 = vadd.f32 %v577_v19, %v563_v48  ;;  %v542_v22 = vadd.f32 %v541_v20, %v447_v59 }
 0x127   :  { %v543_v24 = vrot.slane %v542_v22, 4  ;;  %v579_v4 = vadd.f32 %v578_v21, %v564_v23 }
 0x129   :  { %v544_v25 = vadd.f32 %v543_v24, %v542_v22  ;;  %v580_v26 = vrot.slane %v579_v4, 4 }
 0x12b   :  { %v545_v27 = vrot.slane %v544_v25, 2  ;;  %v581_v29 = vadd.f32 %v580_v26, %v579_v4 }
 0x12d   :  { %v546_v8 = vadd.f32 %v545_v27, %v544_v25  ;;  %v582_v30 = vrot.slane %v581_v29, 2 }
 0x12f   :  { %v547_v31 = vrot.slane %v546_v8, 1  ;;  %v583_v28 = vadd.f32 %v582_v30, %v581_v29 }
 0x131   :  { %v584_v33 = vrot.slane %v583_v28, 1  ;;  %v548_v34 = vadd.f32 %v547_v31, %v546_v8 }
 0x133   :  { %v585_v32 = vadd.f32 %v584_v33, %v583_v28 }
 0x135   :  { %v587_v36 = vsel %vm586_vm0, %v548_v34, %v585_v32 }
 0x136   :  { %588 = vst [vmem:[%s1026_s4] sm:$0x3] %v587_v36 }

// kernel: encoder_mnist_forward.12
= control target key start
LH: loop header
LB: loop body
LE: loop exit
PB: predicated region body
PF: predicated region fallthrough
CT: control target
= control target key end

     0   :  { %s455_s0 = inlined_call_operand.vmem [shape: bf16[128,128], index: 0, kind: input, shape index: {}]   ;;  %s456_s1 = inlined_call_operand.vmem [shape: f32[1,128], index: 1, kind: input, shape index: {}]   ;;  %s457_s2 = inlined_call_operand.vmem [shape: f32[1,128], index: 2, kind: input, shape index: {}]   ;;  %s458_s3 = inlined_call_operand.vmem [shape: bf16[128,128], index: 3, kind: output, shape index: {}]  }
   0x1   :  { %v259_v0 = vld [vmem:[%s455_s0] sm:$0xff]   ;;  %v330_v4 = vld [vmem:[%s455_s0 + $0x8] sm:$0xff]   ;;  %v331_v5 = vld [vmem:[%s455_s0 + $0x10] sm:$0xff]  }
   0x2   :  { %v370_v1 = vld [vmem:[%s456_s1] ss:$0 sm:$0xff]  ;;  %v260_v2 = vunpack.c.l.bf16 %v259_v0  ;;  %v261_v3 = vunpack.c.h.bf16 %v259_v0  ;;  %v332_v6 = vld [vmem:[%s455_s0 + $0x18] sm:$0xff]   ;;  %v264_v8 = vunpack.c.l.bf16 %v330_v4  ;;  %v265_v9 = vunpack.c.h.bf16 %v330_v4  ;;  %v334_v35 = vld [vmem:[%s455_s0 + $0x28] sm:$0xff]  }
   0x3   :  { %v384_v7 = vld [vmem:[%s457_s2] ss:$0 sm:$0xff]  ;;  %v268_v10 = vunpack.c.l.bf16 %v331_v5  ;;  %v269_v11 = vunpack.c.h.bf16 %v331_v5  ;;  %v272_v14 = vunpack.c.l.bf16 %v332_v6  ;;  %v273_v15 = vunpack.c.h.bf16 %v332_v6  ;;  %v335_v48 = vld [vmem:[%s455_s0 + $0x30] sm:$0xff]   ;;  %v336_v4 = vld [vmem:[%s455_s0 + $0x38] sm:$0xff]  }
   0x4   :  { %v53_v12 = vmul.f32 %v260_v2, %v370_v1  ;;  %v54_v13 = vmul.f32 %v261_v3, %v370_v1  ;;  %v55_v16 = vmul.f32 %v264_v8, %v370_v1  ;;  %v56_v17 = vmul.f32 %v265_v9, %v370_v1  ;;  %v333_v34 = vld [vmem:[%s455_s0 + $0x20] sm:$0xff]  }
   0x5   :  { %v57_v18 = vmul.f32 %v268_v10, %v370_v1  ;;  %v58_v19 = vmul.f32 %v269_v11, %v370_v1  ;;  %v59_v22 = vmul.f32 %v272_v14, %v370_v1  ;;  %v60_v23 = vmul.f32 %v273_v15, %v370_v1 }
   0x6   :  { %v76_v20 = vadd.f32 %v384_v7, %v53_v12  ;;  %v77_v21 = vadd.f32 %v384_v7, %v54_v13  ;;  %v78_v24 = vadd.f32 %v384_v7, %v55_v16  ;;  %v79_v25 = vadd.f32 %v384_v7, %v56_v17 }
   0x7   :  { %v80_v26 = vadd.f32 %v384_v7, %v57_v18  ;;  %v81_v27 = vadd.f32 %v384_v7, %v58_v19  ;;  %v82_v42 = vadd.f32 %v384_v7, %v59_v22  ;;  %v83_v43 = vadd.f32 %v384_v7, %v60_v23 }
   0x8   :  { %vm92_vm0 = vcmp.gt.f32.partialorder %v76_v20, 0.0  ;;  %vm93_vm1 = vcmp.gt.f32.partialorder %v77_v21, 0.0  ;;  %v108_v28 = vmul.f32 0.01, %v76_v20  ;;  %v109_v29 = vmul.f32 0.01, %v77_v21 }
   0x9   :  { %vm94_vm2 = vcmp.gt.f32.partialorder %v78_v24, 0.0  ;;  %vm95_vm3 = vcmp.gt.f32.partialorder %v79_v25, 0.0  ;;  %v110_v30 = vmul.f32 0.01, %v78_v24  ;;  %v111_v31 = vmul.f32 0.01, %v79_v25 }
   0xa   :  { %v124_v32 = vsel %vm92_vm0, %v76_v20, %v108_v28  ;;  %v125_v33 = vsel %vm93_vm1, %v77_v21, %v109_v29  ;;  %vm96_vm4 = vcmp.gt.f32.partialorder %v80_v26, 0.0  ;;  %vm97_vm5 = vcmp.gt.f32.partialorder %v81_v27, 0.0 }
   0xb   :  { %v293_v36 = vpack.c.bf16 %v125_v33, %v124_v32  ;;  %v126_v37 = vsel %vm94_vm2, %v78_v24, %v110_v30  ;;  %v127_v38 = vsel %vm95_vm3, %v79_v25, %v111_v31  ;;  %v112_v39 = vmul.f32 0.01, %v80_v26 }
   0xc   :  { %v298_v40 = vpack.c.bf16 %v127_v38, %v126_v37  ;;  %v113_v41 = vmul.f32 0.01, %v81_v27  ;;  %v276_v45 = vunpack.c.l.bf16 %v333_v34  ;;  %v277_v46 = vunpack.c.h.bf16 %v333_v34 }
   0xd   :  { %294 = vst [vmem:[%s458_s3] sm:$0xff] %v293_v36   ;;  %v128_v44 = vsel %vm96_vm4, %v80_v26, %v112_v39  ;;  %v280_v47 = vunpack.c.l.bf16 %v334_v35  ;;  %vm98_vm6 = vcmp.gt.f32.partialorder %v82_v42, 0.0  ;;  %vm99_vm7 = vcmp.gt.f32.partialorder %v83_v43, 0.0 }
   0xe   :  { %337 = vst [vmem:[%s458_s3 + $0x8] sm:$0xff] %v298_v40   ;;  %v129_v49 = vsel %vm97_vm5, %v81_v27, %v113_v41  ;;  %v114_v50 = vmul.f32 0.01, %v82_v42  ;;  %v115_v52 = vmul.f32 0.01, %v83_v43  ;;  %v61_v53 = vmul.f32 %v276_v45, %v370_v1 }
   0xf   :  { %v303_v51 = vpack.c.bf16 %v129_v49, %v128_v44  ;;  %v62_v54 = vmul.f32 %v277_v46, %v370_v1  ;;  %v281_v56 = vunpack.c.h.bf16 %v334_v35  ;;  %v63_v57 = vmul.f32 %v280_v47, %v370_v1 }
  0x10   :  { %v130_v55 = vsel %vm98_vm6, %v82_v42, %v114_v50  ;;  %v284_v58 = vunpack.c.l.bf16 %v335_v48  ;;  %v131_v59 = vsel %vm99_vm7, %v83_v43, %v115_v52  ;;  %v84_v60 = vadd.f32 %v384_v7, %v61_v53 }
  0x11   :  { %338 = vst [vmem:[%s458_s3 + $0x10] sm:$0xff] %v303_v51   ;;  %v85_v61 = vadd.f32 %v384_v7, %v62_v54  ;;  %v285_v62 = vunpack.c.h.bf16 %v335_v48  ;;  %v308_v63 = vpack.c.bf16 %v131_v59, %v130_v55  ;;  %v64_v0 = vmul.f32 %v281_v56, %v370_v1 }
  0x12   :  { %v86_v2 = vadd.f32 %v384_v7, %v63_v57  ;;  %v65_v3 = vmul.f32 %v284_v58, %v370_v1  ;;  %vm100_vm8 = vcmp.gt.f32.partialorder %v84_v60, 0.0  ;;  %v116_v5 = vmul.f32 0.01, %v84_v60 }
  0x13   :  { %vm101_vm9 = vcmp.gt.f32.partialorder %v85_v61, 0.0  ;;  %v117_v6 = vmul.f32 0.01, %v85_v61  ;;  %339 = vst [vmem:[%s458_s3 + $0x18] sm:$0xff] %v308_v63   ;;  %v87_v8 = vadd.f32 %v384_v7, %v64_v0  ;;  %v66_v10 = vmul.f32 %v285_v62, %v370_v1 }
  0x14   :  { %vm102_vm10 = vcmp.gt.f32.partialorder %v86_v2, 0.0  ;;  %v118_v9 = vmul.f32 0.01, %v86_v2  ;;  %v132_v11 = vsel %vm100_vm8, %v84_v60, %v116_v5  ;;  %v88_v13 = vadd.f32 %v384_v7, %v65_v3 }
  0x15   :  { %v133_v12 = vsel %vm101_vm9, %v85_v61, %v117_v6  ;;  %v288_v14 = vunpack.c.l.bf16 %v336_v4  ;;  %vm103_vm11 = vcmp.gt.f32.partialorder %v87_v8, 0.0  ;;  %v119_v16 = vmul.f32 0.01, %v87_v8 }
  0x16   :  { %v313_v15 = vpack.c.bf16 %v133_v12, %v132_v11  ;;  %v134_v17 = vsel %vm102_vm10, %v86_v2, %v118_v9  ;;  %v89_v18 = vadd.f32 %v384_v7, %v66_v10  ;;  %vm104_vm12 = vcmp.gt.f32.partialorder %v88_v13, 0.0 }
  0x17   :  { %v120_v19 = vmul.f32 0.01, %v88_v13  ;;  %v289_v20 = vunpack.c.h.bf16 %v336_v4  ;;  %v135_v21 = vsel %vm103_vm11, %v87_v8, %v119_v16  ;;  %v67_v22 = vmul.f32 %v288_v14, %v370_v1 }
  0x18   :  { %340 = vst [vmem:[%s458_s3 + $0x20] sm:$0xff] %v313_v15   ;;  %v318_v23 = vpack.c.bf16 %v135_v21, %v134_v17  ;;  %vm105_vm13 = vcmp.gt.f32.partialorder %v89_v18, 0.0  ;;  %v121_v24 = vmul.f32 0.01, %v89_v18 }
  0x19   :  { %v136_v25 = vsel %vm104_vm12, %v88_v13, %v120_v19  ;;  %v68_v26 = vmul.f32 %v289_v20, %v370_v1  ;;  %v90_v27 = vadd.f32 %v384_v7, %v67_v22 }
  0x1a   :  { %341 = vst [vmem:[%s458_s3 + $0x28] sm:$0xff] %v318_v23   ;;  %v137_v28 = vsel %vm105_vm13, %v89_v18, %v121_v24 }
  0x1b   :  { %v323_v29 = vpack.c.bf16 %v137_v28, %v136_v25  ;;  %v91_v30 = vadd.f32 %v384_v7, %v68_v26  ;;  %vm106_vm14 = vcmp.gt.f32.partialorder %v90_v27, 0.0  ;;  %v122_v31 = vmul.f32 0.01, %v90_v27 }
  0x1d   :  { %342 = vst [vmem:[%s458_s3 + $0x30] sm:$0xff] %v323_v29   ;;  %vm107_vm15 = vcmp.gt.f32.partialorder %v91_v30, 0.0  ;;  %v123_v32 = vmul.f32 0.01, %v91_v30  ;;  %v138_v33 = vsel %vm106_vm14, %v90_v27, %v122_v31 }
  0x1f   :  { %v139_v1 = vsel %vm107_vm15, %v91_v30, %v123_v32 }
  0x20   :  { %v328_v34 = vpack.c.bf16 %v139_v1, %v138_v33 }
  0x22   :  { %343 = vst [vmem:[%s458_s3 + $0x38] sm:$0xff] %v328_v34  }

// kernel: encoder_mnist_forward.13
= control target key start
LH: loop header
LB: loop body
LE: loop exit
PB: predicated region body
PF: predicated region fallthrough
CT: control target
= control target key end

     0   :  { %vm499_vm0 = vcmask 1040384   ;;  %s827_s1 = inlined_call_operand.vmem [shape: bf16[512,128], index: 1, kind: input, shape index: {}]   ;;  %s828_s0 = inlined_call_operand.vmem [shape: bf16[32,512], index: 0, kind: input, shape index: {}]   ;;  %s829_s2 = inlined_call_operand.vmem [shape: f32[1,128], index: 2, kind: input, shape index: {}]   ;;  %s830_s3 = inlined_call_operand.vmem [shape: bf16[32,128], index: 3, kind: output, shape index: {0}]   ;;  %s831_s4 = inlined_call_operand.vmem [shape: f32[1,2,128], index: 4, kind: output, shape index: {1}]  }
   0x1   :  { %v626_v0 = vld [vmem:[%s827_s1 + $0x40] sm:$0xff]   ;;  %v630_v4 = vld [vmem:[%s827_s1 + $0x48] sm:$0xff]   ;;  %v634_v8 = vld [vmem:[%s827_s1 + $0x50] sm:$0xff]  }
   0x2   :  { %v627_v1 = vld [vmem:[%s827_s1 + $0xc0] sm:$0xff]   ;;  %570 = vmatprep.subr.bf16.mxu0 %v626_v0  ;;  %v631_v5 = vld [vmem:[%s827_s1 + $0xc8] sm:$0xff]   ;;  %v635_v9 = vld [vmem:[%s827_s1 + $0xd0] sm:$0xff]  }
   0x3   :  { %v628_v2 = vld [vmem:[%s827_s1] sm:$0xff]   ;;  %598 = vmatprep.subr.bf16.mxu1 %v627_v1  ;;  %v632_v6 = vld [vmem:[%s827_s1 + $0x8] sm:$0xff]   ;;  %v636_v10 = vld [vmem:[%s827_s1 + $0x10] sm:$0xff]  }
   0x4   :  { %v629_v3 = vld [vmem:[%s827_s1 + $0x80] sm:$0xff]   ;;  %571 = vmatpush3.bf16.msra.mxu0 %v628_v2  ;;  %v633_v7 = vld [vmem:[%s827_s1 + $0x88] sm:$0xff]   ;;  %v637_v11 = vld [vmem:[%s827_s1 + $0x90] sm:$0xff]  }
   0x5   :  { %599 = vmatpush3.bf16.msra.mxu1 %v629_v3  ;;  %572 = vmatprep.subr.bf16.mxu0 %v630_v4  ;;  %v638_v12 = vld [vmem:[%s827_s1 + $0x58] sm:$0xff]   ;;  %v642_v16 = vld [vmem:[%s827_s1 + $0x60] sm:$0xff]   ;;  %v646_v20 = vld [vmem:[%s827_s1 + $0x68] sm:$0xff]  }
   0x6   :  { %600 = vmatprep.subr.bf16.mxu1 %v631_v5  ;;  %v639_v13 = vld [vmem:[%s827_s1 + $0xd8] sm:$0xff]   ;;  %v643_v17 = vld [vmem:[%s827_s1 + $0xe0] sm:$0xff]   ;;  %v647_v21 = vld [vmem:[%s827_s1 + $0xe8] sm:$0xff]  }
   0x7   :  { %v640_v14 = vld [vmem:[%s827_s1 + $0x18] sm:$0xff]   ;;  %v644_v18 = vld [vmem:[%s827_s1 + $0x20] sm:$0xff]   ;;  %v648_v22 = vld [vmem:[%s827_s1 + $0x28] sm:$0xff]  }
   0x8   :  { %573 = vmatpush3.bf16.msra.mxu0 %v632_v6  ;;  %v641_v15 = vld [vmem:[%s827_s1 + $0x98] sm:$0xff]   ;;  %v645_v19 = vld [vmem:[%s827_s1 + $0xa0] sm:$0xff]   ;;  %v649_v23 = vld [vmem:[%s827_s1 + $0xa8] sm:$0xff]  }
   0x9   :  { %601 = vmatpush3.bf16.msra.mxu1 %v633_v7  ;;  %574 = vmatprep.subr.bf16.mxu0 %v634_v8  ;;  %v650_v24 = vld [vmem:[%s827_s1 + $0x70] sm:$0xff]   ;;  %v654_v28 = vld [vmem:[%s827_s1 + $0x78] sm:$0xff]   ;;  %v550_v49 = vld [vmem:[%s829_s2] ss:$0 sm:$0xff] }
   0xa   :  { %602 = vmatprep.subr.bf16.mxu1 %v635_v9  ;;  %v651_v25 = vld [vmem:[%s827_s1 + $0xf0] sm:$0xff]   ;;  %v655_v29 = vld [vmem:[%s827_s1 + $0xf8] sm:$0xff]  }
   0xb   :  { %v652_v26 = vld [vmem:[%s827_s1 + $0x30] sm:$0xff]   ;;  %v656_v30 = vld [vmem:[%s827_s1 + $0x38] sm:$0xff]  }
   0xc   :  { %575 = vmatpush3.bf16.msra.mxu0 %v636_v10  ;;  %v653_v27 = vld [vmem:[%s827_s1 + $0xb0] sm:$0xff]   ;;  %v657_v31 = vld [vmem:[%s827_s1 + $0xb8] sm:$0xff]  }
   0xd   :  { %603 = vmatpush3.bf16.msra.mxu1 %v637_v11  ;;  %576 = vmatprep.subr.bf16.mxu0 %v638_v12  ;;  %v658_v32 = vld [vmem:[%s828_s0] ss:$16 sps:$4 sm:$0xff]   ;;  %v660_v33 = vld [vmem:[%s828_s0 + $0x4] ss:$16 sps:$4 sm:$0xff]   ;;  %v661_v34 = vld [vmem:[%s828_s0 + $0x8] ss:$16 sps:$4 sm:$0xff]  }
   0xe   :  { %604 = vmatprep.subr.bf16.mxu1 %v639_v13  ;;  %v663_v35 = vld [vmem:[%s828_s0 + $0xc] ss:$16 sps:$4 sm:$0xff]   ;;  %365 = vmatprep.mubr.bf16.mxu0 %v660_v33  ;;  %v664_v36 = vld [vmem:[%s828_s0 + $0x24] ss:$16 sps:$4 sm:$0xff]   ;;  %v668_v38 = vld [vmem:[%s828_s0 + $0x20] ss:$16 sps:$4 sm:$0xff]  }
   0xf   :  { %414 = vmatprep.mubr.bf16.mxu1 %v663_v35  ;;  %v666_v37 = vld [vmem:[%s828_s0 + $0x2c] ss:$16 sps:$4 sm:$0xff]   ;;  %v669_v39 = vld [vmem:[%s828_s0 + $0x28] ss:$16 sps:$4 sm:$0xff]  }
  0x10   :  { %577 = vmatpush3.bf16.msra.mxu0 %v640_v14 }
  0x11   :  { %605 = vmatpush3.bf16.msra.mxu1 %v641_v15  ;;  %578 = vmatprep.subr.bf16.mxu0 %v642_v16 }
  0x12   :  { %606 = vmatprep.subr.bf16.mxu1 %v643_v17 }
  0x14   :  { %579 = vmatpush3.bf16.msra.mxu0 %v644_v18 }
  0x15   :  { %607 = vmatpush3.bf16.msra.mxu1 %v645_v19  ;;  %580 = vmatprep.subr.bf16.mxu0 %v646_v20 }
  0x16   :  { %608 = vmatprep.subr.bf16.mxu1 %v647_v21 }
  0x18   :  { %581 = vmatpush3.bf16.msra.mxu0 %v648_v22 }
  0x19   :  { %609 = vmatpush3.bf16.msra.mxu1 %v649_v23  ;;  %582 = vmatprep.subr.bf16.mxu0 %v650_v24 }
  0x1a   :  { %610 = vmatprep.subr.bf16.mxu1 %v651_v25 }
  0x1c   :  { %583 = vmatpush3.bf16.msra.mxu0 %v652_v26 }
  0x1d   :  { %611 = vmatpush3.bf16.msra.mxu1 %v653_v27  ;;  %584 = vmatprep.subr.bf16.mxu0 %v654_v28 }
  0x1e   :  { %612 = vmatprep.subr.bf16.mxu1 %v655_v29 }
  0x20   :  { %585 = vmatpush3.bf16.msra.mxu0 %v656_v30 }
  0x21   :  { %613 = vmatpush3.bf16.msra.mxu1 %v657_v31 }
  0x23   :  { %366 = vmatmul.mubr.bf16.vlgmr.msra.gmra.mrb[0].mxu0 %v658_v32 }
  0x24   :  { %415 = vmatmul.mubr.bf16.vlgmr.msra.gmra.mrb[0].mxu1 %v661_v34  ;;  %373 = vmatprep.mubr.bf16.mxu0 %v664_v36 }
  0x25   :  { %422 = vmatprep.mubr.bf16.mxu1 %v666_v37 }
  0x2b   :  { %374 = vmatmul.mubr.bf16.gmra.mrb[4].mxu0 %v668_v38 }
  0x2c   :  { %423 = vmatmul.mubr.bf16.gmra.mrb[4].mxu1 %v669_v39 }
  0xf6   :  { %v586_v40 = vpop.f32.mrb[0].mxu0 }
  0xf7   :  { %v614_v41 = vpop.f32.mrb[0].mxu1  ;;  %v587_v42 = vpop.f32.mrb[1].mxu0 }
  0xf8   :  { %v588_v43 = vadd.f32 %v587_v42, %v586_v40  ;;  %v615_v44 = vpop.f32.mrb[1].mxu1  ;;  %v589_v45 = vpop.f32.mrb[2].mxu0 }
  0xf9   :  { %v616_v46 = vadd.f32 %v615_v44, %v614_v41  ;;  %v617_v47 = vpop.f32.mrb[2].mxu1  ;;  %v590_v48 = vpop.f32.mrb[3].mxu0 }
  0xfa   :  { %v591_v50 = vadd.f32 %v590_v48, %v589_v45  ;;  %v618_v51 = vpop.f32.mrb[3].mxu1 }
  0xfb   :  { %v417_v52 = vadd.f32 %v616_v46, %v588_v43  ;;  %v619_v53 = vadd.f32 %v618_v51, %v617_v47 }
  0xfd   :  { %v453_v54 = vadd.f32 %v550_v49, %v417_v52  ;;  %v420_v55 = vadd.f32 %v619_v53, %v591_v50 }
  0xfe   :  { %v592_v56 = vpop.f32.mrb[4].mxu0 }
  0xff   :  { %v454_v57 = vadd.f32 %v550_v49, %v420_v55  ;;  %v620_v58 = vpop.f32.mrb[4].mxu1  ;;  %v593_v59 = vpop.f32.mrb[5].mxu0  ;;  %v486_v60 = vmul.f32 %v453_v54, %v453_v54 }
 0x100   :  { %v594_v61 = vadd.f32 %v593_v59, %v592_v56  ;;  %v621_v62 = vpop.f32.mrb[5].mxu1  ;;  %v595_v63 = vpop.f32.mrb[6].mxu0 }
 0x101   :  { %v562_v0 = vpack.c.bf16 %v454_v57, %v453_v54  ;;  %v477_v1 = vadd.f32 %v454_v57, %v453_v54  ;;  %v487_v2 = vmul.f32 %v454_v57, %v454_v57  ;;  %v622_v3 = vadd.f32 %v621_v62, %v620_v58  ;;  %v623_v4 = vpop.f32.mrb[6].mxu1  ;;  %v596_v5 = vpop.f32.mrb[7].mxu0 }
 0x102   :  { %v597_v6 = vadd.f32 %v596_v5, %v595_v63  ;;  %v624_v7 = vpop.f32.mrb[7].mxu1 }
 0x103   :  { %563 = vst [vmem:[%s830_s3] sm:$0xff] %v562_v0   ;;  %v490_v8 = vadd.f32 %v487_v2, %v486_v60  ;;  %v425_v9 = vadd.f32 %v622_v3, %v594_v61  ;;  %v625_v10 = vadd.f32 %v624_v7, %v623_v4 }
 0x105   :  { %v455_v11 = vadd.f32 %v550_v49, %v425_v9  ;;  %v428_v12 = vadd.f32 %v625_v10, %v597_v6 }
 0x107   :  { %v478_v13 = vadd.f32 %v477_v1, %v455_v11  ;;  %v488_v14 = vmul.f32 %v455_v11, %v455_v11  ;;  %v456_v15 = vadd.f32 %v550_v49, %v428_v12 }
 0x109   :  { %v491_v16 = vadd.f32 %v490_v8, %v488_v14  ;;  %v567_v17 = vpack.c.bf16 %v456_v15, %v455_v11  ;;  %v479_v18 = vadd.f32 %v478_v13, %v456_v15  ;;  %v489_v19 = vmul.f32 %v456_v15, %v456_v15 }
 0x10b   :  { %569 = vst [vmem:[%s830_s3 + $0x8] sm:$0xff] %v567_v17   ;;  %v480_v20 = vrot.slane %v479_v18, 4  ;;  %v492_v21 = vadd.f32 %v491_v16, %v489_v19 }
 0x10d   :  { %v481_v22 = vadd.f32 %v480_v20, %v479_v18  ;;  %v493_v23 = vrot.slane %v492_v21, 4 }
 0x10f   :  { %v482_v24 = vrot.slane %v481_v22, 2  ;;  %v494_v25 = vadd.f32 %v493_v23, %v492_v21 }
 0x111   :  { %v483_v26 = vadd.f32 %v482_v24, %v481_v22  ;;  %v495_v27 = vrot.slane %v494_v25, 2 }
 0x113   :  { %v484_v28 = vrot.slane %v483_v26, 1  ;;  %v496_v29 = vadd.f32 %v495_v27, %v494_v25 }
 0x115   :  { %v497_v30 = vrot.slane %v496_v29, 1  ;;  %v485_v31 = vadd.f32 %v484_v28, %v483_v26 }
 0x117   :  { %v498_v32 = vadd.f32 %v497_v30, %v496_v29 }
 0x119   :  { %v500_v33 = vsel %vm499_vm0, %v485_v31, %v498_v32 }
 0x11a   :  { %501 = vst [vmem:[%s831_s4] sm:$0x3] %v500_v33 }

// kernel: encoder_mnist_forward.14
= control target key start
LH: loop header
LB: loop body
LE: loop exit
PB: predicated region body
PF: predicated region fallthrough
CT: control target
= control target key end

     0   :  { %s148_s0 = inlined_call_operand.vmem [shape: bf16[32,128], index: 0, kind: input, shape index: {}]   ;;  %s149_s1 = inlined_call_operand.vmem [shape: f32[1,128], index: 1, kind: input, shape index: {}]   ;;  %s150_s2 = inlined_call_operand.vmem [shape: f32[1,128], index: 2, kind: input, shape index: {}]   ;;  %s151_s3 = inlined_call_operand.vmem [shape: bf16[32,128], index: 3, kind: output, shape index: {}]  }
   0x1   :  { %v91_v0 = vld [vmem:[%s148_s0] sm:$0xff]   ;;  %v108_v4 = vld [vmem:[%s148_s0 + $0x8] sm:$0xff]  }
   0x2   :  { %v80_v1 = vld [vmem:[%s149_s1] ss:$0 sm:$0xff]  ;;  %v92_v2 = vunpack.c.l.bf16 %v91_v0  ;;  %v93_v3 = vunpack.c.h.bf16 %v91_v0  ;;  %v96_v6 = vunpack.c.l.bf16 %v108_v4  ;;  %v97_v7 = vunpack.c.h.bf16 %v108_v4 }
   0x3   :  { %v81_v5 = vld [vmem:[%s150_s2] ss:$0 sm:$0xff] }
   0x4   :  { %v29_v8 = vmul.f32 %v92_v2, %v80_v1  ;;  %v30_v9 = vmul.f32 %v93_v3, %v80_v1  ;;  %v31_v10 = vmul.f32 %v96_v6, %v80_v1  ;;  %v32_v11 = vmul.f32 %v97_v7, %v80_v1 }
   0x6   :  { %v40_v12 = vadd.f32 %v81_v5, %v29_v8  ;;  %v41_v13 = vadd.f32 %v81_v5, %v30_v9  ;;  %v42_v14 = vadd.f32 %v81_v5, %v31_v10  ;;  %v43_v15 = vadd.f32 %v81_v5, %v32_v11 }
   0x8   :  { %vm44_vm0 = vcmp.gt.f32.partialorder %v40_v12, 0.0  ;;  %vm45_vm1 = vcmp.gt.f32.partialorder %v41_v13, 0.0  ;;  %v48_v16 = vmul.f32 0.01, %v40_v12  ;;  %v49_v17 = vmul.f32 0.01, %v41_v13 }
   0x9   :  { %vm46_vm2 = vcmp.gt.f32.partialorder %v42_v14, 0.0  ;;  %vm47_vm3 = vcmp.gt.f32.partialorder %v43_v15, 0.0  ;;  %v50_v18 = vmul.f32 0.01, %v42_v14  ;;  %v51_v19 = vmul.f32 0.01, %v43_v15 }
   0xa   :  { %v52_v20 = vsel %vm44_vm0, %v40_v12, %v48_v16  ;;  %v53_v21 = vsel %vm45_vm1, %v41_v13, %v49_v17 }
   0xb   :  { %v101_v22 = vpack.c.bf16 %v53_v21, %v52_v20  ;;  %v54_v23 = vsel %vm46_vm2, %v42_v14, %v50_v18  ;;  %v55_v24 = vsel %vm47_vm3, %v43_v15, %v51_v19 }
   0xc   :  { %v106_v25 = vpack.c.bf16 %v55_v24, %v54_v23 }
   0xd   :  { %102 = vst [vmem:[%s151_s3] sm:$0xff] %v101_v22  }
   0xe   :  { %109 = vst [vmem:[%s151_s3 + $0x8] sm:$0xff] %v106_v25  }

// kernel: encoder_mnist_forward.15
= control target key start
LH: loop header
LB: loop body
LE: loop exit
PB: predicated region body
PF: predicated region fallthrough
CT: control target
= control target key end

     0   :  { %v156_v28 = vlaneseq  ;;  %v1027_v36 = vmov 1966171168   ;;  %s1273_s0 = inlined_call_operand.vmem [shape: bf16[2,1024], index: 0, kind: input, shape index: {}]   ;;  %s1274_s1 = inlined_call_operand.vmem [shape: bf16[1024,128], index: 1, kind: input, shape index: {}]   ;;  %s1275_s2 = inlined_call_operand.vmem [shape: f32[1,128], index: 2, kind: input, shape index: {}]   ;;  %s1276_s3 = inlined_call_operand.hbm [shape: f32[2,128], index: 3, kind: output, shape index: {}]  }
   0x1   :  { %v938_v0 = vld [vmem:[%s1274_s1 + $0x40] sm:$0xff]   ;;  %v942_v4 = vld [vmem:[%s1274_s1 + $0x48] sm:$0xff]   ;;  %v946_v8 = vld [vmem:[%s1274_s1 + $0x50] sm:$0xff]   ;;  %v154_v37 = vunpack.c.l.s4 %v1027_v36 }
   0x2   :  { %v939_v1 = vld [vmem:[%s1274_s1 + $0xc0] sm:$0xff]   ;;  %847 = vmatprep.subr.bf16.mxu0 %v938_v0  ;;  %v943_v5 = vld [vmem:[%s1274_s1 + $0xc8] sm:$0xff]   ;;  %v947_v9 = vld [vmem:[%s1274_s1 + $0xd0] sm:$0xff]   ;;  %v157_v33 = vshrl.u32 %v156_v28, 7 }
   0x3   :  { %v940_v2 = vld [vmem:[%s1274_s1] sm:$0xff]   ;;  %869 = vmatprep.subr.bf16.mxu1 %v939_v1  ;;  %v944_v6 = vld [vmem:[%s1274_s1 + $0x8] sm:$0xff]   ;;  %v948_v10 = vld [vmem:[%s1274_s1 + $0x10] sm:$0xff]   ;;  %v155_v40 = vunpack.c.0.s8 %v154_v37 }
   0x4   :  { %v941_v3 = vld [vmem:[%s1274_s1 + $0x80] sm:$0xff]   ;;  %848 = vmatpush3.bf16.msra.mxu0 %v940_v2  ;;  %v945_v7 = vld [vmem:[%s1274_s1 + $0x88] sm:$0xff]   ;;  %v949_v11 = vld [vmem:[%s1274_s1 + $0x90] sm:$0xff]  }
   0x5   :  { %870 = vmatpush3.bf16.msra.mxu1 %v941_v3  ;;  %849 = vmatprep.subr.bf16.mxu0 %v942_v4  ;;  %v950_v12 = vld [vmem:[%s1274_s1 + $0x58] sm:$0xff]   ;;  %v954_v16 = vld [vmem:[%s1274_s1 + $0x60] sm:$0xff]   ;;  %v958_v20 = vld [vmem:[%s1274_s1 + $0x68] sm:$0xff]   ;;  %v1155_v41 = vsub.s32 %v155_v40, %v157_v33 }
   0x6   :  { %871 = vmatprep.subr.bf16.mxu1 %v943_v5  ;;  %v951_v13 = vld [vmem:[%s1274_s1 + $0xd8] sm:$0xff]   ;;  %v955_v17 = vld [vmem:[%s1274_s1 + $0xe0] sm:$0xff]   ;;  %v959_v21 = vld [vmem:[%s1274_s1 + $0xe8] sm:$0xff]  }
   0x7   :  { %v952_v14 = vld [vmem:[%s1274_s1 + $0x18] sm:$0xff]   ;;  %v956_v18 = vld [vmem:[%s1274_s1 + $0x20] sm:$0xff]   ;;  %v960_v22 = vld [vmem:[%s1274_s1 + $0x28] sm:$0xff]  }
   0x8   :  { %850 = vmatpush3.bf16.msra.mxu0 %v944_v6  ;;  %v953_v15 = vld [vmem:[%s1274_s1 + $0x98] sm:$0xff]   ;;  %v957_v19 = vld [vmem:[%s1274_s1 + $0xa0] sm:$0xff]   ;;  %v961_v23 = vld [vmem:[%s1274_s1 + $0xa8] sm:$0xff]  }
   0x9   :  { %872 = vmatpush3.bf16.msra.mxu1 %v945_v7  ;;  %851 = vmatprep.subr.bf16.mxu0 %v946_v8  ;;  %v962_v24 = vld [vmem:[%s1274_s1 + $0x70] sm:$0xff]   ;;  %v966_v29 = vld [vmem:[%s1274_s1 + $0x78] sm:$0xff]   ;;  %v22_v34 = vld [vmem:[%s1273_s0] sm:$0xff] }
   0xa   :  { %873 = vmatprep.subr.bf16.mxu1 %v947_v9  ;;  %v963_v25 = vld [vmem:[%s1274_s1 + $0xf0] sm:$0xff]   ;;  %v967_v30 = vld [vmem:[%s1274_s1 + $0xf8] sm:$0xff]   ;;  %v971_v35 = vld [vmem:[%s1274_s1 + $0x140] sm:$0xff]   ;;  %v152_v39 = vcombine.high %v22_v34, %v22_v34  ;;  %v159_v42 = vrot.slane %v22_v34, %v1155_v41 }
   0xb   :  { %v964_v26 = vld [vmem:[%s1274_s1 + $0x30] sm:$0xff]   ;;  %v968_v31 = vld [vmem:[%s1274_s1 + $0x38] sm:$0xff]   ;;  %v972_v38 = vld [vmem:[%s1274_s1 + $0x1c0] sm:$0xff]  }
   0xc   :  { %852 = vmatpush3.bf16.msra.mxu0 %v948_v10  ;;  %v965_v27 = vld [vmem:[%s1274_s1 + $0xb0] sm:$0xff]   ;;  %v969_v32 = vld [vmem:[%s1274_s1 + $0xb8] sm:$0xff]   ;;  %v1159_v43 = vrot.slane %v152_v39, %v1155_v41  ;;  %v167_v44 = vcombine.high %v159_v42, %v159_v42  ;;  %v175_v45 = vrot.slane %v159_v42, %v1155_v41  ;;  %v973_v48 = vld [vmem:[%s1274_s1 + $0x100] sm:$0xff]  }
   0xd   :  { %874 = vmatpush3.bf16.msra.mxu1 %v949_v11  ;;  %853 = vmatprep.subr.bf16.mxu0 %v950_v12  ;;  %v975_v51 = vld [vmem:[%s1274_s1 + $0x148] sm:$0xff]   ;;  %v974_v53 = vld [vmem:[%s1274_s1 + $0x180] sm:$0xff]   ;;  %v979_v57 = vld [vmem:[%s1274_s1 + $0x150] sm:$0xff]  }
   0xe   :  { %875 = vmatprep.subr.bf16.mxu1 %v951_v13  ;;  %v168_v46 = vcombine.high %v1159_v43, %v1159_v43  ;;  %v189_v47 = vrot.slane %v167_v44, %v1155_v41  ;;  %v197_v50 = vcombine.high %v175_v45, %v175_v45  ;;  %v976_v54 = vld [vmem:[%s1274_s1 + $0x1c8] sm:$0xff]   ;;  %v980_v59 = vld [vmem:[%s1274_s1 + $0x1d0] sm:$0xff]   ;;  %v983_v61 = vld [vmem:[%s1274_s1 + $0x158] sm:$0xff]  }
   0xf   :  { %v977_v56 = vld [vmem:[%s1274_s1 + $0x108] sm:$0xff]   ;;  %v981_v60 = vld [vmem:[%s1274_s1 + $0x110] sm:$0xff]   ;;  %v984_v63 = vld [vmem:[%s1274_s1 + $0x1d8] sm:$0xff]  }
  0x10   :  { %854 = vmatpush3.bf16.msra.mxu0 %v952_v14  ;;  %v196_v49 = vrot.slane %v168_v46, %v1155_v41  ;;  %625 = vmatprep.mubr.bf16.mxu0 %v189_v47  ;;  %v199_v52 = vcombine.high %v189_v47, %v189_v47  ;;  %v978_v58 = vld [vmem:[%s1274_s1 + $0x188] sm:$0xff]   ;;  %v982_v62 = vld [vmem:[%s1274_s1 + $0x190] sm:$0xff]   ;;  %v985_v0 = vld [vmem:[%s1274_s1 + $0x118] sm:$0xff]  }
  0x11   :  { %876 = vmatpush3.bf16.msra.mxu1 %v953_v15  ;;  %855 = vmatprep.subr.bf16.mxu0 %v954_v16  ;;  %v987_v1 = vld [vmem:[%s1274_s1 + $0x160] sm:$0xff]   ;;  %v986_v2 = vld [vmem:[%s1274_s1 + $0x198] sm:$0xff]   ;;  %v991_v5 = vld [vmem:[%s1274_s1 + $0x168] sm:$0xff]  }
  0x12   :  { %877 = vmatprep.subr.bf16.mxu1 %v955_v17  ;;  %v200_v55 = vcombine.high %v196_v49, %v196_v49  ;;  %665 = vmatprep.mubr.bf16.mxu1 %v199_v52  ;;  %v988_v3 = vld [vmem:[%s1274_s1 + $0x1e0] sm:$0xff]   ;;  %v992_v7 = vld [vmem:[%s1274_s1 + $0x1e8] sm:$0xff]   ;;  %v995_v9 = vld [vmem:[%s1274_s1 + $0x170] sm:$0xff]  }
  0x13   :  { %v989_v4 = vld [vmem:[%s1274_s1 + $0x120] sm:$0xff]   ;;  %v993_v8 = vld [vmem:[%s1274_s1 + $0x128] sm:$0xff]  }
  0x14   :  { %856 = vmatpush3.bf16.msra.mxu0 %v956_v18  ;;  %v990_v6 = vld [vmem:[%s1274_s1 + $0x1a0] sm:$0xff]  }
  0x15   :  { %878 = vmatpush3.bf16.msra.mxu1 %v957_v19  ;;  %857 = vmatprep.subr.bf16.mxu0 %v958_v20 }
  0x16   :  { %879 = vmatprep.subr.bf16.mxu1 %v959_v21 }
  0x18   :  { %858 = vmatpush3.bf16.msra.mxu0 %v960_v22 }
  0x19   :  { %880 = vmatpush3.bf16.msra.mxu1 %v961_v23  ;;  %859 = vmatprep.subr.bf16.mxu0 %v962_v24 }
  0x1a   :  { %881 = vmatprep.subr.bf16.mxu1 %v963_v25 }
  0x1c   :  { %860 = vmatpush3.bf16.msra.mxu0 %v964_v26 }
  0x1d   :  { %882 = vmatpush3.bf16.msra.mxu1 %v965_v27  ;;  %861 = vmatprep.subr.bf16.mxu0 %v966_v29 }
  0x1e   :  { %883 = vmatprep.subr.bf16.mxu1 %v967_v30 }
  0x20   :  { %862 = vmatpush3.bf16.msra.mxu0 %v968_v31 }
  0x21   :  { %884 = vmatpush3.bf16.msra.mxu1 %v969_v32  ;;  %891 = vmatprep.subr.bf16.mxu0 %v971_v35 }
  0x22   :  { %913 = vmatprep.subr.bf16.mxu1 %v972_v38 }
  0x23   :  { %626 = vmatmul.mubr.bf16.vlgmr.msra.gmra.mrb[0].mxu0 %v175_v45 }
  0x24   :  { %892 = vmatpush3.bf16.msra.mxu0 %v973_v48  ;;  %666 = vmatmul.mubr.bf16.vlgmr.msra.gmra.mrb[0].mxu1 %v197_v50 }
  0x25   :  { %893 = vmatprep.subr.bf16.mxu0 %v975_v51  ;;  %914 = vmatpush3.bf16.msra.mxu1 %v974_v53 }
  0x26   :  { %705 = vmatprep.mubr.bf16.mxu0 %v196_v49  ;;  %915 = vmatprep.subr.bf16.mxu1 %v976_v54 }
  0x27   :  { %745 = vmatprep.mubr.bf16.mxu1 %v200_v55 }
  0x28   :  { %894 = vmatpush3.bf16.msra.mxu0 %v977_v56 }
  0x29   :  { %895 = vmatprep.subr.bf16.mxu0 %v979_v57  ;;  %916 = vmatpush3.bf16.msra.mxu1 %v978_v58 }
  0x2a   :  { %917 = vmatprep.subr.bf16.mxu1 %v980_v59 }
  0x2c   :  { %896 = vmatpush3.bf16.msra.mxu0 %v981_v60 }
  0x2d   :  { %897 = vmatprep.subr.bf16.mxu0 %v983_v61  ;;  %918 = vmatpush3.bf16.msra.mxu1 %v982_v62 }
  0x2e   :  { %919 = vmatprep.subr.bf16.mxu1 %v984_v63 }
  0x30   :  { %898 = vmatpush3.bf16.msra.mxu0 %v985_v0 }
  0x31   :  { %899 = vmatprep.subr.bf16.mxu0 %v987_v1  ;;  %920 = vmatpush3.bf16.msra.mxu1 %v986_v2 }
  0x32   :  { %921 = vmatprep.subr.bf16.mxu1 %v988_v3 }
  0x34   :  { %900 = vmatpush3.bf16.msra.mxu0 %v989_v4 }
  0x35   :  { %901 = vmatprep.subr.bf16.mxu0 %v991_v5 }
  0x36   :  { %8 = vsyncpa [#allocation4], 0  ;;  %922 = vmatpush3.bf16.msra.mxu1 %v990_v6  ;;  %v994_v10 = vld [vmem:[%s1274_s1 + $0x1a8] sm:$0xff]   ;;  %v996_v11 = vld [vmem:[%s1274_s1 + $0x1f0] sm:$0xff]   ;;  %v182_v17 = vrot.slane %v1159_v43, %v1155_v41  ;;  %v1028_v20 = vmov 0.0   ;;  %s1029_s5 = smov [#allocation3]  }
  0x37   :  { %923 = vmatprep.subr.bf16.mxu1 %v992_v7  ;;  %v997_v12 = vld [vmem:[%s1274_s1 + $0x130] sm:$0xff]   ;;  %v999_v13 = vld [vmem:[%s1274_s1 + $0x178] sm:$0xff]   ;;  %20 = vst [vmem:[#allocation2] sm:$0x3] %v1028_v20  ;;  %v846_v46 = vld [vmem:[%s1275_s2] ss:$0 sm:$0xff] }
  0x38   :  { %902 = vmatpush3.bf16.msra.mxu0 %v993_v8  ;;  %v998_v14 = vld [vmem:[%s1274_s1 + $0x1b0] sm:$0xff]   ;;  %v1000_v15 = vld [vmem:[%s1274_s1 + $0x1f8] sm:$0xff]   ;;  %v198_v19 = vcombine.high %v182_v17, %v182_v17  ;;  %s774_s6 = sshll.u32 %s1029_s5, 4  ;;  %s775_s6 = int_to_ptr.vmem [resolvable:$true] %s774_s6 }
  0x39   :  { %903 = vmatprep.subr.bf16.mxu0 %v995_v9  ;;  %v1001_v16 = vld [vmem:[%s1274_s1 + $0x138] sm:$0xff]   ;;  %s1003_s7 = scalar_lea.vmem %s775_s6, 32  ;;  %p1008_p1 = scmp.lt.s32.totalorder %s775_s6, %s775_s6 }
  0x3a   :  { %924 = vmatpush3.bf16.msra.mxu1 %v994_v10  ;;  %v1002_v18 = vld [vmem:[%s1274_s1 + $0x1b8] sm:$0xff]   ;;  %p1004_p0 = scmp.ne.s32.totalorder %s775_s6, %s1003_s7  ;;  %p1009_p2 = scmp.lt.s32.totalorder %s1003_s7, %s1003_s7 }
  0x3b   :  { %925 = vmatprep.subr.bf16.mxu1 %v996_v11 }
  0x3c   :  { %904 = vmatpush3.bf16.msra.mxu0 %v997_v12  ;;  %p1010_p3 = por %p1009_p2, %p1008_p1 }
  0x3d   :  { %905 = vmatprep.subr.bf16.mxu0 %v999_v13 }
  0x3e   :  { %926 = vmatpush3.bf16.msra.mxu1 %v998_v14  ;;  %v21_v42 = vld [vmem:[#allocation2] sm:$0x3]  ;;  %p1011_p4 = pnand %p1010_p3, %p1004_p0 }
  0x3f   :  { %927 = vmatprep.subr.bf16.mxu1 %v1000_v15 }
  0x40   :  { %906 = vmatpush3.bf16.msra.mxu0 %v1001_v16 }
  0x42   :  { %928 = vmatpush3.bf16.msra.mxu1 %v1002_v18 }
  0x43   :  { %706 = vmatmul.mubr.bf16.vlgmr.msra.gmra.mrb[4].mxu0 %v182_v17 }
  0x45   :  { %746 = vmatmul.mubr.bf16.vlgmr.msra.gmra.mrb[4].mxu1 %v198_v19 }
  0xf6   :  { %v863_v21 = vpop.f32.mrb[0].mxu0 }
  0xf7   :  { %v864_v22 = vpop.f32.mrb[1].mxu0  ;;  %v885_v23 = vpop.f32.mrb[0].mxu1 }
  0xf8   :  { %v865_v24 = vadd.f32 %v864_v22, %v863_v21  ;;  %v866_v25 = vpop.f32.mrb[2].mxu0  ;;  %v886_v26 = vpop.f32.mrb[1].mxu1 }
  0xf9   :  { %v867_v27 = vpop.f32.mrb[3].mxu0  ;;  %v887_v28 = vadd.f32 %v886_v26, %v885_v23  ;;  %v888_v29 = vpop.f32.mrb[2].mxu1 }
  0xfa   :  { %v889_v30 = vpop.f32.mrb[3].mxu1 }
  0xfb   :  { %v668_v31 = vadd.f32 %v887_v28, %v865_v24 }
 0x116   :  { %v907_v32 = vpop.f32.mrb[4].mxu0 }
 0x117   :  { %v908_v33 = vpop.f32.mrb[5].mxu0 }
 0x118   :  { %v929_v34 = vpop.f32.mrb[4].mxu1  ;;  %v909_v35 = vadd.f32 %v908_v33, %v907_v32  ;;  %v910_v36 = vpop.f32.mrb[6].mxu0 }
 0x119   :  { %v930_v37 = vpop.f32.mrb[5].mxu1  ;;  %v911_v38 = vpop.f32.mrb[7].mxu0 }
 0x11a   :  { %v708_v39 = vadd.f32 %v909_v35, %v668_v31  ;;  %v931_v40 = vadd.f32 %v930_v37, %v929_v34  ;;  %v932_v41 = vpop.f32.mrb[6].mxu1 }
 0x11b   :  { %v933_v43 = vpop.f32.mrb[7].mxu1 }
 0x11c   :  { %v748_v44 = vadd.f32 %v931_v40, %v708_v39 }
 0x11e   :  { %v753_v45 = vadd.f32 %v748_v44, %v21_v42 }
 0x120   :  { %754 = vst [vmem:[#allocation2] sm:$0x3] %v753_v45 }
 0x127   :  { %v758_v47 = vld [vmem:[#allocation2] sm:$0x3] }
 0x128   :  { %v766_v48 = vadd.f32 %v846_v46, %v758_v47 }
 0x12a   :  { %767 = vst [vmem:[#allocation3] sm:$0x3] %v766_v48 }
 0x12b   :  { %1014 = shalt.err (!%p1011_p4)
}
 0x12c   :  { %s1015_s10 = scalar_lea.hbm %s1276_s3, 32 }
 0x12d   :  { %p1016_p5 = scmp.ne.s32.totalorder %s1276_s3, %s1015_s10  ;;  %p1019_p6 = scmp.lt.u32.totalorder %s1015_s10, %s1276_s3 }
 0x12f   :  { %p1021_p7 = pnand %p1019_p6, %p1016_p5 }
 0x131   :  { %1024 = shalt.err (!%p1021_p7)
}
 0x132   :  { %777 = dma.vmem_to_hbm [thread:$0]  %s775_s6, 32, %s1276_s3, [#allocation4]  }
 0x133   :  { %1025 = dma.done.wait [#allocation4], 32  }
 0x134   :  { %1026 = vsyncadd [#allocation4], 4294967264 }
 0x135   :  { %781 = vsyncpa [#allocation4], 1 }

</bundles_post_ra>
